<compile_context>
chip_gen: v6e
topology: v6e:2x2x1
jax: 0.10.0
libtpu: 0.0.40
codegen_flags: <defaults>
</compile_context>

<pallas_src>
import functools

import jax
import jax.numpy as jnp
from jax import lax
from jax.experimental import pallas as pl
from jax.experimental.pallas import tpu as pltpu


def _autoreg_kernel(tok_ref, Wbig_ref, bbig_ref, W1_ref, b1_ref, W2_ref, b2_ref,
                    Wc_ref, bc_ref,
                    logits_ref, attn_ref,
                    k_cache, v_cache,
                    *, L0, num_steps):
    f32 = jnp.float32
    B, L_buf, twoP = tok_ref.shape
    D = W1_ref.shape[0]
    P = twoP // 2
    scale = 1.0 / float(D) ** 0.5

    # ---- load invariant weights into values once (single-buffered) --------
    Wbig = Wbig_ref[...]          # (2P, 4D) fused [embed | Wq | Wk | Wv]
    bbig = bbig_ref[...]          # (1, 4D)
    W1 = W1_ref[...]; b1 = b1_ref[...]
    W2 = W2_ref[...]; b2 = b2_ref[...]
    Wc = Wc_ref[...]; bc = bc_ref[...]
    # successor tokens are [zeros(P) | succ]; only the second half of Wbig matters
    Wsucc = Wbig[P:2 * P, :]      # (P, 4D)

    def head(x1):
        """FFN (residual) + classification head on (B, D) rows."""
        h = jnp.maximum(jnp.dot(x1, W1, preferred_element_type=f32) + b1, 0.0)
        x2 = x1 + jnp.dot(h, W2, preferred_element_type=f32) + b2
        return jnp.dot(x2, Wc, preferred_element_type=f32) + bc          # (B, P)

    # ---- step 0: full prefix, batched over B -------------------------------
    tok2 = tok_ref[...].reshape(B * L_buf, twoP)                         # (B*L, 2P)
    xqkv = (jnp.dot(tok2, Wbig, preferred_element_type=f32) + bbig
            ).reshape(B, L_buf, 4 * D)                                   # (B, L, 4D)
    x = xqkv[..., 0 * D:1 * D]
    q = xqkv[..., 1 * D:2 * D]
    k = xqkv[..., 2 * D:3 * D]
    v = xqkv[..., 3 * D:4 * D]
    k_cache[...] = k
    v_cache[...] = v

    scores = jnp.einsum('bqd,bkd->bqk', q, k, preferred_element_type=f32) * scale
    row = lax.broadcasted_iota(jnp.int32, (L_buf, L_buf), 0)
    col = lax.broadcasted_iota(jnp.int32, (L_buf, L_buf), 1)
    scores = scores + jnp.where(col > row, -999.0, 0.0).astype(f32)[None]
    m = jnp.max(scores, axis=-1, keepdims=True)
    e = jnp.exp(scores - m)                                              # f32 softmax
    wts = e / jnp.sum(e, axis=-1, keepdims=True)                         # (B, L, L)
    # rows >= L0 come from zero-padded tokens: zero them so padding rows are clean
    attn_ref[...] = jnp.where((row < L0)[None], wts, 0.0)

    ao = jnp.einsum('bqk,bkd->bqd', wts[:, L0 - 1:L0, :], v,
                    preferred_element_type=f32)[:, 0, :]                 # (B, D)
    logits_t = head(x[:, L0 - 1, :] + ao)                                # (B, P)
    logits_ref[:, 0:1, :] = logits_t[:, None, :]
    succ = (logits_t > 0.0).astype(f32)                                  # (B, P)

    # ---- steps 1..num_steps-1: incremental (KV-cache) decode, unrolled -----
    for t in range(1, num_steps):          # static python loop -> static indices
        idx = L0 + t - 1                   # row of the token appended last step
        new = jnp.dot(succ, Wsucc, preferred_element_type=f32) + bbig    # (B, 4D)
        x_n = new[:, 0 * D:1 * D]
        q_n = new[:, 1 * D:2 * D]
        k_n = new[:, 2 * D:3 * D]
        v_n = new[:, 3 * D:4 * D]
        k_cache[:, idx:idx + 1, :] = k_n[:, None, :]
        v_cache[:, idx:idx + 1, :] = v_n[:, None, :]

        kc = k_cache[...]
        vc = v_cache[...]
        s = jnp.einsum('bqd,bkd->bqk', q_n[:, None, :], kc,
                       preferred_element_type=f32) * scale               # (B, 1, L)
        ccol = lax.broadcasted_iota(jnp.int32, (1, 1, L_buf), 2)
        s = s + jnp.where(ccol > idx, -999.0, 0.0).astype(f32)
        ms = jnp.max(s, axis=-1, keepdims=True)
        es = jnp.exp(s - ms)
        w = es / jnp.sum(es, axis=-1, keepdims=True)                     # (B, 1, L)
        attn_ref[:, idx:idx + 1, :] = w                                  # one new row

        ao = jnp.einsum('bqk,bkd->bqd', w, vc,
                        preferred_element_type=f32)[:, 0, :]             # (B, D)
        logits_t = head(x_n + ao)
        logits_ref[:, t:t + 1, :] = logits_t[:, None, :]
        succ = (logits_t > 0.0).astype(f32)


def init_params(key, num_props, embed_dim=None):
    """Deterministic nn.Linear-style init.  Weights stored as (in, out)."""
    input_dim = 2 * num_props
    D = input_dim if embed_dim is None else embed_dim

    def linear(k, fan_in, fan_out):
        bound = 1.0 / float(fan_in) ** 0.5
        kw, kb = jax.random.split(k)
        W = jax.random.uniform(kw, (fan_in, fan_out), jnp.float32, -bound, bound)
        b = jax.random.uniform(kb, (1, fan_out), jnp.float32, -bound, bound)
        return W, b

    keys = jax.random.split(key, 7)
    p = {}
    p['We'], p['be'] = linear(keys[0], input_dim, D)       # embed_fn
    p['Wq'], p['bq'] = linear(keys[1], D, D)               # attn.Wq
    p['Wk'], p['bk'] = linear(keys[2], D, D)               # attn.Wk
    p['Wv'], p['bv'] = linear(keys[3], D, D)               # attn.Wv
    p['W1'], p['b1'] = linear(keys[4], D, 4 * D)           # ffwd[0]
    p['W2'], p['b2'] = linear(keys[5], 4 * D, D)           # ffwd[2]
    p['Wc'], p['bc'] = linear(keys[6], D, num_props)       # cls_head
    return p


@functools.partial(jax.jit, static_argnames=('num_steps',))
def autoreg_theory_forward(tokens, params, num_steps, labels=None):
    """tokens: (B, L0, 2*num_props) int.  Returns (loss, logits, attn)."""
    B, L0, twoP = tokens.shape
    P = twoP // 2
    D = params['We'].shape[1]
    L_buf = ((L0 + num_steps + 7) // 8) * 8                # sublane-aligned length

    # zero-pad the prompt tokens out to the full rolled-out (aligned) length
    tok0 = jnp.zeros((B, L_buf, twoP), jnp.float32)
    tok0 = tok0.at[:, :L0, :].set(tokens.astype(jnp.float32))

    # fuse embed_fn with the Q/K/V projections into one (2P, 4D) matmul
    We, be = params['We'], params['be']
    Wbig = jnp.concatenate(
        [We, We @ params['Wq'], We @ params['Wk'], We @ params['Wv']], axis=1)
    bbig = jnp.concatenate(
        [be,
         be @ params['Wq'] + params['bq'],
         be @ params['Wk'] + params['bk'],
         be @ params['Wv'] + params['bv']], axis=1)

    vmem = pl.BlockSpec(memory_space=pltpu.MemorySpace.VMEM)
    kernel = functools.partial(_autoreg_kernel, L0=L0, num_steps=num_steps)

    logits, attn = pl.pallas_call(
        kernel,
        out_shape=(jax.ShapeDtypeStruct((B, num_steps, P), jnp.float32),
                   jax.ShapeDtypeStruct((B, L_buf, L_buf), jnp.float32)),
        in_specs=[vmem] * 9,
        out_specs=(vmem, vmem),
        scratch_shapes=[pltpu.VMEM((B, L_buf, D), jnp.float32),   # K cache
                        pltpu.VMEM((B, L_buf, D), jnp.float32)],  # V cache
    )(tok0, Wbig, bbig, params['W1'], params['b1'], params['W2'], params['b2'],
      params['Wc'], params['bc'])

    loss = None
    if labels is not None:
        # BCEWithLogitsLoss (mean reduction), computed as plain-JAX glue.
        y = labels.astype(jnp.float32)
        loss = jnp.mean(jnp.maximum(logits, 0.0) - logits * y
                        + jnp.log1p(jnp.exp(-jnp.abs(logits))))
    return loss, logits, attn


def attn_step_view(attn_full, L0, t):
    """Reference's per-step attention matrix (step t) as a view of the output."""
    return attn_full[:, :L0 + t, :L0 + t]


if __name__ == "__main__":
    key = jax.random.PRNGKey(0)
    num_props = 8          # input_dim = 16, embed_dim = 16
    num_steps = 8
    B, L0 = 2, 8

    kp, kt, kl = jax.random.split(key, 3)
    params = init_params(kp, num_props)
    tokens = jax.random.bernoulli(kt, 0.5, (B, L0, 2 * num_props)).astype(jnp.int32)
    labels = jax.random.bernoulli(kl, 0.5, (B, num_steps, num_props)).astype(jnp.int32)

    loss, logits, attn = autoreg_theory_forward(tokens, params, num_steps, labels)
    jax.block_until_ready((loss, logits, attn))
    L_buf = ((L0 + num_steps + 7) // 8) * 8
    assert logits.shape == (B, num_steps, num_props)
    assert attn.shape == (B, L_buf, L_buf)
    assert attn_step_view(attn, L0, 0).shape == (B, L0, L0)
    print("KERNEL_OK")
</pallas_src>

<mosaic_0001>
module attributes {stable_mosaic.version = 11 : i64} {
  func.func @_autoreg_kernel(%arg0: memref<2x16x16xf32, #tpu.memory_space<vmem>>, %arg1: memref<16x64xf32, #tpu.memory_space<vmem>>, %arg2: memref<1x64xf32, #tpu.memory_space<vmem>>, %arg3: memref<16x64xf32, #tpu.memory_space<vmem>>, %arg4: memref<1x64xf32, #tpu.memory_space<vmem>>, %arg5: memref<64x16xf32, #tpu.memory_space<vmem>>, %arg6: memref<1x16xf32, #tpu.memory_space<vmem>>, %arg7: memref<16x8xf32, #tpu.memory_space<vmem>>, %arg8: memref<1x8xf32, #tpu.memory_space<vmem>>, %arg9: memref<2x8x8xf32, #tpu.memory_space<vmem>>, %arg10: memref<2x16x16xf32, #tpu.memory_space<vmem>>, %arg11: memref<2x16x16xf32, #tpu.memory_space<vmem>>, %arg12: memref<2x16x16xf32, #tpu.memory_space<vmem>>) attributes {dimension_semantics = [], scalar_prefetch = 0 : i64, scratch_operands = 2 : i64, tpu.core_type = #tpu.core_type<tc>} {
    %c0 = arith.constant 0 : index
    %c0_0 = arith.constant 0 : index
    %0 = vector.load %arg1[%c0, %c0_0] : memref<16x64xf32, #tpu.memory_space<vmem>>, vector<16x64xf32>
    %c0_1 = arith.constant 0 : index
    %c0_2 = arith.constant 0 : index
    %1 = vector.load %arg2[%c0_1, %c0_2] : memref<1x64xf32, #tpu.memory_space<vmem>>, vector<1x64xf32>
    %c0_3 = arith.constant 0 : index
    %c0_4 = arith.constant 0 : index
    %2 = vector.load %arg3[%c0_3, %c0_4] : memref<16x64xf32, #tpu.memory_space<vmem>>, vector<16x64xf32>
    %c0_5 = arith.constant 0 : index
    %c0_6 = arith.constant 0 : index
    %3 = vector.load %arg4[%c0_5, %c0_6] : memref<1x64xf32, #tpu.memory_space<vmem>>, vector<1x64xf32>
    %c0_7 = arith.constant 0 : index
    %c0_8 = arith.constant 0 : index
    %4 = vector.load %arg5[%c0_7, %c0_8] : memref<64x16xf32, #tpu.memory_space<vmem>>, vector<64x16xf32>
    %c0_9 = arith.constant 0 : index
    %c0_10 = arith.constant 0 : index
    %5 = vector.load %arg6[%c0_9, %c0_10] : memref<1x16xf32, #tpu.memory_space<vmem>>, vector<1x16xf32>
    %c0_11 = arith.constant 0 : index
    %c0_12 = arith.constant 0 : index
    %6 = vector.load %arg7[%c0_11, %c0_12] : memref<16x8xf32, #tpu.memory_space<vmem>>, vector<16x8xf32>
    %c0_13 = arith.constant 0 : index
    %c0_14 = arith.constant 0 : index
    %7 = vector.load %arg8[%c0_13, %c0_14] : memref<1x8xf32, #tpu.memory_space<vmem>>, vector<1x8xf32>
    %8 = vector.extract_strided_slice %0 {offsets = [8, 0], sizes = [8, 64], strides = [1, 1]} : vector<16x64xf32> to vector<8x64xf32>
    %c0_15 = arith.constant 0 : index
    %c0_16 = arith.constant 0 : index
    %c0_17 = arith.constant 0 : index
    %9 = vector.load %arg0[%c0_15, %c0_16, %c0_17] : memref<2x16x16xf32, #tpu.memory_space<vmem>>, vector<2x16x16xf32>
    %10 = vector.shape_cast %9 : vector<2x16x16xf32> to vector<32x16xf32>
    %cst = arith.constant dense<0.000000e+00> : vector<32x64xf32>
    %11 = tpu.matmul %10, %0, %cst {dimension_numbers = #tpu.dot_dimension_numbers<[1], [0], [0], [1], [0, 0, 1, 1], [], []>} : vector<32x16xf32>, vector<16x64xf32>, vector<32x64xf32> -> vector<32x64xf32>
    %12 = vector.broadcast %1 : vector<1x64xf32> to vector<32x64xf32>
    %13 = arith.addf %11, %12 : vector<32x64xf32>
    %14 = vector.shape_cast %13 : vector<32x64xf32> to vector<2x16x64xf32>
    %15 = vector.extract_strided_slice %14 {offsets = [0, 0, 0], sizes = [2, 16, 16], strides = [1, 1, 1]} : vector<2x16x64xf32> to vector<2x16x16xf32>
    %16 = vector.extract_strided_slice %14 {offsets = [0, 0, 16], sizes = [2, 16, 16], strides = [1, 1, 1]} : vector<2x16x64xf32> to vector<2x16x16xf32>
    %17 = vector.extract_strided_slice %14 {offsets = [0, 0, 32], sizes = [2, 16, 16], strides = [1, 1, 1]} : vector<2x16x64xf32> to vector<2x16x16xf32>
    %18 = vector.extract_strided_slice %14 {offsets = [0, 0, 48], sizes = [2, 16, 16], strides = [1, 1, 1]} : vector<2x16x64xf32> to vector<2x16x16xf32>
    %c0_18 = arith.constant 0 : index
    %c0_19 = arith.constant 0 : index
    %c0_20 = arith.constant 0 : index
    %19 = vector.load %arg11[%c0_18, %c0_19, %c0_20] : memref<2x16x16xf32, #tpu.memory_space<vmem>>, vector<2x16x16xf32>
    tpu.vector_store %arg11[%c0_18, %c0_19, %c0_20], %17 {strides = array<i32>} : memref<2x16x16xf32, #tpu.memory_space<vmem>>, vector<2x16x16xf32>,
    %c0_21 = arith.constant 0 : index
    %c0_22 = arith.constant 0 : index
    %c0_23 = arith.constant 0 : index
    %20 = vector.load %arg12[%c0_21, %c0_22, %c0_23] : memref<2x16x16xf32, #tpu.memory_space<vmem>>, vector<2x16x16xf32>
    tpu.vector_store %arg12[%c0_21, %c0_22, %c0_23], %18 {strides = array<i32>} : memref<2x16x16xf32, #tpu.memory_space<vmem>>, vector<2x16x16xf32>,
    "tpu.trace_start"() <{level = 10 : i32, message = "bqd,bkd->bqk"}> : () -> ()
    %cst_24 = arith.constant dense<0.000000e+00> : vector<2x16x16xf32>
    %21 = tpu.matmul %16, %17, %cst_24 {dimension_numbers = #tpu.dot_dimension_numbers<[2], [2], [1], [1], [0, 0, 0, 1, 1, 1], [0], [0]>} : vector<2x16x16xf32>, vector<2x16x16xf32>, vector<2x16x16xf32> -> vector<2x16x16xf32>
    "tpu.trace_stop"() : () -> ()
    %cst_25 = arith.constant 2.500000e-01 : f32
    %22 = vector.broadcast %cst_25 : f32 to vector<2x16x16xf32>
    %23 = arith.mulf %21, %22 : vector<2x16x16xf32>
    %24 = tpu.iota {dimensions = array<i32: 0>} : vector<16x16xi32>
    %25 = tpu.iota {dimensions = array<i32: 1>} : vector<16x16xi32>
    %26 = arith.cmpi sgt, %25, %24 : vector<16x16xi32>
    %cst_26 = arith.constant -9.990000e+02 : f32
    %cst_27 = arith.constant 0.000000e+00 : f32
    %27 = vector.broadcast %cst_26 : f32 to vector<16x16xf32>
    %28 = vector.broadcast %cst_27 : f32 to vector<16x16xf32>
    %29 = arith.select %26, %27, %28 : vector<16x16xi1>, vector<16x16xf32>
    %30 = vector.shape_cast %29 : vector<16x16xf32> to vector<1x16x16xf32>
    %31 = vector.broadcast %30 : vector<1x16x16xf32> to vector<2x16x16xf32>
    %32 = arith.addf %23, %31 : vector<2x16x16xf32>
    %cst_28 = arith.constant dense<0xFF800000> : vector<2x16xf32>
    %33 = vector.multi_reduction <maximumf>, %32, %cst_28 [2] : vector<2x16x16xf32> to vector<2x16xf32>
    %34 = vector.shape_cast %33 : vector<2x16xf32> to vector<2x16x1xf32>
    %35 = vector.broadcast %34 : vector<2x16x1xf32> to vector<2x16x16xf32>
    %36 = arith.subf %32, %35 : vector<2x16x16xf32>
    %37 = math.exp %36 : vector<2x16x16xf32>
    %cst_29 = arith.constant dense<0.000000e+00> : vector<2x16xf32>
    %38 = vector.multi_reduction <add>, %37, %cst_29 [2] : vector<2x16x16xf32> to vector<2x16xf32>
    %39 = vector.shape_cast %38 : vector<2x16xf32> to vector<2x16x1xf32>
    %40 = vector.broadcast %39 : vector<2x16x1xf32> to vector<2x16x16xf32>
    %41 = arith.divf %37, %40 : vector<2x16x16xf32>
    %c8_i32 = arith.constant 8 : i32
    %42 = vector.broadcast %c8_i32 : i32 to vector<16x16xi32>
    %43 = arith.cmpi slt, %24, %42 : vector<16x16xi32>
    %44 = vector.shape_cast %43 : vector<16x16xi1> to vector<1x16x16xi1>
    %cst_30 = arith.constant 0.000000e+00 : f32
    %45 = vector.shape_cast %44 : vector<1x16x16xi1> to vector<1x16x16xi1>
    %46 = vector.broadcast %45 : vector<1x16x16xi1> to vector<2x16x16xi1>
    %47 = vector.broadcast %cst_30 : f32 to vector<2x16x16xf32>
    %48 = arith.select %46, %41, %47 : vector<2x16x16xi1>, vector<2x16x16xf32>
    %c0_31 = arith.constant 0 : index
    %c0_32 = arith.constant 0 : index
    %c0_33 = arith.constant 0 : index
    %49 = vector.load %arg10[%c0_31, %c0_32, %c0_33] : memref<2x16x16xf32, #tpu.memory_space<vmem>>, vector<2x16x16xf32>
    tpu.vector_store %arg10[%c0_31, %c0_32, %c0_33], %48 {strides = array<i32>} : memref<2x16x16xf32, #tpu.memory_space<vmem>>, vector<2x16x16xf32>,
    %50 = vector.extract_strided_slice %41 {offsets = [0, 7, 0], sizes = [2, 1, 16], strides = [1, 1, 1]} : vector<2x16x16xf32> to vector<2x1x16xf32>
    "tpu.trace_start"() <{level = 10 : i32, message = "bqk,bkd->bqd"}> : () -> ()
    %cst_34 = arith.constant dense<0.000000e+00> : vector<2x1x16xf32>
    %51 = tpu.matmul %50, %18, %cst_34 {dimension_numbers = #tpu.dot_dimension_numbers<[2], [1], [1], [2], [0, 0, 0, 1, 1, 2], [0], [0]>} : vector<2x1x16xf32>, vector<2x16x16xf32>, vector<2x1x16xf32> -> vector<2x1x16xf32>
    "tpu.trace_stop"() : () -> ()
    %52 = vector.shape_cast %51 : vector<2x1x16xf32> to vector<2x16xf32>
    %53 = vector.extract_strided_slice %15 {offsets = [0, 7, 0], sizes = [2, 1, 16], strides = [1, 1, 1]} : vector<2x16x16xf32> to vector<2x1x16xf32>
    %54 = vector.shape_cast %53 : vector<2x1x16xf32> to vector<2x16xf32>
    %55 = arith.addf %54, %52 : vector<2x16xf32>
    %cst_35 = arith.constant dense<0.000000e+00> : vector<2x64xf32>
    %56 = tpu.matmul %55, %2, %cst_35 {dimension_numbers = #tpu.dot_dimension_numbers<[1], [0], [0], [1], [0, 0, 1, 1], [], []>} : vector<2x16xf32>, vector<16x64xf32>, vector<2x64xf32> -> vector<2x64xf32>
    %57 = vector.broadcast %3 : vector<1x64xf32> to vector<2x64xf32>
    %58 = arith.addf %56, %57 : vector<2x64xf32>
    %cst_36 = arith.constant 0.000000e+00 : f32
    %59 = vector.broadcast %cst_36 : f32 to vector<2x64xf32>
    %60 = arith.maximumf %58, %59 : vector<2x64xf32>
    %cst_37 = arith.constant dense<0.000000e+00> : vector<2x16xf32>
    %61 = tpu.matmul %60, %4, %cst_37 {dimension_numbers = #tpu.dot_dimension_numbers<[1], [0], [0], [1], [0, 0, 1, 1], [], []>} : vector<2x64xf32>, vector<64x16xf32>, vector<2x16xf32> -> vector<2x16xf32>
    %62 = arith.addf %55, %61 : vector<2x16xf32>
    %63 = vector.broadcast %5 : vector<1x16xf32> to vector<2x16xf32>
    %64 = arith.addf %62, %63 : vector<2x16xf32>
    %cst_38 = arith.constant dense<0.000000e+00> : vector<2x8xf32>
    %65 = tpu.matmul %64, %6, %cst_38 {dimension_numbers = #tpu.dot_dimension_numbers<[1], [0], [0], [1], [0, 0, 1, 1], [], []>} : vector<2x16xf32>, vector<16x8xf32>, vector<2x8xf32> -> vector<2x8xf32>
    %66 = vector.broadcast %7 : vector<1x8xf32> to vector<2x8xf32>
    %67 = arith.addf %65, %66 : vector<2x8xf32>
    %68 = vector.shape_cast %67 : vector<2x8xf32> to vector<2x1x8xf32>
    %c0_39 = arith.constant 0 : index
    %c0_40 = arith.constant 0 : index
    %c0_41 = arith.constant 0 : index
    %69 = vector.load %arg9[%c0_39, %c0_40, %c0_41] : memref<2x8x8xf32, #tpu.memory_space<vmem>>, vector<2x1x8xf32>
    tpu.vector_store %arg9[%c0_39, %c0_40, %c0_41], %68 {strides = array<i32>} : memref<2x8x8xf32, #tpu.memory_space<vmem>>, vector<2x1x8xf32>,
    %cst_42 = arith.constant 0.000000e+00 : f32
    %70 = vector.broadcast %cst_42 : f32 to vector<2x8xf32>
    %71 = arith.cmpf ogt, %67, %70 : vector<2x8xf32>
    %72 = arith.extui %71 : vector<2x8xi1> to vector<2x8xi32>
    %73 = arith.sitofp %72 : vector<2x8xi32> to vector<2x8xf32>
    %cst_43 = arith.constant dense<0.000000e+00> : vector<2x64xf32>
    %74 = tpu.matmul %73, %8, %cst_43 {dimension_numbers = #tpu.dot_dimension_numbers<[1], [0], [0], [1], [0, 0, 1, 1], [], []>} : vector<2x8xf32>, vector<8x64xf32>, vector<2x64xf32> -> vector<2x64xf32>
    %75 = vector.broadcast %1 : vector<1x64xf32> to vector<2x64xf32>
    %76 = arith.addf %74, %75 : vector<2x64xf32>
    %77 = vector.extract_strided_slice %76 {offsets = [0, 0], sizes = [2, 16], strides = [1, 1]} : vector<2x64xf32> to vector<2x16xf32>
    %78 = vector.extract_strided_slice %76 {offsets = [0, 16], sizes = [2, 16], strides = [1, 1]} : vector<2x64xf32> to vector<2x16xf32>
    %79 = vector.extract_strided_slice %76 {offsets = [0, 32], sizes = [2, 16], strides = [1, 1]} : vector<2x64xf32> to vector<2x16xf32>
    %80 = vector.extract_strided_slice %76 {offsets = [0, 48], sizes = [2, 16], strides = [1, 1]} : vector<2x64xf32> to vector<2x16xf32>
    %81 = vector.shape_cast %79 : vector<2x16xf32> to vector<2x1x16xf32>
    %c0_44 = arith.constant 0 : index
    %c8 = arith.constant 8 : index
    %c0_45 = arith.constant 0 : index
    %82 = vector.load %arg11[%c0_44, %c8, %c0_45] : memref<2x16x16xf32, #tpu.memory_space<vmem>>, vector<2x1x16xf32>
    tpu.vector_store %arg11[%c0_44, %c8, %c0_45], %81 {strides = array<i32>} : memref<2x16x16xf32, #tpu.memory_space<vmem>>, vector<2x1x16xf32>,
    %83 = vector.shape_cast %80 : vector<2x16xf32> to vector<2x1x16xf32>
    %c0_46 = arith.constant 0 : index
    %c8_47 = arith.constant 8 : index
    %c0_48 = arith.constant 0 : index
    %84 = vector.load %arg12[%c0_46, %c8_47, %c0_48] : memref<2x16x16xf32, #tpu.memory_space<vmem>>, vector<2x1x16xf32>
    tpu.vector_store %arg12[%c0_46, %c8_47, %c0_48], %83 {strides = array<i32>} : memref<2x16x16xf32, #tpu.memory_space<vmem>>, vector<2x1x16xf32>,
    %c0_49 = arith.constant 0 : index
    %c0_50 = arith.constant 0 : index
    %c0_51 = arith.constant 0 : index
    %85 = vector.load %arg11[%c0_49, %c0_50, %c0_51] : memref<2x16x16xf32, #tpu.memory_space<vmem>>, vector<2x16x16xf32>
    %c0_52 = arith.constant 0 : index
    %c0_53 = arith.constant 0 : index
    %c0_54 = arith.constant 0 : index
    %86 = vector.load %arg12[%c0_52, %c0_53, %c0_54] : memref<2x16x16xf32, #tpu.memory_space<vmem>>, vector<2x16x16xf32>
    %87 = vector.shape_cast %78 : vector<2x16xf32> to vector<2x1x16xf32>
    "tpu.trace_start"() <{level = 10 : i32, message = "bqd,bkd->bqk"}> : () -> ()
    %cst_55 = arith.constant dense<0.000000e+00> : vector<2x1x16xf32>
    %88 = tpu.matmul %87, %85, %cst_55 {dimension_numbers = #tpu.dot_dimension_numbers<[2], [2], [1], [1], [0, 0, 0, 1, 1, 1], [0], [0]>} : vector<2x1x16xf32>, vector<2x16x16xf32>, vector<2x1x16xf32> -> vector<2x1x16xf32>
    "tpu.trace_stop"() : () -> ()
    %cst_56 = arith.constant 2.500000e-01 : f32
    %89 = vector.broadcast %cst_56 : f32 to vector<2x1x16xf32>
    %90 = arith.mulf %88, %89 : vector<2x1x16xf32>
    %91 = tpu.iota {dimensions = array<i32: 2>} : vector<1x1x16xi32>
    %c8_i32_57 = arith.constant 8 : i32
    %92 = vector.broadcast %c8_i32_57 : i32 to vector<1x1x16xi32>
    %93 = arith.cmpi sgt, %91, %92 : vector<1x1x16xi32>
    %cst_58 = arith.constant -9.990000e+02 : f32
    %cst_59 = arith.constant 0.000000e+00 : f32
    %94 = vector.broadcast %cst_58 : f32 to vector<1x1x16xf32>
    %95 = vector.broadcast %cst_59 : f32 to vector<1x1x16xf32>
    %96 = arith.select %93, %94, %95 : vector<1x1x16xi1>, vector<1x1x16xf32>
    %97 = vector.broadcast %96 : vector<1x1x16xf32> to vector<2x1x16xf32>
    %98 = arith.addf %90, %97 : vector<2x1x16xf32>
    %cst_60 = arith.constant dense<0xFF800000> : vector<2x1xf32>
    %99 = vector.multi_reduction <maximumf>, %98, %cst_60 [2] : vector<2x1x16xf32> to vector<2x1xf32>
    %100 = vector.shape_cast %99 : vector<2x1xf32> to vector<2x1x1xf32>
    %101 = vector.broadcast %100 : vector<2x1x1xf32> to vector<2x1x16xf32>
    %102 = arith.subf %98, %101 : vector<2x1x16xf32>
    %103 = math.exp %102 : vector<2x1x16xf32>
    %cst_61 = arith.constant dense<0.000000e+00> : vector<2x1xf32>
    %104 = vector.multi_reduction <add>, %103, %cst_61 [2] : vector<2x1x16xf32> to vector<2x1xf32>
    %105 = vector.shape_cast %104 : vector<2x1xf32> to vector<2x1x1xf32>
    %106 = vector.broadcast %105 : vector<2x1x1xf32> to vector<2x1x16xf32>
    %107 = arith.divf %103, %106 : vector<2x1x16xf32>
    %c0_62 = arith.constant 0 : index
    %c8_63 = arith.constant 8 : index
    %c0_64 = arith.constant 0 : index
    %108 = vector.load %arg10[%c0_62, %c8_63, %c0_64] : memref<2x16x16xf32, #tpu.memory_space<vmem>>, vector<2x1x16xf32>
    tpu.vector_store %arg10[%c0_62, %c8_63, %c0_64], %107 {strides = array<i32>} : memref<2x16x16xf32, #tpu.memory_space<vmem>>, vector<2x1x16xf32>,
    "tpu.trace_start"() <{level = 10 : i32, message = "bqk,bkd->bqd"}> : () -> ()
    %cst_65 = arith.constant dense<0.000000e+00> : vector<2x1x16xf32>
    %109 = tpu.matmul %107, %86, %cst_65 {dimension_numbers = #tpu.dot_dimension_numbers<[2], [1], [1], [2], [0, 0, 0, 1, 1, 2], [0], [0]>} : vector<2x1x16xf32>, vector<2x16x16xf32>, vector<2x1x16xf32> -> vector<2x1x16xf32>
    "tpu.trace_stop"() : () -> ()
    %110 = vector.shape_cast %109 : vector<2x1x16xf32> to vector<2x16xf32>
    %111 = arith.addf %77, %110 : vector<2x16xf32>
    %cst_66 = arith.constant dense<0.000000e+00> : vector<2x64xf32>
    %112 = tpu.matmul %111, %2, %cst_66 {dimension_numbers = #tpu.dot_dimension_numbers<[1], [0], [0], [1], [0, 0, 1, 1], [], []>} : vector<2x16xf32>, vector<16x64xf32>, vector<2x64xf32> -> vector<2x64xf32>
    %113 = vector.broadcast %3 : vector<1x64xf32> to vector<2x64xf32>
    %114 = arith.addf %112, %113 : vector<2x64xf32>
    %cst_67 = arith.constant 0.000000e+00 : f32
    %115 = vector.broadcast %cst_67 : f32 to vector<2x64xf32>
    %116 = arith.maximumf %114, %115 : vector<2x64xf32>
    %cst_68 = arith.constant dense<0.000000e+00> : vector<2x16xf32>
    %117 = tpu.matmul %116, %4, %cst_68 {dimension_numbers = #tpu.dot_dimension_numbers<[1], [0], [0], [1], [0, 0, 1, 1], [], []>} : vector<2x64xf32>, vector<64x16xf32>, vector<2x16xf32> -> vector<2x16xf32>
    %118 = arith.addf %111, %117 : vector<2x16xf32>
    %119 = vector.broadcast %5 : vector<1x16xf32> to vector<2x16xf32>
    %120 = arith.addf %118, %119 : vector<2x16xf32>
    %cst_69 = arith.constant dense<0.000000e+00> : vector<2x8xf32>
    %121 = tpu.matmul %120, %6, %cst_69 {dimension_numbers = #tpu.dot_dimension_numbers<[1], [0], [0], [1], [0, 0, 1, 1], [], []>} : vector<2x16xf32>, vector<16x8xf32>, vector<2x8xf32> -> vector<2x8xf32>
    %122 = vector.broadcast %7 : vector<1x8xf32> to vector<2x8xf32>
    %123 = arith.addf %121, %122 : vector<2x8xf32>
    %124 = vector.shape_cast %123 : vector<2x8xf32> to vector<2x1x8xf32>
    %c0_70 = arith.constant 0 : index
    %c1 = arith.constant 1 : index
    %c0_71 = arith.constant 0 : index
    %125 = vector.load %arg9[%c0_70, %c1, %c0_71] : memref<2x8x8xf32, #tpu.memory_space<vmem>>, vector<2x1x8xf32>
    tpu.vector_store %arg9[%c0_70, %c1, %c0_71], %124 {strides = array<i32>} : memref<2x8x8xf32, #tpu.memory_space<vmem>>, vector<2x1x8xf32>,
    %cst_72 = arith.constant 0.000000e+00 : f32
    %126 = vector.broadcast %cst_72 : f32 to vector<2x8xf32>
    %127 = arith.cmpf ogt, %123, %126 : vector<2x8xf32>
    %128 = arith.extui %127 : vector<2x8xi1> to vector<2x8xi32>
    %129 = arith.sitofp %128 : vector<2x8xi32> to vector<2x8xf32>
    %cst_73 = arith.constant dense<0.000000e+00> : vector<2x64xf32>
    %130 = tpu.matmul %129, %8, %cst_73 {dimension_numbers = #tpu.dot_dimension_numbers<[1], [0], [0], [1], [0, 0, 1, 1], [], []>} : vector<2x8xf32>, vector<8x64xf32>, vector<2x64xf32> -> vector<2x64xf32>
    %131 = vector.broadcast %1 : vector<1x64xf32> to vector<2x64xf32>
    %132 = arith.addf %130, %131 : vector<2x64xf32>
    %133 = vector.extract_strided_slice %132 {offsets = [0, 0], sizes = [2, 16], strides = [1, 1]} : vector<2x64xf32> to vector<2x16xf32>
    %134 = vector.extract_strided_slice %132 {offsets = [0, 16], sizes = [2, 16], strides = [1, 1]} : vector<2x64xf32> to vector<2x16xf32>
    %135 = vector.extract_strided_slice %132 {offsets = [0, 32], sizes = [2, 16], strides = [1, 1]} : vector<2x64xf32> to vector<2x16xf32>
    %136 = vector.extract_strided_slice %132 {offsets = [0, 48], sizes = [2, 16], strides = [1, 1]} : vector<2x64xf32> to vector<2x16xf32>
    %137 = vector.shape_cast %135 : vector<2x16xf32> to vector<2x1x16xf32>
    %c0_74 = arith.constant 0 : index
    %c9 = arith.constant 9 : index
    %c0_75 = arith.constant 0 : index
    %138 = vector.load %arg11[%c0_74, %c9, %c0_75] : memref<2x16x16xf32, #tpu.memory_space<vmem>>, vector<2x1x16xf32>
    tpu.vector_store %arg11[%c0_74, %c9, %c0_75], %137 {strides = array<i32>} : memref<2x16x16xf32, #tpu.memory_space<vmem>>, vector<2x1x16xf32>,
    %139 = vector.shape_cast %136 : vector<2x16xf32> to vector<2x1x16xf32>
    %c0_76 = arith.constant 0 : index
    %c9_77 = arith.constant 9 : index
    %c0_78 = arith.constant 0 : index
    %140 = vector.load %arg12[%c0_76, %c9_77, %c0_78] : memref<2x16x16xf32, #tpu.memory_space<vmem>>, vector<2x1x16xf32>
    tpu.vector_store %arg12[%c0_76, %c9_77, %c0_78], %139 {strides = array<i32>} : memref<2x16x16xf32, #tpu.memory_space<vmem>>, vector<2x1x16xf32>,
    %c0_79 = arith.constant 0 : index
    %c0_80 = arith.constant 0 : index
    %c0_81 = arith.constant 0 : index
    %141 = vector.load %arg11[%c0_79, %c0_80, %c0_81] : memref<2x16x16xf32, #tpu.memory_space<vmem>>, vector<2x16x16xf32>
    %c0_82 = arith.constant 0 : index
    %c0_83 = arith.constant 0 : index
    %c0_84 = arith.constant 0 : index
    %142 = vector.load %arg12[%c0_82, %c0_83, %c0_84] : memref<2x16x16xf32, #tpu.memory_space<vmem>>, vector<2x16x16xf32>
    %143 = vector.shape_cast %134 : vector<2x16xf32> to vector<2x1x16xf32>
    "tpu.trace_start"() <{level = 10 : i32, message = "bqd,bkd->bqk"}> : () -> ()
    %cst_85 = arith.constant dense<0.000000e+00> : vector<2x1x16xf32>
    %144 = tpu.matmul %143, %141, %cst_85 {dimension_numbers = #tpu.dot_dimension_numbers<[2], [2], [1], [1], [0, 0, 0, 1, 1, 1], [0], [0]>} : vector<2x1x16xf32>, vector<2x16x16xf32>, vector<2x1x16xf32> -> vector<2x1x16xf32>
    "tpu.trace_stop"() : () -> ()
    %cst_86 = arith.constant 2.500000e-01 : f32
    %145 = vector.broadcast %cst_86 : f32 to vector<2x1x16xf32>
    %146 = arith.mulf %144, %145 : vector<2x1x16xf32>
    %147 = tpu.iota {dimensions = array<i32: 2>} : vector<1x1x16xi32>
    %c9_i32 = arith.constant 9 : i32
    %148 = vector.broadcast %c9_i32 : i32 to vector<1x1x16xi32>
    %149 = arith.cmpi sgt, %147, %148 : vector<1x1x16xi32>
    %cst_87 = arith.constant -9.990000e+02 : f32
    %cst_88 = arith.constant 0.000000e+00 : f32
    %150 = vector.broadcast %cst_87 : f32 to vector<1x1x16xf32>
    %151 = vector.broadcast %cst_88 : f32 to vector<1x1x16xf32>
    %152 = arith.select %149, %150, %151 : vector<1x1x16xi1>, vector<1x1x16xf32>
    %153 = vector.broadcast %152 : vector<1x1x16xf32> to vector<2x1x16xf32>
    %154 = arith.addf %146, %153 : vector<2x1x16xf32>
    %cst_89 = arith.constant dense<0xFF800000> : vector<2x1xf32>
    %155 = vector.multi_reduction <maximumf>, %154, %cst_89 [2] : vector<2x1x16xf32> to vector<2x1xf32>
    %156 = vector.shape_cast %155 : vector<2x1xf32> to vector<2x1x1xf32>
    %157 = vector.broadcast %156 : vector<2x1x1xf32> to vector<2x1x16xf32>
    %158 = arith.subf %154, %157 : vector<2x1x16xf32>
    %159 = math.exp %158 : vector<2x1x16xf32>
    %cst_90 = arith.constant dense<0.000000e+00> : vector<2x1xf32>
    %160 = vector.multi_reduction <add>, %159, %cst_90 [2] : vector<2x1x16xf32> to vector<2x1xf32>
    %161 = vector.shape_cast %160 : vector<2x1xf32> to vector<2x1x1xf32>
    %162 = vector.broadcast %161 : vector<2x1x1xf32> to vector<2x1x16xf32>
    %163 = arith.divf %159, %162 : vector<2x1x16xf32>
    %c0_91 = arith.constant 0 : index
    %c9_92 = arith.constant 9 : index
    %c0_93 = arith.constant 0 : index
    %164 = vector.load %arg10[%c0_91, %c9_92, %c0_93] : memref<2x16x16xf32, #tpu.memory_space<vmem>>, vector<2x1x16xf32>
    tpu.vector_store %arg10[%c0_91, %c9_92, %c0_93], %163 {strides = array<i32>} : memref<2x16x16xf32, #tpu.memory_space<vmem>>, vector<2x1x16xf32>,
    "tpu.trace_start"() <{level = 10 : i32, message = "bqk,bkd->bqd"}> : () -> ()
    %cst_94 = arith.constant dense<0.000000e+00> : vector<2x1x16xf32>
    %165 = tpu.matmul %163, %142, %cst_94 {dimension_numbers = #tpu.dot_dimension_numbers<[2], [1], [1], [2], [0, 0, 0, 1, 1, 2], [0], [0]>} : vector<2x1x16xf32>, vector<2x16x16xf32>, vector<2x1x16xf32> -> vector<2x1x16xf32>
    "tpu.trace_stop"() : () -> ()
    %166 = vector.shape_cast %165 : vector<2x1x16xf32> to vector<2x16xf32>
    %167 = arith.addf %133, %166 : vector<2x16xf32>
    %cst_95 = arith.constant dense<0.000000e+00> : vector<2x64xf32>
    %168 = tpu.matmul %167, %2, %cst_95 {dimension_numbers = #tpu.dot_dimension_numbers<[1], [0], [0], [1], [0, 0, 1, 1], [], []>} : vector<2x16xf32>, vector<16x64xf32>, vector<2x64xf32> -> vector<2x64xf32>
    %169 = vector.broadcast %3 : vector<1x64xf32> to vector<2x64xf32>
    %170 = arith.addf %168, %169 : vector<2x64xf32>
    %cst_96 = arith.constant 0.000000e+00 : f32
    %171 = vector.broadcast %cst_96 : f32 to vector<2x64xf32>
    %172 = arith.maximumf %170, %171 : vector<2x64xf32>
    %cst_97 = arith.constant dense<0.000000e+00> : vector<2x16xf32>
    %173 = tpu.matmul %172, %4, %cst_97 {dimension_numbers = #tpu.dot_dimension_numbers<[1], [0], [0], [1], [0, 0, 1, 1], [], []>} : vector<2x64xf32>, vector<64x16xf32>, vector<2x16xf32> -> vector<2x16xf32>
    %174 = arith.addf %167, %173 : vector<2x16xf32>
    %175 = vector.broadcast %5 : vector<1x16xf32> to vector<2x16xf32>
    %176 = arith.addf %174, %175 : vector<2x16xf32>
    %cst_98 = arith.constant dense<0.000000e+00> : vector<2x8xf32>
    %177 = tpu.matmul %176, %6, %cst_98 {dimension_numbers = #tpu.dot_dimension_numbers<[1], [0], [0], [1], [0, 0, 1, 1], [], []>} : vector<2x16xf32>, vector<16x8xf32>, vector<2x8xf32> -> vector<2x8xf32>
    %178 = vector.broadcast %7 : vector<1x8xf32> to vector<2x8xf32>
    %179 = arith.addf %177, %178 : vector<2x8xf32>
    %180 = vector.shape_cast %179 : vector<2x8xf32> to vector<2x1x8xf32>
    %c0_99 = arith.constant 0 : index
    %c2 = arith.constant 2 : index
    %c0_100 = arith.constant 0 : index
    %181 = vector.load %arg9[%c0_99, %c2, %c0_100] : memref<2x8x8xf32, #tpu.memory_space<vmem>>, vector<2x1x8xf32>
    tpu.vector_store %arg9[%c0_99, %c2, %c0_100], %180 {strides = array<i32>} : memref<2x8x8xf32, #tpu.memory_space<vmem>>, vector<2x1x8xf32>,
    %cst_101 = arith.constant 0.000000e+00 : f32
    %182 = vector.broadcast %cst_101 : f32 to vector<2x8xf32>
    %183 = arith.cmpf ogt, %179, %182 : vector<2x8xf32>
    %184 = arith.extui %183 : vector<2x8xi1> to vector<2x8xi32>
    %185 = arith.sitofp %184 : vector<2x8xi32> to vector<2x8xf32>
    %cst_102 = arith.constant dense<0.000000e+00> : vector<2x64xf32>
    %186 = tpu.matmul %185, %8, %cst_102 {dimension_numbers = #tpu.dot_dimension_numbers<[1], [0], [0], [1], [0, 0, 1, 1], [], []>} : vector<2x8xf32>, vector<8x64xf32>, vector<2x64xf32> -> vector<2x64xf32>
    %187 = vector.broadcast %1 : vector<1x64xf32> to vector<2x64xf32>
    %188 = arith.addf %186, %187 : vector<2x64xf32>
    %189 = vector.extract_strided_slice %188 {offsets = [0, 0], sizes = [2, 16], strides = [1, 1]} : vector<2x64xf32> to vector<2x16xf32>
    %190 = vector.extract_strided_slice %188 {offsets = [0, 16], sizes = [2, 16], strides = [1, 1]} : vector<2x64xf32> to vector<2x16xf32>
    %191 = vector.extract_strided_slice %188 {offsets = [0, 32], sizes = [2, 16], strides = [1, 1]} : vector<2x64xf32> to vector<2x16xf32>
    %192 = vector.extract_strided_slice %188 {offsets = [0, 48], sizes = [2, 16], strides = [1, 1]} : vector<2x64xf32> to vector<2x16xf32>
    %193 = vector.shape_cast %191 : vector<2x16xf32> to vector<2x1x16xf32>
    %c0_103 = arith.constant 0 : index
    %c10 = arith.constant 10 : index
    %c0_104 = arith.constant 0 : index
    %194 = vector.load %arg11[%c0_103, %c10, %c0_104] : memref<2x16x16xf32, #tpu.memory_space<vmem>>, vector<2x1x16xf32>
    tpu.vector_store %arg11[%c0_103, %c10, %c0_104], %193 {strides = array<i32>} : memref<2x16x16xf32, #tpu.memory_space<vmem>>, vector<2x1x16xf32>,
    %195 = vector.shape_cast %192 : vector<2x16xf32> to vector<2x1x16xf32>
    %c0_105 = arith.constant 0 : index
    %c10_106 = arith.constant 10 : index
    %c0_107 = arith.constant 0 : index
    %196 = vector.load %arg12[%c0_105, %c10_106, %c0_107] : memref<2x16x16xf32, #tpu.memory_space<vmem>>, vector<2x1x16xf32>
    tpu.vector_store %arg12[%c0_105, %c10_106, %c0_107], %195 {strides = array<i32>} : memref<2x16x16xf32, #tpu.memory_space<vmem>>, vector<2x1x16xf32>,
    %c0_108 = arith.constant 0 : index
    %c0_109 = arith.constant 0 : index
    %c0_110 = arith.constant 0 : index
    %197 = vector.load %arg11[%c0_108, %c0_109, %c0_110] : memref<2x16x16xf32, #tpu.memory_space<vmem>>, vector<2x16x16xf32>
    %c0_111 = arith.constant 0 : index
    %c0_112 = arith.constant 0 : index
    %c0_113 = arith.constant 0 : index
    %198 = vector.load %arg12[%c0_111, %c0_112, %c0_113] : memref<2x16x16xf32, #tpu.memory_space<vmem>>, vector<2x16x16xf32>
    %199 = vector.shape_cast %190 : vector<2x16xf32> to vector<2x1x16xf32>
    "tpu.trace_start"() <{level = 10 : i32, message = "bqd,bkd->bqk"}> : () -> ()
    %cst_114 = arith.constant dense<0.000000e+00> : vector<2x1x16xf32>
    %200 = tpu.matmul %199, %197, %cst_114 {dimension_numbers = #tpu.dot_dimension_numbers<[2], [2], [1], [1], [0, 0, 0, 1, 1, 1], [0], [0]>} : vector<2x1x16xf32>, vector<2x16x16xf32>, vector<2x1x16xf32> -> vector<2x1x16xf32>
    "tpu.trace_stop"() : () -> ()
    %cst_115 = arith.constant 2.500000e-01 : f32
    %201 = vector.broadcast %cst_115 : f32 to vector<2x1x16xf32>
    %202 = arith.mulf %200, %201 : vector<2x1x16xf32>
    %203 = tpu.iota {dimensions = array<i32: 2>} : vector<1x1x16xi32>
    %c10_i32 = arith.constant 10 : i32
    %204 = vector.broadcast %c10_i32 : i32 to vector<1x1x16xi32>
    %205 = arith.cmpi sgt, %203, %204 : vector<1x1x16xi32>
    %cst_116 = arith.constant -9.990000e+02 : f32
    %cst_117 = arith.constant 0.000000e+00 : f32
    %206 = vector.broadcast %cst_116 : f32 to vector<1x1x16xf32>
    %207 = vector.broadcast %cst_117 : f32 to vector<1x1x16xf32>
    %208 = arith.select %205, %206, %207 : vector<1x1x16xi1>, vector<1x1x16xf32>
    %209 = vector.broadcast %208 : vector<1x1x16xf32> to vector<2x1x16xf32>
    %210 = arith.addf %202, %209 : vector<2x1x16xf32>
    %cst_118 = arith.constant dense<0xFF800000> : vector<2x1xf32>
    %211 = vector.multi_reduction <maximumf>, %210, %cst_118 [2] : vector<2x1x16xf32> to vector<2x1xf32>
    %212 = vector.shape_cast %211 : vector<2x1xf32> to vector<2x1x1xf32>
    %213 = vector.broadcast %212 : vector<2x1x1xf32> to vector<2x1x16xf32>
    %214 = arith.subf %210, %213 : vector<2x1x16xf32>
    %215 = math.exp %214 : vector<2x1x16xf32>
    %cst_119 = arith.constant dense<0.000000e+00> : vector<2x1xf32>
    %216 = vector.multi_reduction <add>, %215, %cst_119 [2] : vector<2x1x16xf32> to vector<2x1xf32>
    %217 = vector.shape_cast %216 : vector<2x1xf32> to vector<2x1x1xf32>
    %218 = vector.broadcast %217 : vector<2x1x1xf32> to vector<2x1x16xf32>
    %219 = arith.divf %215, %218 : vector<2x1x16xf32>
    %c0_120 = arith.constant 0 : index
    %c10_121 = arith.constant 10 : index
    %c0_122 = arith.constant 0 : index
    %220 = vector.load %arg10[%c0_120, %c10_121, %c0_122] : memref<2x16x16xf32, #tpu.memory_space<vmem>>, vector<2x1x16xf32>
    tpu.vector_store %arg10[%c0_120, %c10_121, %c0_122], %219 {strides = array<i32>} : memref<2x16x16xf32, #tpu.memory_space<vmem>>, vector<2x1x16xf32>,
    "tpu.trace_start"() <{level = 10 : i32, message = "bqk,bkd->bqd"}> : () -> ()
    %cst_123 = arith.constant dense<0.000000e+00> : vector<2x1x16xf32>
    %221 = tpu.matmul %219, %198, %cst_123 {dimension_numbers = #tpu.dot_dimension_numbers<[2], [1], [1], [2], [0, 0, 0, 1, 1, 2], [0], [0]>} : vector<2x1x16xf32>, vector<2x16x16xf32>, vector<2x1x16xf32> -> vector<2x1x16xf32>
    "tpu.trace_stop"() : () -> ()
    %222 = vector.shape_cast %221 : vector<2x1x16xf32> to vector<2x16xf32>
    %223 = arith.addf %189, %222 : vector<2x16xf32>
    %cst_124 = arith.constant dense<0.000000e+00> : vector<2x64xf32>
    %224 = tpu.matmul %223, %2, %cst_124 {dimension_numbers = #tpu.dot_dimension_numbers<[1], [0], [0], [1], [0, 0, 1, 1], [], []>} : vector<2x16xf32>, vector<16x64xf32>, vector<2x64xf32> -> vector<2x64xf32>
    %225 = vector.broadcast %3 : vector<1x64xf32> to vector<2x64xf32>
    %226 = arith.addf %224, %225 : vector<2x64xf32>
    %cst_125 = arith.constant 0.000000e+00 : f32
    %227 = vector.broadcast %cst_125 : f32 to vector<2x64xf32>
    %228 = arith.maximumf %226, %227 : vector<2x64xf32>
    %cst_126 = arith.constant dense<0.000000e+00> : vector<2x16xf32>
    %229 = tpu.matmul %228, %4, %cst_126 {dimension_numbers = #tpu.dot_dimension_numbers<[1], [0], [0], [1], [0, 0, 1, 1], [], []>} : vector<2x64xf32>, vector<64x16xf32>, vector<2x16xf32> -> vector<2x16xf32>
    %230 = arith.addf %223, %229 : vector<2x16xf32>
    %231 = vector.broadcast %5 : vector<1x16xf32> to vector<2x16xf32>
    %232 = arith.addf %230, %231 : vector<2x16xf32>
    %cst_127 = arith.constant dense<0.000000e+00> : vector<2x8xf32>
    %233 = tpu.matmul %232, %6, %cst_127 {dimension_numbers = #tpu.dot_dimension_numbers<[1], [0], [0], [1], [0, 0, 1, 1], [], []>} : vector<2x16xf32>, vector<16x8xf32>, vector<2x8xf32> -> vector<2x8xf32>
    %234 = vector.broadcast %7 : vector<1x8xf32> to vector<2x8xf32>
    %235 = arith.addf %233, %234 : vector<2x8xf32>
    %236 = vector.shape_cast %235 : vector<2x8xf32> to vector<2x1x8xf32>
    %c0_128 = arith.constant 0 : index
    %c3 = arith.constant 3 : index
    %c0_129 = arith.constant 0 : index
    %237 = vector.load %arg9[%c0_128, %c3, %c0_129] : memref<2x8x8xf32, #tpu.memory_space<vmem>>, vector<2x1x8xf32>
    tpu.vector_store %arg9[%c0_128, %c3, %c0_129], %236 {strides = array<i32>} : memref<2x8x8xf32, #tpu.memory_space<vmem>>, vector<2x1x8xf32>,
    %cst_130 = arith.constant 0.000000e+00 : f32
    %238 = vector.broadcast %cst_130 : f32 to vector<2x8xf32>
    %239 = arith.cmpf ogt, %235, %238 : vector<2x8xf32>
    %240 = arith.extui %239 : vector<2x8xi1> to vector<2x8xi32>
    %241 = arith.sitofp %240 : vector<2x8xi32> to vector<2x8xf32>
    %cst_131 = arith.constant dense<0.000000e+00> : vector<2x64xf32>
    %242 = tpu.matmul %241, %8, %cst_131 {dimension_numbers = #tpu.dot_dimension_numbers<[1], [0], [0], [1], [0, 0, 1, 1], [], []>} : vector<2x8xf32>, vector<8x64xf32>, vector<2x64xf32> -> vector<2x64xf32>
    %243 = vector.broadcast %1 : vector<1x64xf32> to vector<2x64xf32>
    %244 = arith.addf %242, %243 : vector<2x64xf32>
    %245 = vector.extract_strided_slice %244 {offsets = [0, 0], sizes = [2, 16], strides = [1, 1]} : vector<2x64xf32> to vector<2x16xf32>
    %246 = vector.extract_strided_slice %244 {offsets = [0, 16], sizes = [2, 16], strides = [1, 1]} : vector<2x64xf32> to vector<2x16xf32>
    %247 = vector.extract_strided_slice %244 {offsets = [0, 32], sizes = [2, 16], strides = [1, 1]} : vector<2x64xf32> to vector<2x16xf32>
    %248 = vector.extract_strided_slice %244 {offsets = [0, 48], sizes = [2, 16], strides = [1, 1]} : vector<2x64xf32> to vector<2x16xf32>
    %249 = vector.shape_cast %247 : vector<2x16xf32> to vector<2x1x16xf32>
    %c0_132 = arith.constant 0 : index
    %c11 = arith.constant 11 : index
    %c0_133 = arith.constant 0 : index
    %250 = vector.load %arg11[%c0_132, %c11, %c0_133] : memref<2x16x16xf32, #tpu.memory_space<vmem>>, vector<2x1x16xf32>
    tpu.vector_store %arg11[%c0_132, %c11, %c0_133], %249 {strides = array<i32>} : memref<2x16x16xf32, #tpu.memory_space<vmem>>, vector<2x1x16xf32>,
    %251 = vector.shape_cast %248 : vector<2x16xf32> to vector<2x1x16xf32>
    %c0_134 = arith.constant 0 : index
    %c11_135 = arith.constant 11 : index
    %c0_136 = arith.constant 0 : index
    %252 = vector.load %arg12[%c0_134, %c11_135, %c0_136] : memref<2x16x16xf32, #tpu.memory_space<vmem>>, vector<2x1x16xf32>
    tpu.vector_store %arg12[%c0_134, %c11_135, %c0_136], %251 {strides = array<i32>} : memref<2x16x16xf32, #tpu.memory_space<vmem>>, vector<2x1x16xf32>,
    %c0_137 = arith.constant 0 : index
    %c0_138 = arith.constant 0 : index
    %c0_139 = arith.constant 0 : index
    %253 = vector.load %arg11[%c0_137, %c0_138, %c0_139] : memref<2x16x16xf32, #tpu.memory_space<vmem>>, vector<2x16x16xf32>
    %c0_140 = arith.constant 0 : index
    %c0_141 = arith.constant 0 : index
    %c0_142 = arith.constant 0 : index
    %254 = vector.load %arg12[%c0_140, %c0_141, %c0_142] : memref<2x16x16xf32, #tpu.memory_space<vmem>>, vector<2x16x16xf32>
    %255 = vector.shape_cast %246 : vector<2x16xf32> to vector<2x1x16xf32>
    "tpu.trace_start"() <{level = 10 : i32, message = "bqd,bkd->bqk"}> : () -> ()
    %cst_143 = arith.constant dense<0.000000e+00> : vector<2x1x16xf32>
    %256 = tpu.matmul %255, %253, %cst_143 {dimension_numbers = #tpu.dot_dimension_numbers<[2], [2], [1], [1], [0, 0, 0, 1, 1, 1], [0], [0]>} : vector<2x1x16xf32>, vector<2x16x16xf32>, vector<2x1x16xf32> -> vector<2x1x16xf32>
    "tpu.trace_stop"() : () -> ()
    %cst_144 = arith.constant 2.500000e-01 : f32
    %257 = vector.broadcast %cst_144 : f32 to vector<2x1x16xf32>
    %258 = arith.mulf %256, %257 : vector<2x1x16xf32>
    %259 = tpu.iota {dimensions = array<i32: 2>} : vector<1x1x16xi32>
    %c11_i32 = arith.constant 11 : i32
    %260 = vector.broadcast %c11_i32 : i32 to vector<1x1x16xi32>
    %261 = arith.cmpi sgt, %259, %260 : vector<1x1x16xi32>
    %cst_145 = arith.constant -9.990000e+02 : f32
    %cst_146 = arith.constant 0.000000e+00 : f32
    %262 = vector.broadcast %cst_145 : f32 to vector<1x1x16xf32>
    %263 = vector.broadcast %cst_146 : f32 to vector<1x1x16xf32>
    %264 = arith.select %261, %262, %263 : vector<1x1x16xi1>, vector<1x1x16xf32>
    %265 = vector.broadcast %264 : vector<1x1x16xf32> to vector<2x1x16xf32>
    %266 = arith.addf %258, %265 : vector<2x1x16xf32>
    %cst_147 = arith.constant dense<0xFF800000> : vector<2x1xf32>
    %267 = vector.multi_reduction <maximumf>, %266, %cst_147 [2] : vector<2x1x16xf32> to vector<2x1xf32>
    %268 = vector.shape_cast %267 : vector<2x1xf32> to vector<2x1x1xf32>
    %269 = vector.broadcast %268 : vector<2x1x1xf32> to vector<2x1x16xf32>
    %270 = arith.subf %266, %269 : vector<2x1x16xf32>
    %271 = math.exp %270 : vector<2x1x16xf32>
    %cst_148 = arith.constant dense<0.000000e+00> : vector<2x1xf32>
    %272 = vector.multi_reduction <add>, %271, %cst_148 [2] : vector<2x1x16xf32> to vector<2x1xf32>
    %273 = vector.shape_cast %272 : vector<2x1xf32> to vector<2x1x1xf32>
    %274 = vector.broadcast %273 : vector<2x1x1xf32> to vector<2x1x16xf32>
    %275 = arith.divf %271, %274 : vector<2x1x16xf32>
    %c0_149 = arith.constant 0 : index
    %c11_150 = arith.constant 11 : index
    %c0_151 = arith.constant 0 : index
    %276 = vector.load %arg10[%c0_149, %c11_150, %c0_151] : memref<2x16x16xf32, #tpu.memory_space<vmem>>, vector<2x1x16xf32>
    tpu.vector_store %arg10[%c0_149, %c11_150, %c0_151], %275 {strides = array<i32>} : memref<2x16x16xf32, #tpu.memory_space<vmem>>, vector<2x1x16xf32>,
    "tpu.trace_start"() <{level = 10 : i32, message = "bqk,bkd->bqd"}> : () -> ()
    %cst_152 = arith.constant dense<0.000000e+00> : vector<2x1x16xf32>
    %277 = tpu.matmul %275, %254, %cst_152 {dimension_numbers = #tpu.dot_dimension_numbers<[2], [1], [1], [2], [0, 0, 0, 1, 1, 2], [0], [0]>} : vector<2x1x16xf32>, vector<2x16x16xf32>, vector<2x1x16xf32> -> vector<2x1x16xf32>
    "tpu.trace_stop"() : () -> ()
    %278 = vector.shape_cast %277 : vector<2x1x16xf32> to vector<2x16xf32>
    %279 = arith.addf %245, %278 : vector<2x16xf32>
    %cst_153 = arith.constant dense<0.000000e+00> : vector<2x64xf32>
    %280 = tpu.matmul %279, %2, %cst_153 {dimension_numbers = #tpu.dot_dimension_numbers<[1], [0], [0], [1], [0, 0, 1, 1], [], []>} : vector<2x16xf32>, vector<16x64xf32>, vector<2x64xf32> -> vector<2x64xf32>
    %281 = vector.broadcast %3 : vector<1x64xf32> to vector<2x64xf32>
    %282 = arith.addf %280, %281 : vector<2x64xf32>
    %cst_154 = arith.constant 0.000000e+00 : f32
    %283 = vector.broadcast %cst_154 : f32 to vector<2x64xf32>
    %284 = arith.maximumf %282, %283 : vector<2x64xf32>
    %cst_155 = arith.constant dense<0.000000e+00> : vector<2x16xf32>
    %285 = tpu.matmul %284, %4, %cst_155 {dimension_numbers = #tpu.dot_dimension_numbers<[1], [0], [0], [1], [0, 0, 1, 1], [], []>} : vector<2x64xf32>, vector<64x16xf32>, vector<2x16xf32> -> vector<2x16xf32>
    %286 = arith.addf %279, %285 : vector<2x16xf32>
    %287 = vector.broadcast %5 : vector<1x16xf32> to vector<2x16xf32>
    %288 = arith.addf %286, %287 : vector<2x16xf32>
    %cst_156 = arith.constant dense<0.000000e+00> : vector<2x8xf32>
    %289 = tpu.matmul %288, %6, %cst_156 {dimension_numbers = #tpu.dot_dimension_numbers<[1], [0], [0], [1], [0, 0, 1, 1], [], []>} : vector<2x16xf32>, vector<16x8xf32>, vector<2x8xf32> -> vector<2x8xf32>
    %290 = vector.broadcast %7 : vector<1x8xf32> to vector<2x8xf32>
    %291 = arith.addf %289, %290 : vector<2x8xf32>
    %292 = vector.shape_cast %291 : vector<2x8xf32> to vector<2x1x8xf32>
    %c0_157 = arith.constant 0 : index
    %c4 = arith.constant 4 : index
    %c0_158 = arith.constant 0 : index
    %293 = vector.load %arg9[%c0_157, %c4, %c0_158] : memref<2x8x8xf32, #tpu.memory_space<vmem>>, vector<2x1x8xf32>
    tpu.vector_store %arg9[%c0_157, %c4, %c0_158], %292 {strides = array<i32>} : memref<2x8x8xf32, #tpu.memory_space<vmem>>, vector<2x1x8xf32>,
    %cst_159 = arith.constant 0.000000e+00 : f32
    %294 = vector.broadcast %cst_159 : f32 to vector<2x8xf32>
    %295 = arith.cmpf ogt, %291, %294 : vector<2x8xf32>
    %296 = arith.extui %295 : vector<2x8xi1> to vector<2x8xi32>
    %297 = arith.sitofp %296 : vector<2x8xi32> to vector<2x8xf32>
    %cst_160 = arith.constant dense<0.000000e+00> : vector<2x64xf32>
    %298 = tpu.matmul %297, %8, %cst_160 {dimension_numbers = #tpu.dot_dimension_numbers<[1], [0], [0], [1], [0, 0, 1, 1], [], []>} : vector<2x8xf32>, vector<8x64xf32>, vector<2x64xf32> -> vector<2x64xf32>
    %299 = vector.broadcast %1 : vector<1x64xf32> to vector<2x64xf32>
    %300 = arith.addf %298, %299 : vector<2x64xf32>
    %301 = vector.extract_strided_slice %300 {offsets = [0, 0], sizes = [2, 16], strides = [1, 1]} : vector<2x64xf32> to vector<2x16xf32>
    %302 = vector.extract_strided_slice %300 {offsets = [0, 16], sizes = [2, 16], strides = [1, 1]} : vector<2x64xf32> to vector<2x16xf32>
    %303 = vector.extract_strided_slice %300 {offsets = [0, 32], sizes = [2, 16], strides = [1, 1]} : vector<2x64xf32> to vector<2x16xf32>
    %304 = vector.extract_strided_slice %300 {offsets = [0, 48], sizes = [2, 16], strides = [1, 1]} : vector<2x64xf32> to vector<2x16xf32>
    %305 = vector.shape_cast %303 : vector<2x16xf32> to vector<2x1x16xf32>
    %c0_161 = arith.constant 0 : index
    %c12 = arith.constant 12 : index
    %c0_162 = arith.constant 0 : index
    %306 = vector.load %arg11[%c0_161, %c12, %c0_162] : memref<2x16x16xf32, #tpu.memory_space<vmem>>, vector<2x1x16xf32>
    tpu.vector_store %arg11[%c0_161, %c12, %c0_162], %305 {strides = array<i32>} : memref<2x16x16xf32, #tpu.memory_space<vmem>>, vector<2x1x16xf32>,
    %307 = vector.shape_cast %304 : vector<2x16xf32> to vector<2x1x16xf32>
    %c0_163 = arith.constant 0 : index
    %c12_164 = arith.constant 12 : index
    %c0_165 = arith.constant 0 : index
    %308 = vector.load %arg12[%c0_163, %c12_164, %c0_165] : memref<2x16x16xf32, #tpu.memory_space<vmem>>, vector<2x1x16xf32>
    tpu.vector_store %arg12[%c0_163, %c12_164, %c0_165], %307 {strides = array<i32>} : memref<2x16x16xf32, #tpu.memory_space<vmem>>, vector<2x1x16xf32>,
    %c0_166 = arith.constant 0 : index
    %c0_167 = arith.constant 0 : index
    %c0_168 = arith.constant 0 : index
    %309 = vector.load %arg11[%c0_166, %c0_167, %c0_168] : memref<2x16x16xf32, #tpu.memory_space<vmem>>, vector<2x16x16xf32>
    %c0_169 = arith.constant 0 : index
    %c0_170 = arith.constant 0 : index
    %c0_171 = arith.constant 0 : index
    %310 = vector.load %arg12[%c0_169, %c0_170, %c0_171] : memref<2x16x16xf32, #tpu.memory_space<vmem>>, vector<2x16x16xf32>
    %311 = vector.shape_cast %302 : vector<2x16xf32> to vector<2x1x16xf32>
    "tpu.trace_start"() <{level = 10 : i32, message = "bqd,bkd->bqk"}> : () -> ()
    %cst_172 = arith.constant dense<0.000000e+00> : vector<2x1x16xf32>
    %312 = tpu.matmul %311, %309, %cst_172 {dimension_numbers = #tpu.dot_dimension_numbers<[2], [2], [1], [1], [0, 0, 0, 1, 1, 1], [0], [0]>} : vector<2x1x16xf32>, vector<2x16x16xf32>, vector<2x1x16xf32> -> vector<2x1x16xf32>
    "tpu.trace_stop"() : () -> ()
    %cst_173 = arith.constant 2.500000e-01 : f32
    %313 = vector.broadcast %cst_173 : f32 to vector<2x1x16xf32>
    %314 = arith.mulf %312, %313 : vector<2x1x16xf32>
    %315 = tpu.iota {dimensions = array<i32: 2>} : vector<1x1x16xi32>
    %c12_i32 = arith.constant 12 : i32
    %316 = vector.broadcast %c12_i32 : i32 to vector<1x1x16xi32>
    %317 = arith.cmpi sgt, %315, %316 : vector<1x1x16xi32>
    %cst_174 = arith.constant -9.990000e+02 : f32
    %cst_175 = arith.constant 0.000000e+00 : f32
    %318 = vector.broadcast %cst_174 : f32 to vector<1x1x16xf32>
    %319 = vector.broadcast %cst_175 : f32 to vector<1x1x16xf32>
    %320 = arith.select %317, %318, %319 : vector<1x1x16xi1>, vector<1x1x16xf32>
    %321 = vector.broadcast %320 : vector<1x1x16xf32> to vector<2x1x16xf32>
    %322 = arith.addf %314, %321 : vector<2x1x16xf32>
    %cst_176 = arith.constant dense<0xFF800000> : vector<2x1xf32>
    %323 = vector.multi_reduction <maximumf>, %322, %cst_176 [2] : vector<2x1x16xf32> to vector<2x1xf32>
    %324 = vector.shape_cast %323 : vector<2x1xf32> to vector<2x1x1xf32>
    %325 = vector.broadcast %324 : vector<2x1x1xf32> to vector<2x1x16xf32>
    %326 = arith.subf %322, %325 : vector<2x1x16xf32>
    %327 = math.exp %326 : vector<2x1x16xf32>
    %cst_177 = arith.constant dense<0.000000e+00> : vector<2x1xf32>
    %328 = vector.multi_reduction <add>, %327, %cst_177 [2] : vector<2x1x16xf32> to vector<2x1xf32>
    %329 = vector.shape_cast %328 : vector<2x1xf32> to vector<2x1x1xf32>
    %330 = vector.broadcast %329 : vector<2x1x1xf32> to vector<2x1x16xf32>
    %331 = arith.divf %327, %330 : vector<2x1x16xf32>
    %c0_178 = arith.constant 0 : index
    %c12_179 = arith.constant 12 : index
    %c0_180 = arith.constant 0 : index
    %332 = vector.load %arg10[%c0_178, %c12_179, %c0_180] : memref<2x16x16xf32, #tpu.memory_space<vmem>>, vector<2x1x16xf32>
    tpu.vector_store %arg10[%c0_178, %c12_179, %c0_180], %331 {strides = array<i32>} : memref<2x16x16xf32, #tpu.memory_space<vmem>>, vector<2x1x16xf32>,
    "tpu.trace_start"() <{level = 10 : i32, message = "bqk,bkd->bqd"}> : () -> ()
    %cst_181 = arith.constant dense<0.000000e+00> : vector<2x1x16xf32>
    %333 = tpu.matmul %331, %310, %cst_181 {dimension_numbers = #tpu.dot_dimension_numbers<[2], [1], [1], [2], [0, 0, 0, 1, 1, 2], [0], [0]>} : vector<2x1x16xf32>, vector<2x16x16xf32>, vector<2x1x16xf32> -> vector<2x1x16xf32>
    "tpu.trace_stop"() : () -> ()
    %334 = vector.shape_cast %333 : vector<2x1x16xf32> to vector<2x16xf32>
    %335 = arith.addf %301, %334 : vector<2x16xf32>
    %cst_182 = arith.constant dense<0.000000e+00> : vector<2x64xf32>
    %336 = tpu.matmul %335, %2, %cst_182 {dimension_numbers = #tpu.dot_dimension_numbers<[1], [0], [0], [1], [0, 0, 1, 1], [], []>} : vector<2x16xf32>, vector<16x64xf32>, vector<2x64xf32> -> vector<2x64xf32>
    %337 = vector.broadcast %3 : vector<1x64xf32> to vector<2x64xf32>
    %338 = arith.addf %336, %337 : vector<2x64xf32>
    %cst_183 = arith.constant 0.000000e+00 : f32
    %339 = vector.broadcast %cst_183 : f32 to vector<2x64xf32>
    %340 = arith.maximumf %338, %339 : vector<2x64xf32>
    %cst_184 = arith.constant dense<0.000000e+00> : vector<2x16xf32>
    %341 = tpu.matmul %340, %4, %cst_184 {dimension_numbers = #tpu.dot_dimension_numbers<[1], [0], [0], [1], [0, 0, 1, 1], [], []>} : vector<2x64xf32>, vector<64x16xf32>, vector<2x16xf32> -> vector<2x16xf32>
    %342 = arith.addf %335, %341 : vector<2x16xf32>
    %343 = vector.broadcast %5 : vector<1x16xf32> to vector<2x16xf32>
    %344 = arith.addf %342, %343 : vector<2x16xf32>
    %cst_185 = arith.constant dense<0.000000e+00> : vector<2x8xf32>
    %345 = tpu.matmul %344, %6, %cst_185 {dimension_numbers = #tpu.dot_dimension_numbers<[1], [0], [0], [1], [0, 0, 1, 1], [], []>} : vector<2x16xf32>, vector<16x8xf32>, vector<2x8xf32> -> vector<2x8xf32>
    %346 = vector.broadcast %7 : vector<1x8xf32> to vector<2x8xf32>
    %347 = arith.addf %345, %346 : vector<2x8xf32>
    %348 = vector.shape_cast %347 : vector<2x8xf32> to vector<2x1x8xf32>
    %c0_186 = arith.constant 0 : index
    %c5 = arith.constant 5 : index
    %c0_187 = arith.constant 0 : index
    %349 = vector.load %arg9[%c0_186, %c5, %c0_187] : memref<2x8x8xf32, #tpu.memory_space<vmem>>, vector<2x1x8xf32>
    tpu.vector_store %arg9[%c0_186, %c5, %c0_187], %348 {strides = array<i32>} : memref<2x8x8xf32, #tpu.memory_space<vmem>>, vector<2x1x8xf32>,
    %cst_188 = arith.constant 0.000000e+00 : f32
    %350 = vector.broadcast %cst_188 : f32 to vector<2x8xf32>
    %351 = arith.cmpf ogt, %347, %350 : vector<2x8xf32>
    %352 = arith.extui %351 : vector<2x8xi1> to vector<2x8xi32>
    %353 = arith.sitofp %352 : vector<2x8xi32> to vector<2x8xf32>
    %cst_189 = arith.constant dense<0.000000e+00> : vector<2x64xf32>
    %354 = tpu.matmul %353, %8, %cst_189 {dimension_numbers = #tpu.dot_dimension_numbers<[1], [0], [0], [1], [0, 0, 1, 1], [], []>} : vector<2x8xf32>, vector<8x64xf32>, vector<2x64xf32> -> vector<2x64xf32>
    %355 = vector.broadcast %1 : vector<1x64xf32> to vector<2x64xf32>
    %356 = arith.addf %354, %355 : vector<2x64xf32>
    %357 = vector.extract_strided_slice %356 {offsets = [0, 0], sizes = [2, 16], strides = [1, 1]} : vector<2x64xf32> to vector<2x16xf32>
    %358 = vector.extract_strided_slice %356 {offsets = [0, 16], sizes = [2, 16], strides = [1, 1]} : vector<2x64xf32> to vector<2x16xf32>
    %359 = vector.extract_strided_slice %356 {offsets = [0, 32], sizes = [2, 16], strides = [1, 1]} : vector<2x64xf32> to vector<2x16xf32>
    %360 = vector.extract_strided_slice %356 {offsets = [0, 48], sizes = [2, 16], strides = [1, 1]} : vector<2x64xf32> to vector<2x16xf32>
    %361 = vector.shape_cast %359 : vector<2x16xf32> to vector<2x1x16xf32>
    %c0_190 = arith.constant 0 : index
    %c13 = arith.constant 13 : index
    %c0_191 = arith.constant 0 : index
    %362 = vector.load %arg11[%c0_190, %c13, %c0_191] : memref<2x16x16xf32, #tpu.memory_space<vmem>>, vector<2x1x16xf32>
    tpu.vector_store %arg11[%c0_190, %c13, %c0_191], %361 {strides = array<i32>} : memref<2x16x16xf32, #tpu.memory_space<vmem>>, vector<2x1x16xf32>,
    %363 = vector.shape_cast %360 : vector<2x16xf32> to vector<2x1x16xf32>
    %c0_192 = arith.constant 0 : index
    %c13_193 = arith.constant 13 : index
    %c0_194 = arith.constant 0 : index
    %364 = vector.load %arg12[%c0_192, %c13_193, %c0_194] : memref<2x16x16xf32, #tpu.memory_space<vmem>>, vector<2x1x16xf32>
    tpu.vector_store %arg12[%c0_192, %c13_193, %c0_194], %363 {strides = array<i32>} : memref<2x16x16xf32, #tpu.memory_space<vmem>>, vector<2x1x16xf32>,
    %c0_195 = arith.constant 0 : index
    %c0_196 = arith.constant 0 : index
    %c0_197 = arith.constant 0 : index
    %365 = vector.load %arg11[%c0_195, %c0_196, %c0_197] : memref<2x16x16xf32, #tpu.memory_space<vmem>>, vector<2x16x16xf32>
    %c0_198 = arith.constant 0 : index
    %c0_199 = arith.constant 0 : index
    %c0_200 = arith.constant 0 : index
    %366 = vector.load %arg12[%c0_198, %c0_199, %c0_200] : memref<2x16x16xf32, #tpu.memory_space<vmem>>, vector<2x16x16xf32>
    %367 = vector.shape_cast %358 : vector<2x16xf32> to vector<2x1x16xf32>
    "tpu.trace_start"() <{level = 10 : i32, message = "bqd,bkd->bqk"}> : () -> ()
    %cst_201 = arith.constant dense<0.000000e+00> : vector<2x1x16xf32>
    %368 = tpu.matmul %367, %365, %cst_201 {dimension_numbers = #tpu.dot_dimension_numbers<[2], [2], [1], [1], [0, 0, 0, 1, 1, 1], [0], [0]>} : vector<2x1x16xf32>, vector<2x16x16xf32>, vector<2x1x16xf32> -> vector<2x1x16xf32>
    "tpu.trace_stop"() : () -> ()
    %cst_202 = arith.constant 2.500000e-01 : f32
    %369 = vector.broadcast %cst_202 : f32 to vector<2x1x16xf32>
    %370 = arith.mulf %368, %369 : vector<2x1x16xf32>
    %371 = tpu.iota {dimensions = array<i32: 2>} : vector<1x1x16xi32>
    %c13_i32 = arith.constant 13 : i32
    %372 = vector.broadcast %c13_i32 : i32 to vector<1x1x16xi32>
    %373 = arith.cmpi sgt, %371, %372 : vector<1x1x16xi32>
    %cst_203 = arith.constant -9.990000e+02 : f32
    %cst_204 = arith.constant 0.000000e+00 : f32
    %374 = vector.broadcast %cst_203 : f32 to vector<1x1x16xf32>
    %375 = vector.broadcast %cst_204 : f32 to vector<1x1x16xf32>
    %376 = arith.select %373, %374, %375 : vector<1x1x16xi1>, vector<1x1x16xf32>
    %377 = vector.broadcast %376 : vector<1x1x16xf32> to vector<2x1x16xf32>
    %378 = arith.addf %370, %377 : vector<2x1x16xf32>
    %cst_205 = arith.constant dense<0xFF800000> : vector<2x1xf32>
    %379 = vector.multi_reduction <maximumf>, %378, %cst_205 [2] : vector<2x1x16xf32> to vector<2x1xf32>
    %380 = vector.shape_cast %379 : vector<2x1xf32> to vector<2x1x1xf32>
    %381 = vector.broadcast %380 : vector<2x1x1xf32> to vector<2x1x16xf32>
    %382 = arith.subf %378, %381 : vector<2x1x16xf32>
    %383 = math.exp %382 : vector<2x1x16xf32>
    %cst_206 = arith.constant dense<0.000000e+00> : vector<2x1xf32>
    %384 = vector.multi_reduction <add>, %383, %cst_206 [2] : vector<2x1x16xf32> to vector<2x1xf32>
    %385 = vector.shape_cast %384 : vector<2x1xf32> to vector<2x1x1xf32>
    %386 = vector.broadcast %385 : vector<2x1x1xf32> to vector<2x1x16xf32>
    %387 = arith.divf %383, %386 : vector<2x1x16xf32>
    %c0_207 = arith.constant 0 : index
    %c13_208 = arith.constant 13 : index
    %c0_209 = arith.constant 0 : index
    %388 = vector.load %arg10[%c0_207, %c13_208, %c0_209] : memref<2x16x16xf32, #tpu.memory_space<vmem>>, vector<2x1x16xf32>
    tpu.vector_store %arg10[%c0_207, %c13_208, %c0_209], %387 {strides = array<i32>} : memref<2x16x16xf32, #tpu.memory_space<vmem>>, vector<2x1x16xf32>,
    "tpu.trace_start"() <{level = 10 : i32, message = "bqk,bkd->bqd"}> : () -> ()
    %cst_210 = arith.constant dense<0.000000e+00> : vector<2x1x16xf32>
    %389 = tpu.matmul %387, %366, %cst_210 {dimension_numbers = #tpu.dot_dimension_numbers<[2], [1], [1], [2], [0, 0, 0, 1, 1, 2], [0], [0]>} : vector<2x1x16xf32>, vector<2x16x16xf32>, vector<2x1x16xf32> -> vector<2x1x16xf32>
    "tpu.trace_stop"() : () -> ()
    %390 = vector.shape_cast %389 : vector<2x1x16xf32> to vector<2x16xf32>
    %391 = arith.addf %357, %390 : vector<2x16xf32>
    %cst_211 = arith.constant dense<0.000000e+00> : vector<2x64xf32>
    %392 = tpu.matmul %391, %2, %cst_211 {dimension_numbers = #tpu.dot_dimension_numbers<[1], [0], [0], [1], [0, 0, 1, 1], [], []>} : vector<2x16xf32>, vector<16x64xf32>, vector<2x64xf32> -> vector<2x64xf32>
    %393 = vector.broadcast %3 : vector<1x64xf32> to vector<2x64xf32>
    %394 = arith.addf %392, %393 : vector<2x64xf32>
    %cst_212 = arith.constant 0.000000e+00 : f32
    %395 = vector.broadcast %cst_212 : f32 to vector<2x64xf32>
    %396 = arith.maximumf %394, %395 : vector<2x64xf32>
    %cst_213 = arith.constant dense<0.000000e+00> : vector<2x16xf32>
    %397 = tpu.matmul %396, %4, %cst_213 {dimension_numbers = #tpu.dot_dimension_numbers<[1], [0], [0], [1], [0, 0, 1, 1], [], []>} : vector<2x64xf32>, vector<64x16xf32>, vector<2x16xf32> -> vector<2x16xf32>
    %398 = arith.addf %391, %397 : vector<2x16xf32>
    %399 = vector.broadcast %5 : vector<1x16xf32> to vector<2x16xf32>
    %400 = arith.addf %398, %399 : vector<2x16xf32>
    %cst_214 = arith.constant dense<0.000000e+00> : vector<2x8xf32>
    %401 = tpu.matmul %400, %6, %cst_214 {dimension_numbers = #tpu.dot_dimension_numbers<[1], [0], [0], [1], [0, 0, 1, 1], [], []>} : vector<2x16xf32>, vector<16x8xf32>, vector<2x8xf32> -> vector<2x8xf32>
    %402 = vector.broadcast %7 : vector<1x8xf32> to vector<2x8xf32>
    %403 = arith.addf %401, %402 : vector<2x8xf32>
    %404 = vector.shape_cast %403 : vector<2x8xf32> to vector<2x1x8xf32>
    %c0_215 = arith.constant 0 : index
    %c6 = arith.constant 6 : index
    %c0_216 = arith.constant 0 : index
    %405 = vector.load %arg9[%c0_215, %c6, %c0_216] : memref<2x8x8xf32, #tpu.memory_space<vmem>>, vector<2x1x8xf32>
    tpu.vector_store %arg9[%c0_215, %c6, %c0_216], %404 {strides = array<i32>} : memref<2x8x8xf32, #tpu.memory_space<vmem>>, vector<2x1x8xf32>,
    %cst_217 = arith.constant 0.000000e+00 : f32
    %406 = vector.broadcast %cst_217 : f32 to vector<2x8xf32>
    %407 = arith.cmpf ogt, %403, %406 : vector<2x8xf32>
    %408 = arith.extui %407 : vector<2x8xi1> to vector<2x8xi32>
    %409 = arith.sitofp %408 : vector<2x8xi32> to vector<2x8xf32>
    %cst_218 = arith.constant dense<0.000000e+00> : vector<2x64xf32>
    %410 = tpu.matmul %409, %8, %cst_218 {dimension_numbers = #tpu.dot_dimension_numbers<[1], [0], [0], [1], [0, 0, 1, 1], [], []>} : vector<2x8xf32>, vector<8x64xf32>, vector<2x64xf32> -> vector<2x64xf32>
    %411 = vector.broadcast %1 : vector<1x64xf32> to vector<2x64xf32>
    %412 = arith.addf %410, %411 : vector<2x64xf32>
    %413 = vector.extract_strided_slice %412 {offsets = [0, 0], sizes = [2, 16], strides = [1, 1]} : vector<2x64xf32> to vector<2x16xf32>
    %414 = vector.extract_strided_slice %412 {offsets = [0, 16], sizes = [2, 16], strides = [1, 1]} : vector<2x64xf32> to vector<2x16xf32>
    %415 = vector.extract_strided_slice %412 {offsets = [0, 32], sizes = [2, 16], strides = [1, 1]} : vector<2x64xf32> to vector<2x16xf32>
    %416 = vector.extract_strided_slice %412 {offsets = [0, 48], sizes = [2, 16], strides = [1, 1]} : vector<2x64xf32> to vector<2x16xf32>
    %417 = vector.shape_cast %415 : vector<2x16xf32> to vector<2x1x16xf32>
    %c0_219 = arith.constant 0 : index
    %c14 = arith.constant 14 : index
    %c0_220 = arith.constant 0 : index
    %418 = vector.load %arg11[%c0_219, %c14, %c0_220] : memref<2x16x16xf32, #tpu.memory_space<vmem>>, vector<2x1x16xf32>
    tpu.vector_store %arg11[%c0_219, %c14, %c0_220], %417 {strides = array<i32>} : memref<2x16x16xf32, #tpu.memory_space<vmem>>, vector<2x1x16xf32>,
    %419 = vector.shape_cast %416 : vector<2x16xf32> to vector<2x1x16xf32>
    %c0_221 = arith.constant 0 : index
    %c14_222 = arith.constant 14 : index
    %c0_223 = arith.constant 0 : index
    %420 = vector.load %arg12[%c0_221, %c14_222, %c0_223] : memref<2x16x16xf32, #tpu.memory_space<vmem>>, vector<2x1x16xf32>
    tpu.vector_store %arg12[%c0_221, %c14_222, %c0_223], %419 {strides = array<i32>} : memref<2x16x16xf32, #tpu.memory_space<vmem>>, vector<2x1x16xf32>,
    %c0_224 = arith.constant 0 : index
    %c0_225 = arith.constant 0 : index
    %c0_226 = arith.constant 0 : index
    %421 = vector.load %arg11[%c0_224, %c0_225, %c0_226] : memref<2x16x16xf32, #tpu.memory_space<vmem>>, vector<2x16x16xf32>
    %c0_227 = arith.constant 0 : index
    %c0_228 = arith.constant 0 : index
    %c0_229 = arith.constant 0 : index
    %422 = vector.load %arg12[%c0_227, %c0_228, %c0_229] : memref<2x16x16xf32, #tpu.memory_space<vmem>>, vector<2x16x16xf32>
    %423 = vector.shape_cast %414 : vector<2x16xf32> to vector<2x1x16xf32>
    "tpu.trace_start"() <{level = 10 : i32, message = "bqd,bkd->bqk"}> : () -> ()
    %cst_230 = arith.constant dense<0.000000e+00> : vector<2x1x16xf32>
    %424 = tpu.matmul %423, %421, %cst_230 {dimension_numbers = #tpu.dot_dimension_numbers<[2], [2], [1], [1], [0, 0, 0, 1, 1, 1], [0], [0]>} : vector<2x1x16xf32>, vector<2x16x16xf32>, vector<2x1x16xf32> -> vector<2x1x16xf32>
    "tpu.trace_stop"() : () -> ()
    %cst_231 = arith.constant 2.500000e-01 : f32
    %425 = vector.broadcast %cst_231 : f32 to vector<2x1x16xf32>
    %426 = arith.mulf %424, %425 : vector<2x1x16xf32>
    %427 = tpu.iota {dimensions = array<i32: 2>} : vector<1x1x16xi32>
    %c14_i32 = arith.constant 14 : i32
    %428 = vector.broadcast %c14_i32 : i32 to vector<1x1x16xi32>
    %429 = arith.cmpi sgt, %427, %428 : vector<1x1x16xi32>
    %cst_232 = arith.constant -9.990000e+02 : f32
    %cst_233 = arith.constant 0.000000e+00 : f32
    %430 = vector.broadcast %cst_232 : f32 to vector<1x1x16xf32>
    %431 = vector.broadcast %cst_233 : f32 to vector<1x1x16xf32>
    %432 = arith.select %429, %430, %431 : vector<1x1x16xi1>, vector<1x1x16xf32>
    %433 = vector.broadcast %432 : vector<1x1x16xf32> to vector<2x1x16xf32>
    %434 = arith.addf %426, %433 : vector<2x1x16xf32>
    %cst_234 = arith.constant dense<0xFF800000> : vector<2x1xf32>
    %435 = vector.multi_reduction <maximumf>, %434, %cst_234 [2] : vector<2x1x16xf32> to vector<2x1xf32>
    %436 = vector.shape_cast %435 : vector<2x1xf32> to vector<2x1x1xf32>
    %437 = vector.broadcast %436 : vector<2x1x1xf32> to vector<2x1x16xf32>
    %438 = arith.subf %434, %437 : vector<2x1x16xf32>
    %439 = math.exp %438 : vector<2x1x16xf32>
    %cst_235 = arith.constant dense<0.000000e+00> : vector<2x1xf32>
    %440 = vector.multi_reduction <add>, %439, %cst_235 [2] : vector<2x1x16xf32> to vector<2x1xf32>
    %441 = vector.shape_cast %440 : vector<2x1xf32> to vector<2x1x1xf32>
    %442 = vector.broadcast %441 : vector<2x1x1xf32> to vector<2x1x16xf32>
    %443 = arith.divf %439, %442 : vector<2x1x16xf32>
    %c0_236 = arith.constant 0 : index
    %c14_237 = arith.constant 14 : index
    %c0_238 = arith.constant 0 : index
    %444 = vector.load %arg10[%c0_236, %c14_237, %c0_238] : memref<2x16x16xf32, #tpu.memory_space<vmem>>, vector<2x1x16xf32>
    tpu.vector_store %arg10[%c0_236, %c14_237, %c0_238], %443 {strides = array<i32>} : memref<2x16x16xf32, #tpu.memory_space<vmem>>, vector<2x1x16xf32>,
    "tpu.trace_start"() <{level = 10 : i32, message = "bqk,bkd->bqd"}> : () -> ()
    %cst_239 = arith.constant dense<0.000000e+00> : vector<2x1x16xf32>
    %445 = tpu.matmul %443, %422, %cst_239 {dimension_numbers = #tpu.dot_dimension_numbers<[2], [1], [1], [2], [0, 0, 0, 1, 1, 2], [0], [0]>} : vector<2x1x16xf32>, vector<2x16x16xf32>, vector<2x1x16xf32> -> vector<2x1x16xf32>
    "tpu.trace_stop"() : () -> ()
    %446 = vector.shape_cast %445 : vector<2x1x16xf32> to vector<2x16xf32>
    %447 = arith.addf %413, %446 : vector<2x16xf32>
    %cst_240 = arith.constant dense<0.000000e+00> : vector<2x64xf32>
    %448 = tpu.matmul %447, %2, %cst_240 {dimension_numbers = #tpu.dot_dimension_numbers<[1], [0], [0], [1], [0, 0, 1, 1], [], []>} : vector<2x16xf32>, vector<16x64xf32>, vector<2x64xf32> -> vector<2x64xf32>
    %449 = vector.broadcast %3 : vector<1x64xf32> to vector<2x64xf32>
    %450 = arith.addf %448, %449 : vector<2x64xf32>
    %cst_241 = arith.constant 0.000000e+00 : f32
    %451 = vector.broadcast %cst_241 : f32 to vector<2x64xf32>
    %452 = arith.maximumf %450, %451 : vector<2x64xf32>
    %cst_242 = arith.constant dense<0.000000e+00> : vector<2x16xf32>
    %453 = tpu.matmul %452, %4, %cst_242 {dimension_numbers = #tpu.dot_dimension_numbers<[1], [0], [0], [1], [0, 0, 1, 1], [], []>} : vector<2x64xf32>, vector<64x16xf32>, vector<2x16xf32> -> vector<2x16xf32>
    %454 = arith.addf %447, %453 : vector<2x16xf32>
    %455 = vector.broadcast %5 : vector<1x16xf32> to vector<2x16xf32>
    %456 = arith.addf %454, %455 : vector<2x16xf32>
    %cst_243 = arith.constant dense<0.000000e+00> : vector<2x8xf32>
    %457 = tpu.matmul %456, %6, %cst_243 {dimension_numbers = #tpu.dot_dimension_numbers<[1], [0], [0], [1], [0, 0, 1, 1], [], []>} : vector<2x16xf32>, vector<16x8xf32>, vector<2x8xf32> -> vector<2x8xf32>
    %458 = vector.broadcast %7 : vector<1x8xf32> to vector<2x8xf32>
    %459 = arith.addf %457, %458 : vector<2x8xf32>
    %460 = vector.shape_cast %459 : vector<2x8xf32> to vector<2x1x8xf32>
    %c0_244 = arith.constant 0 : index
    %c7 = arith.constant 7 : index
    %c0_245 = arith.constant 0 : index
    %461 = vector.load %arg9[%c0_244, %c7, %c0_245] : memref<2x8x8xf32, #tpu.memory_space<vmem>>, vector<2x1x8xf32>
    tpu.vector_store %arg9[%c0_244, %c7, %c0_245], %460 {strides = array<i32>} : memref<2x8x8xf32, #tpu.memory_space<vmem>>, vector<2x1x8xf32>,
    return
  }
}

</mosaic_0001>

<bundles_post_ra>
// kernel: autoreg_theory_forward.1
= control target key start
LH: loop header
LB: loop body
LE: loop exit
PB: predicated region body
PF: predicated region fallthrough
CT: control target
= control target key end

     0   :  { %vm63_vm0 = vcmask 130048   ;;  %s8159_s0 = inlined_call_operand.vmem [shape: f32[2,16,16], index: 0, kind: input, shape index: {}]   ;;  %s8160_s1 = inlined_call_operand.vmem [shape: f32[16,64], index: 1, kind: input, shape index: {}]   ;;  %s8161_s2 = inlined_call_operand.vmem [shape: f32[1,64], index: 2, kind: input, shape index: {}]   ;;  %s8162_s3 = inlined_call_operand.vmem [shape: f32[16,64], index: 3, kind: input, shape index: {}]   ;;  %s8163_s4 = inlined_call_operand.vmem [shape: f32[1,64], index: 4, kind: input, shape index: {}]   ;;  %s8164_s5 = inlined_call_operand.vmem [shape: f32[64,16], index: 5, kind: input, shape index: {}]   ;;  %s8165_s6 = inlined_call_operand.vmem [shape: f32[1,16], index: 6, kind: input, shape index: {}]   ;;  %s8166_s7 = inlined_call_operand.vmem [shape: f32[16,8], index: 7, kind: input, shape index: {}]   ;;  %s8167_s8 = inlined_call_operand.vmem [shape: f32[1,8], index: 8, kind: input, shape index: {}]   ;;  %s8168_s9 = inlined_call_operand.vmem [shape: f32[2,8,8], index: 9, kind: output, shape index: {0}]   ;;  %s8169_s10 = inlined_call_operand.hbm [shape: f32[2,16,16], index: 10, kind: output, shape index: {1}]  }
   0x1   :  { %v7027_v0 = vld [vmem:[%s8160_s1 + $0x8] sm:$0xff]  ;;  %v35_v1 = vld [vmem:[%s8160_s1] sm:$0xff] }
   0x2   :  { %v53_v2 = vld [vmem:[%s8159_s0] sm:$0xff]  ;;  %6313 = vmatprep.subr.mxu0 %v7027_v0  ;;  %v54_v3 = vld [vmem:[%s8159_s0 + $0x8] sm:$0xff] }
   0x3   :  { %6317 = vmatprep.mubr.msk.f32.mxu0 %vm63_vm0, %v53_v2  ;;  %6314 = vmatpush3.msra.mxu0 %v7027_v0 }
   0x4   :  { %16 = vsyncpa [#allocation5], 0  ;;  %6315 = vmatprep.subr.mxu0 %v35_v1  ;;  %v55_v4 = vld [vmem:[%s8159_s0 + $0x10] sm:$0xff]  ;;  %v56_v5 = vld [vmem:[%s8159_s0 + $0x18] sm:$0xff]  ;;  %s6960_s27 = smov 96   ;;  %s6961_s0 = smov 112   ;;  %v375_v24 = vlaneseq }
   0x5   :  { %6316 = vmatpush3.msra.mxu0 %v35_v1  ;;  %v7053_v6 = vld [vmem:[%s8161_s2] ss:$0 sm:$0xff]  ;;  %v6962_v23 = vmov 0.0   ;;  %s6963_s28 = smov 80   ;;  %vm6964_vm2 = vmmov 0   ;;  %v7142_v60 = vld [vmem:[%s8162_s3 + $0x8] sm:$0xff] }
   0x6   :  { %6318 = vmatmul.mubr.msk.f32.vlgmr.msra.gmra.mxu0 %vm63_vm0, %v54_v3  ;;  %443 = vst.msk [vmem:[#allocation4 + $0x8] sm:$0xff] %vm63_vm0, %v6962_v23  ;;  %445 = vst.msk [vmem:[#allocation4 + $0x18] sm:$0xff] %vm63_vm0, %v6962_v23  ;;  %v7101_v25 = vshrl.u32 %v375_v24, 7  ;;  %v7103_v26 = vand.u32 127, %v375_v24  ;;  %v7147_v61 = vld [vmem:[%s8162_s3] sm:$0xff]  ;;  %v7155_v62 = vld [vmem:[%s8164_s5 + $0x38] sm:$0xff] }
   0x7   :  { %6320 = vmatprep.mubr.msk.f32.mxu0 %vm63_vm0, %v55_v4  ;;  %v7160_v63 = vld [vmem:[%s8164_s5 + $0x30] sm:$0xff]  ;;  %v7168_v1 = vld [vmem:[%s8164_s5 + $0x28] sm:$0xff]  ;;  %v7175_v2 = vld [vmem:[%s8164_s5 + $0x20] sm:$0xff]  ;;  %vm612_vm3 = vcmask 1041409   ;;  %vm687_vm4 = vcmask 523264   ;;  %vm890_vm5 = vcmask 64512  }
   0x8   :  { %vm380_vm1 = vcmp.gt.s32.totalorder %v7103_v26, %v7101_v25  ;;  %v7182_v3 = vld [vmem:[%s8164_s5 + $0x18] sm:$0xff]  ;;  %vm884_vm7 = vcmask 57344   ;;  %vm1001_vm8 = vcmask 122880   ;;  %vm1182_vm9 = vcmp.gt.s32.totalorder %v7103_v26, 8 }
   0x9   :  { %v382_v29 = vsel %vm380_vm1, -999.0, %v6962_v23  ;;  %vm1904_vm11 = vcmp.gt.s32.totalorder %v7103_v26, 9  ;;  %vm2626_vm13 = vcmp.gt.s32.totalorder %v7103_v26, 10  ;;  %vm3348_vm15 = vcmp.gt.s32.totalorder %v7103_v26, 11 }
   0xa   :  { %6321 = vmatmul.mubr.msk.f32.gmra.mxu0 %vm63_vm0, %v56_v5 }
  0xc6   :  { %v6319_v7 = vpop.f32.mrf.mxu0 }
  0xc7   :  { %v7056_v8 = vadd.f32 %v6319_v7, %v7053_v6 }
  0xc8   :  { %v142_v9 = vpop.f32.mrf.mxu0 }
  0xc9   :  { %v7059_v10 = vadd.f32 %v7053_v6, %v142_v9  ;;  %167 = vrot.lane.b32.xlu0 %v7056_v8, %s6960_s27 }
  0xca   :  { %v6322_v11 = vpop.f32.mrf.mxu0 }
  0xcb   :  { %v158_v12 = vadd.f32 %v6322_v11, %v7053_v6  ;;  %197 = vrot.lane.b32.xlu1 %v7059_v10, %s6961_s0 }
  0xcc   :  { %v152_v13 = vpop.f32.mrf.mxu0 }
  0xcd   :  { %165 = vrot.lane.b32.xlu0 %v7059_v10, %s6960_s27  ;;  %v7069_v14 = vadd.f32 %v7053_v6, %v152_v13 }
  0xcf   :  { %171 = vrot.lane.b32.xlu1 %v158_v12, %s6960_s27 }
  0xd1   :  { %169 = vrot.lane.b32.xlu0 %v7069_v14, %s6960_s27 }
  0xd3   :  { %199 = vrot.lane.b32.xlu1 %v7056_v8, %s6961_s0 }
  0xd5   :  { %284 = vrot.lane.b32.xlu0 %v7069_v14, %s6961_s0 }
  0xd7   :  { %286 = vrot.lane.b32.xlu1 %v158_v12, %s6961_s0 }
 0x13b   :  { %v168_v15 = vpop.permute.xlu0 %167 }
 0x13c   :  { %178 = vst.msk [vmem:[#allocation2 + $0x8] sm:$0xff] %vm63_vm0, %v168_v15  ;;  %6323 = vmatprep.subr.msk.mxu1 %vm63_vm0, %v168_v15 }
 0x13d   :  { %6324 = vmatpush3.xpose.msk.msra.mxu1 %vm63_vm0, %v168_v15  ;;  %v198_v16 = vpop.permute.xlu1 %197 }
 0x13e   :  { %6327 = vmatprep.mubr.msk.f32.mxu1 %vm63_vm0, %v198_v16 }
 0x13f   :  { %v166_v17 = vpop.permute.xlu0 %165 }
 0x140   :  { %177 = vst.msk [vmem:[#allocation2] sm:$0xff] %vm63_vm0, %v166_v17  ;;  %6325 = vmatprep.subr.msk.mxu1 %vm63_vm0, %v166_v17 }
 0x141   :  { %v172_v18 = vpop.permute.xlu1 %171  ;;  %6326 = vmatpush3.xpose.msk.msra.mxu1 %vm63_vm0, %v166_v17 }
 0x142   :  { %180 = vst.msk [vmem:[#allocation2 + $0x18] sm:$0xff] %vm63_vm0, %v172_v18  ;;  %6330 = vmatprep.subr.msk.mxu0 %vm63_vm0, %v172_v18  ;;  %6351 = vmatprep.subr.mxu1 %v6962_v23 }
 0x143   :  { %6331 = vmatpush3.xpose.msk.msra.mxu0 %vm63_vm0, %v172_v18  ;;  %v170_v19 = vpop.permute.xlu0 %169  ;;  %v7197_v18 = vld [vmem:[%s8164_s5 + $0x10] sm:$0xff] }
 0x144   :  { %179 = vst.msk [vmem:[#allocation2 + $0x10] sm:$0xff] %vm63_vm0, %v170_v19  ;;  %6332 = vmatprep.subr.msk.mxu0 %vm63_vm0, %v170_v19 }
 0x145   :  { %v200_v20 = vpop.permute.xlu1 %199 }
 0x146   :  { %6328 = vmatmul.mubr.msk.f32.vlgmr.msra.gmra.mxu1 %vm63_vm0, %v200_v20 }
 0x147   :  { %6333 = vmatpush3.xpose.msk.msra.mxu0 %vm63_vm0, %v170_v19  ;;  %v285_v21 = vpop.permute.xlu0 %284  ;;  %6355 = vmatprep.mubr.msk.f32.mxu1 %vm6964_vm2, %v6962_v23  ;;  %v7218_v19 = vld [vmem:[%s8163_s4] ss:$0 sm:$0xff] }
 0x148   :  { %6334 = vmatprep.mubr.msk.f32.mxu0 %vm63_vm0, %v285_v21  ;;  %6337 = vmatprep.subr.mxu0 %v6962_v23 }
 0x149   :  { %v287_v22 = vpop.permute.xlu1 %286  ;;  %6352 = vmatpush3.msra.mxu1 %v7142_v60 }
 0x14a   :  { %6335 = vmatmul.mubr.msk.f32.vlgmr.msra.gmra.mxu0 %vm63_vm0, %v287_v22  ;;  %6353 = vmatprep.subr.mxu1 %v6962_v23 }
 0x14b   :  { %6341 = vmatprep.mubr.msk.f32.mxu0 %vm6964_vm2, %v6962_v23  ;;  %6354 = vmatpush3.msra.mxu1 %v7147_v61 }
 0x14c   :  { %6377 = vmatprep.subr.mxu1 %v6962_v23 }
 0x206   :  { %v6329_v27 = vpop.f32.mrf.mxu1 }
 0x207   :  { %v7227_v27 = vld [vmem:[%s8166_s7 + $0x8] sm:$0xff] }
 0x208   :  { %v275_v28 = vpop.f32.mrf.mxu1 }
 0x209   :  { %v371_v30 = vmul.f32 0.25, %v275_v28  ;;  %v7232_v28 = vld [vmem:[%s8166_s7] sm:$0xff] }
 0x20a   :  { %v6336_v31 = vpop.f32.mrf.mxu0 }
 0x20b   :  { %v384_v32 = vadd.f32 %v382_v29, %v371_v30 }
 0x20c   :  { %v362_v33 = vpop.f32.mrf.mxu0 }
 0x20d   :  { %v373_v34 = vmul.f32 0.25, %v362_v33  ;;  %v388_v35 = vsel %vm63_vm0, %v384_v32, -inf }
 0x20e   :  { %389 = vmax.xlane.f32.xlu0 %v388_v35 }
 0x20f   :  { %v386_v36 = vadd.f32 %v382_v29, %v373_v34 }
 0x211   :  { %v394_v37 = vsel %vm63_vm0, %v386_v36, -inf }
 0x212   :  { %395 = vmax.xlane.f32.xlu1 %v394_v37 }
 0x223   :  { %183 = vrot.lane.b32.xlu1 %v7056_v8, %s6963_s28 }
 0x227   :  { %187 = vrot.lane.b32.xlu1 %v158_v12, %s6963_s28 }
 0x22b   :  { %185 = vrot.lane.b32.xlu1 %v7069_v14, %s6963_s28 }
 0x297   :  { %v390_v38 = vpop.xlane.xlu0 %389 }
 0x298   :  { %v400_v39 = vsub.f32 %v384_v32, %v390_v38  ;;  %v7241_v32 = vld [vmem:[%s8165_s6] ss:$0 sm:$0xff] }
 0x29a   :  { %v404_v40 = vmul.f32 1.442695, %v400_v39 }
 0x29b   :  { %v396_v41 = vpop.xlane.xlu1 %395 }
 0x29c   :  { %6855 = vpow2.f32 %v404_v40  ;;  %v402_v42 = vsub.f32 %v386_v36, %v396_v41  ;;  %v6965_v41 = vmov 1966171168  }
 0x29e   :  { %v408_v43 = vmul.f32 1.442695, %v402_v42  ;;  %v861_v42 = vunpack.c.l.s4 %v6965_v41 }
 0x29f   :  { %v184_v44 = vpop.permute.xlu1 %183 }
 0x2a0   :  { %6857 = vpow2.f32 %v408_v43  ;;  %194 = vst.msk [vmem:[#allocation3 + $0x8] sm:$0xff] %vm63_vm0, %v184_v44  ;;  %6338 = vmatpush3.msra.mxu0 %v184_v44  ;;  %v862_v43 = vunpack.c.0.s8 %v861_v42  ;;  %v7254_v44 = vld [vmem:[%s8167_s8] ss:$0 sm:$0xff] }
 0x2a1   :  { %6339 = vmatprep.subr.mxu0 %v6962_v23 }
 0x2a3   :  { %v188_v45 = vpop.permute.xlu1 %187 }
 0x2a4   :  { %196 = vst.msk [vmem:[#allocation3 + $0x18] sm:$0xff] %vm63_vm0, %v188_v45 }
 0x2a7   :  { %v186_v46 = vpop.permute.xlu1 %185 }
 0x2a8   :  { %195 = vst.msk [vmem:[#allocation3 + $0x10] sm:$0xff] %vm63_vm0, %v186_v46 }
 0x2a9   :  { %v6856_v47 = vpop.eup %6855 }
 0x2aa   :  { %v412_v48 = vsel %vm63_vm0, %v6856_v47, 0.0 }
 0x2ab   :  { %413 = vadd.xlane.f32.xlu0 %v412_v48 }
 0x2ad   :  { %v6858_v49 = vpop.eup %6857 }
 0x2ae   :  { %v418_v50 = vsel %vm63_vm0, %v6858_v49, 0.0 }
 0x2af   :  { %419 = vadd.xlane.f32.xlu0 %v418_v50 }
 0x2c5   :  { %181 = vrot.lane.b32.xlu0 %v7059_v10, %s6963_s28 }
 0x334   :  { %v414_v51 = vpop.xlane.xlu0 %413 }
 0x335   :  { %6859 = vrcp.f32 %v414_v51 }
 0x338   :  { %v420_v52 = vpop.xlane.xlu0 %419 }
 0x339   :  { %6861 = vrcp.f32 %v420_v52 }
 0x33c   :  { %v182_v53 = vpop.permute.xlu0 %181 }
 0x33d   :  { %193 = vst.msk [vmem:[#allocation3] sm:$0xff] %vm63_vm0, %v182_v53  ;;  %6340 = vmatpush3.msra.mxu0 %v182_v53 }
 0x33e   :  { %6344 = vmatprep.subr.mxu0 %v6962_v23 }
 0x342   :  { %v6860_v54 = vpop.eup %6859 }
 0x343   :  { %v425_v55 = vmul.f32 %v6860_v54, %v6856_v47 }
 0x345   :  { %442 = vst.msk [vmem:[#allocation4] sm:$0xff] %vm63_vm0, %v425_v55  ;;  %v447_v56 = vrot.slane %v425_v55, 7 }
 0x346   :  { %v6862_v57 = vpop.eup %6861 }
 0x347   :  { %6342 = vmatmul.mubr.msk.f32.vlgmr.msra.gmra.mxu0 %vm63_vm0, %v447_v56  ;;  %v429_v58 = vmul.f32 %v6862_v57, %v6858_v49  ;;  %v7279_v57 = vsub.s32 0, %v7101_v25 }
 0x348   :  { %6345 = vmatpush3.msra.mxu0 %v188_v45  ;;  %6348 = vmatprep.mubr.msk.f32.mxu0 %vm6964_vm2, %v6962_v23  ;;  %v7257_v45 = vsub.s32 %v862_v43, %v7101_v25 }
 0x349   :  { %6346 = vmatprep.subr.mxu0 %v6962_v23  ;;  %444 = vst.msk [vmem:[#allocation4 + $0x10] sm:$0xff] %vm63_vm0, %v429_v58  ;;  %v521_v59 = vrot.slane %v429_v58, 7 }
 0x34a   :  { %6347 = vmatpush3.msra.mxu0 %v186_v46 }
 0x34b   :  { %6349 = vmatmul.mubr.msk.f32.vlgmr.msra.gmra.mxu0 %vm63_vm0, %v521_v59  ;;  %6358 = vmatprep.subr.mxu0 %v6962_v23 }
 0x34c   :  { %6374 = vmatprep.mubr.msk.f32.mxu0 %vm6964_vm2, %v6962_v23  ;;  %6359 = vmatpush3.msra.mxu0 %v7155_v62 }
 0x34d   :  { %6360 = vmatprep.subr.mxu0 %v6962_v23 }
 0x34e   :  { %6361 = vmatpush3.msra.mxu0 %v7160_v63 }
 0x34f   :  { %6362 = vmatprep.subr.mxu0 %v6962_v23 }
 0x350   :  { %6363 = vmatpush3.msra.mxu0 %v7168_v1 }
 0x351   :  { %6364 = vmatprep.subr.mxu0 %v6962_v23 }
 0x352   :  { %6365 = vmatpush3.msra.mxu0 %v7175_v2 }
 0x353   :  { %6366 = vmatprep.subr.mxu0 %v6962_v23 }
 0x354   :  { %6367 = vmatpush3.msra.mxu0 %v7182_v3 }
 0x355   :  { %6368 = vmatprep.subr.mxu0 %v6962_v23 }
 0x356   :  { %6369 = vmatpush3.msra.mxu0 %v7197_v18 }
 0x357   :  { %6370 = vmatprep.subr.mxu0 %v6962_v23 }
 0x407   :  { %v516_v4 = vpop.f32.mrf.mxu0 }
 0x408   :  { %v596_v5 = vrot.slane %v516_v4, 1 }
 0x409   :  { %v6343_v7 = vpop.f32.mrf.mxu0 }
 0x40a   :  { %v600_v9 = vadd.f32 %v596_v5, %v7059_v10  ;;  %v7204_v10 = vld [vmem:[%s8164_s5 + $0x8] sm:$0xff] }
 0x40b   :  { %v590_v8 = vpop.f32.mrf.mxu0  ;;  %6371 = vmatpush3.msra.mxu0 %v7204_v10 }
 0x40c   :  { %v597_v11 = vrot.slane %v590_v8, 1  ;;  %v610_v15 = vrot.slane %v600_v9, 7  ;;  %6372 = vmatprep.subr.mxu0 %v6962_v23 }
 0x40d   :  { %v6350_v12 = vpop.f32.mrf.mxu0 }
 0x40e   :  { %v601_v13 = vadd.f32 %v597_v11, %v7069_v14  ;;  %v7210_v14 = vld [vmem:[%s8164_s5] sm:$0xff] }
 0x40f   :  { %6373 = vmatpush3.msra.mxu0 %v7210_v14 }
 0x410   :  { %v611_v16 = vrot.slane %v601_v13, 6  ;;  %6396 = vmatprep.subr.mxu0 %v6962_v23 }
 0x412   :  { %v613_v17 = vsel %vm612_vm3, %v611_v16, %v610_v15  ;;  %v7305_v15 = vld [vmem:[#allocation2 + $0x10] sm:$0xff] }
 0x413   :  { %6356 = vmatmul.mubr.msk.f32.vlgmr.msra.gmra.mxu1 %vm63_vm0, %v613_v17 }
 0x414   :  { %6381 = vmatprep.mubr.msk.f32.mxu1 %vm6964_vm2, %v6962_v23  ;;  %6378 = vmatpush3.msra.mxu1 %v7227_v27 }
 0x415   :  { %6379 = vmatprep.subr.mxu1 %v6962_v23 }
 0x416   :  { %6380 = vmatpush3.msra.mxu1 %v7232_v28 }
 0x417   :  { %6384 = vmatprep.subr.mxu1 %v6962_v23 }
 0x4d3   :  { %v682_v20 = vpop.f32.mrf.mxu1 }
 0x4d4   :  { %v683_v21 = vadd.f32 %v7218_v19, %v682_v20 }
 0x4d5   :  { %v6357_v22 = vpop.f32.mrf.mxu1 }
 0x4d6   :  { %v686_v24 = vmax.f32 %v683_v21, 0.0  ;;  %v1183_v21 = vsel %vm1182_vm9, -999.0, %v6962_v23 }
 0x4d8   :  { %6375 = vmatmul.mubr.msk.f32.vlgmr.msra.gmra.mxu0 %vm687_vm4, %v686_v24 }
 0x4d9   :  { %6400 = vmatprep.mubr.msk.f32.mxu0 %vm6964_vm2, %v6962_v23 }
 0x598   :  { %v757_v29 = vpop.f32.mrf.mxu0 }
 0x599   :  { %v762_v30 = vrot.slane %v757_v29, 1  ;;  %v763_v31 = vrot.slane %v757_v29, 2 }
 0x59a   :  { %v6376_v33 = vpop.f32.mrf.mxu0 }
 0x59b   :  { %v766_v34 = vadd.f32 %v762_v30, %v600_v9  ;;  %v767_v35 = vadd.f32 %v763_v31, %v601_v13  ;;  %v7300_v13 = vld [vmem:[#allocation2] sm:$0xff] }
 0x59d   :  { %v774_v36 = vadd.f32 %v7241_v32, %v766_v34  ;;  %v775_v37 = vadd.f32 %v7241_v32, %v767_v35 }
 0x59f   :  { %v784_v38 = vrot.slane %v774_v36, 7  ;;  %v785_v39 = vrot.slane %v775_v37, 6 }
 0x5a1   :  { %v786_v40 = vsel %vm612_vm3, %v785_v39, %v784_v38 }
 0x5a2   :  { %6382 = vmatmul.mubr.msk.f32.vlgmr.msra.gmra.mxu1 %vm63_vm0, %v786_v40 }
 0x5a3   :  { %6385 = vmatpush3.msra.mxu1 %v7027_v0  ;;  %6386 = vmatprep.mubr.msk.f32.mxu1 %vm6964_vm2, %v6962_v23 }
 0x5a4   :  { %6389 = vmatprep.subr.mxu1 %v6962_v23 }
 0x662   :  { %v855_v46 = vpop.f32.mrf.mxu1 }
 0x663   :  { %v856_v47 = vadd.f32 %v7254_v44, %v855_v46 }
 0x664   :  { %v6383_v48 = vpop.f32.mrf.mxu1 }
 0x665   :  { %v866_v49 = vrot.slane %v856_v47, %v7257_v45  ;;  %vm887_vm6 = vcmp.gt.f32.partialorder %v856_v47, 0.0  ;;  %v7328_v47 = vld [vmem:[#allocation3] sm:$0xff] }
 0x666   :  { %v5984_v50 = vsel %vm887_vm6, 1.0, %v6962_v23  ;;  %vm4070_vm6 = vcmp.gt.s32.totalorder %v7103_v26, 12 }
 0x667   :  { %v867_v51 = vcombine.high %v866_v49, %v866_v49  ;;  %v874_v52 = vrot.slane %v866_v49, %v7257_v45  ;;  %6387 = vmatmul.mubr.msk.f32.vlgmr.msra.gmra.mxu1 %vm890_vm5, %v5984_v50 }
 0x668   :  { %6393 = vmatprep.mubr.msk.f32.mxu1 %vm6964_vm2, %v6962_v23 }
 0x669   :  { %v881_v53 = vrot.slane %v867_v51, %v7257_v45  ;;  %885 = vst.msk [vmem:[%s8168_s9] sm:$0x1] %vm884_vm7, %v874_v52 }
 0x66b   :  { %886 = vst.msk [vmem:[%s8168_s9 + $0x8] sm:$0x1] %vm884_vm7, %v881_v53 }
 0x727   :  { %v960_v54 = vpop.f32.mrf.mxu1 }
 0x728   :  { %v7276_v55 = vadd.f32 %v7053_v6, %v960_v54 }
 0x729   :  { %v6388_v56 = vpop.f32.mrf.mxu1 }
 0x72a   :  { %v971_v58 = vrot.slane %v7276_v55, %v7257_v45 }
 0x72c   :  { %v972_v59 = vcombine.high %v971_v58, %v971_v58  ;;  %v979_v4 = vrot.slane %v971_v58, %v7257_v45 }
 0x72e   :  { %v990_v5 = vrot.slane %v979_v4, %v7279_v57  ;;  %v986_v7 = vrot.slane %v972_v59, %v7257_v45 }
 0x730   :  { %995 = vrot.lane.b32.xlu0 %v990_v5, %s6960_s27  ;;  %v7288_v8 = vrot.slane %v986_v7, %v7279_v57 }
 0x732   :  { %997 = vrot.lane.b32.xlu1 %v7288_v8, %s6960_s27 }
 0x734   :  { %1020 = vrot.lane.b32.xlu0 %v990_v5, %s6961_s0 }
 0x736   :  { %1100 = vrot.lane.b32.xlu1 %v7288_v8, %s6961_s0 }
 0x7a2   :  { %v996_v25 = vpop.permute.xlu0 %995 }
 0x7a3   :  { %1002 = vst.msk [vmem:[#allocation2 + $0x8] sm:$0x1] %vm1001_vm8, %v996_v25 }
 0x7a4   :  { %v998_v9 = vpop.permute.xlu1 %997 }
 0x7a5   :  { %1003 = vst.msk [vmem:[#allocation2 + $0x18] sm:$0x1] %vm1001_vm8, %v998_v9 }
 0x7a6   :  { %v1021_v16 = vpop.permute.xlu0 %1020 }
 0x7a8   :  { %v1101_v17 = vpop.permute.xlu1 %1100 }
 0x7aa   :  { %v1013_v11 = vld [vmem:[#allocation2 + $0x8] sm:$0xff] }
 0x7ab   :  { %6390 = vmatpush3.xpose.msk.msra.mxu1 %vm63_vm0, %v1013_v11 }
 0x7ac   :  { %v1015_v12 = vld [vmem:[#allocation2 + $0x18] sm:$0xff]  ;;  %6391 = vmatprep.subr.mxu1 %v6962_v23 }
 0x7ad   :  { %6397 = vmatpush3.xpose.msk.msra.mxu0 %vm63_vm0, %v1015_v12 }
 0x7ae   :  { %6398 = vmatprep.subr.mxu0 %v6962_v23 }
 0x7af   :  { %6392 = vmatpush3.xpose.msk.msra.mxu1 %vm63_vm0, %v7300_v13 }
 0x7b0   :  { %6403 = vmatprep.subr.mxu1 %v6962_v23 }
 0x7b1   :  { %6399 = vmatpush3.xpose.msk.msra.mxu0 %vm63_vm0, %v7305_v15 }
 0x7b2   :  { %6394 = vmatmul.mubr.msk.f32.vlgmr.msra.gmra.mxu1 %vm63_vm0, %v1021_v16  ;;  %6417 = vmatprep.subr.mxu0 %v6962_v23 }
 0x7b3   :  { %6407 = vmatprep.mubr.msk.f32.mxu1 %vm6964_vm2, %v6962_v23 }
 0x7b4   :  { %6401 = vmatmul.mubr.msk.f32.vlgmr.msra.gmra.mxu0 %vm63_vm0, %v1101_v17 }
 0x7b5   :  { %6418 = vmatpush3.msra.mxu0 %v7142_v60  ;;  %6421 = vmatprep.mubr.msk.f32.mxu0 %vm6964_vm2, %v6962_v23 }
 0x7b6   :  { %6419 = vmatprep.subr.mxu0 %v6962_v23 }
 0x7b7   :  { %6420 = vmatpush3.msra.mxu0 %v7147_v61 }
 0x7b8   :  { %6443 = vmatprep.subr.mxu0 %v6962_v23 }
 0x872   :  { %v1096_v20 = vpop.f32.mrf.mxu1 }
 0x873   :  { %v1180_v22 = vmul.f32 0.25, %v1096_v20 }
 0x874   :  { %v6395_v24 = vpop.f32.mrf.mxu1  ;;  %v1176_v29 = vpop.f32.mrf.mxu0 }
 0x875   :  { %v1181_v30 = vmul.f32 0.25, %v1176_v29  ;;  %v1184_v31 = vadd.f32 %v1183_v21, %v1180_v22 }
 0x876   :  { %v6402_v33 = vpop.f32.mrf.mxu0 }
 0x877   :  { %v1186_v34 = vsel %vm1001_vm8, %v1184_v31, -inf  ;;  %v1185_v35 = vadd.f32 %v1183_v21, %v1181_v30 }
 0x878   :  { %1187 = vmax.xlane.f32.xlu0 %v1186_v34 }
 0x879   :  { %v1189_v36 = vsel %vm1001_vm8, %v1185_v35, -inf }
 0x87a   :  { %1190 = vmax.xlane.f32.xlu1 %v1189_v36 }
 0x88b   :  { %1004 = vrot.lane.b32.xlu1 %v990_v5, %s6963_s28  ;;  %v7342_v5 = vld [vmem:[#allocation3 + $0x10] sm:$0xff] }
 0x901   :  { %v1188_v37 = vpop.xlane.xlu0 %1187 }
 0x902   :  { %v1192_v38 = vsub.f32 %v1184_v31, %v1188_v37 }
 0x903   :  { %v1191_v39 = vpop.xlane.xlu1 %1190 }
 0x904   :  { %v1194_v40 = vmul.f32 1.442695, %v1192_v38  ;;  %v1193_v41 = vsub.f32 %v1185_v35, %v1191_v39 }
 0x906   :  { %6863 = vpow2.f32 %v1194_v40  ;;  %v1196_v42 = vmul.f32 1.442695, %v1193_v41 }
 0x907   :  { %v1005_v43 = vpop.permute.xlu1 %1004 }
 0x908   :  { %6865 = vpow2.f32 %v1196_v42  ;;  %1010 = vst.msk [vmem:[#allocation3 + $0x8] sm:$0x1] %vm1001_vm8, %v1005_v43 }
 0x90f   :  { %v1017_v46 = vld [vmem:[#allocation3 + $0x8] sm:$0xff] }
 0x910   :  { %6404 = vmatpush3.msra.mxu1 %v1017_v46 }
 0x911   :  { %6405 = vmatprep.subr.mxu1 %v6962_v23 }
 0x912   :  { %6406 = vmatpush3.msra.mxu1 %v7328_v47 }
 0x913   :  { %v6864_v48 = vpop.eup %6863  ;;  %6410 = vmatprep.subr.mxu1 %v6962_v23 }
 0x914   :  { %v1198_v49 = vsel %vm1001_vm8, %v6864_v48, 0.0 }
 0x915   :  { %v6866_v50 = vpop.eup %6865  ;;  %1199 = vadd.xlane.f32.xlu0 %v1198_v49 }
 0x916   :  { %v1201_v51 = vsel %vm1001_vm8, %v6866_v50, 0.0 }
 0x919   :  { %1202 = vadd.xlane.f32.xlu0 %v1201_v51 }
 0x92f   :  { %1006 = vrot.lane.b32.xlu0 %v7288_v8, %s6963_s28 }
 0x99e   :  { %v1200_v52 = vpop.xlane.xlu0 %1199 }
 0x99f   :  { %6867 = vrcp.f32 %v1200_v52 }
 0x9a2   :  { %v1203_v53 = vpop.xlane.xlu0 %1202 }
 0x9a3   :  { %6869 = vrcp.f32 %v1203_v53 }
 0x9a6   :  { %v1007_v54 = vpop.permute.xlu0 %1006 }
 0x9a7   :  { %1011 = vst.msk [vmem:[#allocation3 + $0x18] sm:$0x1] %vm1001_vm8, %v1007_v54 }
 0x9ac   :  { %v6868_v56 = vpop.eup %6867 }
 0x9ad   :  { %v1205_v58 = vmul.f32 %v6868_v56, %v6864_v48 }
 0x9ae   :  { %v1019_v59 = vld [vmem:[#allocation3 + $0x18] sm:$0xff] }
 0x9af   :  { %1208 = vst.msk [vmem:[#allocation4 + $0x8] sm:$0x1] %vm1001_vm8, %v1205_v58  ;;  %6408 = vmatmul.mubr.msk.f32.vlgmr.msra.gmra.mxu1 %vm63_vm0, %v1205_v58 }
 0x9b0   :  { %v6870_v4 = vpop.eup %6869  ;;  %6411 = vmatpush3.msra.mxu1 %v1019_v59  ;;  %6414 = vmatprep.mubr.msk.f32.mxu1 %vm6964_vm2, %v6962_v23 }
 0x9b1   :  { %6412 = vmatprep.subr.mxu1 %v6962_v23  ;;  %v1207_v7 = vmul.f32 %v6870_v4, %v6866_v50  ;;  %v1905_v4 = vsel %vm1904_vm11, -999.0, %v6962_v23 }
 0x9b2   :  { %6413 = vmatpush3.msra.mxu1 %v7342_v5 }
 0x9b3   :  { %1209 = vst.msk [vmem:[#allocation4 + $0x18] sm:$0x1] %vm1001_vm8, %v1207_v7  ;;  %6415 = vmatmul.mubr.msk.f32.vlgmr.msra.gmra.mxu1 %vm63_vm0, %v1207_v7  ;;  %6424 = vmatprep.subr.mxu1 %v6962_v23 }
 0x9b4   :  { %6425 = vmatpush3.msra.mxu1 %v7155_v62  ;;  %6440 = vmatprep.mubr.msk.f32.mxu1 %vm6964_vm2, %v6962_v23 }
 0x9b5   :  { %6426 = vmatprep.subr.mxu1 %v6962_v23 }
 0x9b6   :  { %6427 = vmatpush3.msra.mxu1 %v7160_v63 }
 0x9b7   :  { %6428 = vmatprep.subr.mxu1 %v6962_v23 }
 0x9b8   :  { %6429 = vmatpush3.msra.mxu1 %v7168_v1 }
 0x9b9   :  { %6430 = vmatprep.subr.mxu1 %v6962_v23 }
 0x9ba   :  { %6431 = vmatpush3.msra.mxu1 %v7175_v2 }
 0x9bb   :  { %6432 = vmatprep.subr.mxu1 %v6962_v23 }
 0x9bc   :  { %6433 = vmatpush3.msra.mxu1 %v7182_v3 }
 0x9bd   :  { %6434 = vmatprep.subr.mxu1 %v6962_v23 }
 0x9be   :  { %6435 = vmatpush3.msra.mxu1 %v7197_v18 }
 0x9bf   :  { %6436 = vmatprep.subr.mxu1 %v6962_v23 }
 0x9c0   :  { %6437 = vmatpush3.msra.mxu1 %v7204_v10 }
 0x9c1   :  { %6438 = vmatprep.subr.mxu1 %v6962_v23 }
 0x9c2   :  { %6439 = vmatpush3.msra.mxu1 %v7210_v14 }
 0x9c3   :  { %6462 = vmatprep.subr.mxu1 %v6962_v23 }
 0xa6f   :  { %v1279_v8 = vpop.f32.mrf.mxu1 }
 0xa71   :  { %v6409_v25 = vpop.f32.mrf.mxu1 }
 0xa73   :  { %v1352_v9 = vpop.f32.mrf.mxu1 }
 0xa74   :  { %v1358_v11 = vrot.slane %v1352_v9, 7 }
 0xa75   :  { %v6416_v12 = vpop.f32.mrf.mxu1 }
 0xa76   :  { %v1359_v16 = vsel %vm612_vm3, %v1358_v11, %v1279_v8 }
 0xa77   :  { %v1361_v17 = vadd.f32 %v1359_v16, %v7276_v55 }
 0xa79   :  { %6422 = vmatmul.mubr.msk.f32.vlgmr.msra.gmra.mxu0 %vm63_vm0, %v1361_v17 }
 0xa7a   :  { %6444 = vmatpush3.msra.mxu0 %v7227_v27  ;;  %6447 = vmatprep.mubr.msk.f32.mxu0 %vm6964_vm2, %v6962_v23 }
 0xa7b   :  { %6445 = vmatprep.subr.mxu0 %v6962_v23 }
 0xa7c   :  { %6446 = vmatpush3.msra.mxu0 %v7232_v28 }
 0xa7d   :  { %6450 = vmatprep.subr.mxu0 %v6962_v23 }
 0xb39   :  { %v1431_v20 = vpop.f32.mrf.mxu0 }
 0xb3a   :  { %v1432_v21 = vadd.f32 %v7218_v19, %v1431_v20 }
 0xb3b   :  { %v6423_v22 = vpop.f32.mrf.mxu0 }
 0xb3c   :  { %v1435_v24 = vmax.f32 %v1432_v21, 0.0 }
 0xb3e   :  { %6441 = vmatmul.mubr.msk.f32.vlgmr.msra.gmra.mxu1 %vm687_vm4, %v1435_v24 }
 0xb3f   :  { %6466 = vmatprep.mubr.msk.f32.mxu1 %vm6964_vm2, %v6962_v23 }
 0xbfe   :  { %v1505_v55 = vpop.f32.mrf.mxu1 }
 0xbff   :  { %v1509_v29 = vadd.f32 %v1505_v55, %v1361_v17 }
 0xc00   :  { %v6442_v30 = vpop.f32.mrf.mxu1 }
 0xc01   :  { %v1510_v31 = vadd.f32 %v7241_v32, %v1509_v29 }
 0xc03   :  { %6448 = vmatmul.mubr.msk.f32.vlgmr.msra.gmra.mxu0 %vm63_vm0, %v1510_v31 }
 0xc04   :  { %6451 = vmatpush3.msra.mxu0 %v7027_v0  ;;  %6452 = vmatprep.mubr.msk.f32.mxu0 %vm6964_vm2, %v6962_v23 }
 0xc05   :  { %6455 = vmatprep.subr.mxu0 %v6962_v23 }
 0xcc3   :  { %v1580_v33 = vpop.f32.mrf.mxu0 }
 0xcc4   :  { %v1581_v34 = vadd.f32 %v7254_v44, %v1580_v33 }
 0xcc5   :  { %v6449_v35 = vpop.f32.mrf.mxu0 }
 0xcc6   :  { %v1591_v36 = vrot.slane %v1581_v34, %v7257_v45  ;;  %vm1611_vm10 = vcmp.gt.f32.partialorder %v1581_v34, 0.0 }
 0xcc7   :  { %v5997_v37 = vsel %vm1611_vm10, 1.0, %v6962_v23  ;;  %vm4792_vm10 = vcmp.gt.s32.totalorder %v7103_v26, 13 }
 0xcc8   :  { %v1592_v38 = vcombine.high %v1591_v36, %v1591_v36  ;;  %v1599_v39 = vrot.slane %v1591_v36, %v7257_v45  ;;  %6453 = vmatmul.mubr.msk.f32.vlgmr.msra.gmra.mxu0 %vm890_vm5, %v5997_v37 }
 0xcc9   :  { %6459 = vmatprep.mubr.msk.f32.mxu0 %vm6964_vm2, %v6962_v23 }
 0xcca   :  { %v1606_v0 = vrot.slane %v1592_v38, %v7257_v45  ;;  %1609 = vst.msk [vmem:[%s8168_s9 + $0x1] sm:$0x1] %vm884_vm7, %v1599_v39 }
 0xccc   :  { %1610 = vst.msk [vmem:[%s8168_s9 + $0x9] sm:$0x1] %vm884_vm7, %v1606_v0 }
 0xd88   :  { %v1683_v40 = vpop.f32.mrf.mxu0 }
 0xd89   :  { %v7402_v41 = vadd.f32 %v7053_v6, %v1683_v40 }
 0xd8a   :  { %v6454_v42 = vpop.f32.mrf.mxu0 }
 0xd8b   :  { %v1694_v43 = vrot.slane %v7402_v41, %v7257_v45 }
 0xd8d   :  { %v1695_v46 = vcombine.high %v1694_v43, %v1694_v43  ;;  %v1702_v48 = vrot.slane %v1694_v43, %v7257_v45 }
 0xd8f   :  { %v1713_v49 = vrot.slane %v1702_v48, %v7279_v57  ;;  %v1709_v50 = vrot.slane %v1695_v46, %v7257_v45 }
 0xd91   :  { %1742 = vrot.lane.b32.xlu0 %v1713_v49, %s6961_s0  ;;  %1718 = vrot.lane.b32.xlu1 %v1713_v49, %s6960_s27  ;;  %v1717_v51 = vrot.slane %v1709_v50, %v7279_v57 }
 0xd95   :  { %1720 = vrot.lane.b32.xlu1 %v1717_v51, %s6960_s27 }
 0xd99   :  { %1822 = vrot.lane.b32.xlu1 %v1717_v51, %s6961_s0 }
 0xe03   :  { %v1719_v6 = vpop.permute.xlu1 %1718  ;;  %v1743_v56 = vpop.permute.xlu0 %1742 }
 0xe04   :  { %1724 = vst.msk [vmem:[#allocation2 + $0x9] sm:$0x1] %vm1001_vm8, %v1719_v6 }
 0xe07   :  { %v1721_v52 = vpop.permute.xlu1 %1720 }
 0xe08   :  { %1725 = vst.msk [vmem:[#allocation2 + $0x19] sm:$0x1] %vm1001_vm8, %v1721_v52 }
 0xe0b   :  { %v1735_v53 = vld [vmem:[#allocation2 + $0x8] sm:$0xff]  ;;  %v1823_v58 = vpop.permute.xlu1 %1822 }
 0xe0c   :  { %6456 = vmatpush3.xpose.msk.msra.mxu0 %vm63_vm0, %v1735_v53 }
 0xe0d   :  { %6457 = vmatprep.subr.mxu0 %v6962_v23 }
 0xe0f   :  { %v1737_v54 = vld [vmem:[#allocation2 + $0x18] sm:$0xff] }
 0xe10   :  { %6458 = vmatpush3.xpose.msk.msra.mxu0 %vm63_vm0, %v7300_v13  ;;  %6463 = vmatpush3.xpose.msk.msra.mxu1 %vm63_vm0, %v1737_v54 }
 0xe11   :  { %6464 = vmatprep.subr.mxu1 %v6962_v23  ;;  %6469 = vmatprep.subr.mxu0 %v6962_v23 }
 0xe13   :  { %6460 = vmatmul.mubr.msk.f32.vlgmr.msra.gmra.mxu0 %vm63_vm0, %v1743_v56 }
 0xe14   :  { %6465 = vmatpush3.xpose.msk.msra.mxu1 %vm63_vm0, %v7305_v15  ;;  %6473 = vmatprep.mubr.msk.f32.mxu0 %vm6964_vm2, %v6962_v23 }
 0xe15   :  { %6483 = vmatprep.subr.mxu1 %v6962_v23 }
 0xe17   :  { %6467 = vmatmul.mubr.msk.f32.vlgmr.msra.gmra.mxu1 %vm63_vm0, %v1823_v58 }
 0xe18   :  { %6484 = vmatpush3.msra.mxu1 %v7142_v60  ;;  %6487 = vmatprep.mubr.msk.f32.mxu1 %vm6964_vm2, %v6962_v23 }
 0xe19   :  { %6485 = vmatprep.subr.mxu1 %v6962_v23 }
 0xe1a   :  { %6486 = vmatpush3.msra.mxu1 %v7147_v61 }
 0xe1b   :  { %6509 = vmatprep.subr.mxu1 %v6962_v23 }
 0xed3   :  { %v1818_v59 = vpop.f32.mrf.mxu0 }
 0xed4   :  { %v1902_v7 = vmul.f32 0.25, %v1818_v59 }
 0xed5   :  { %v6461_v8 = vpop.f32.mrf.mxu0 }
 0xed6   :  { %v1906_v25 = vadd.f32 %v1905_v4, %v1902_v7 }
 0xed7   :  { %v1898_v9 = vpop.f32.mrf.mxu1 }
 0xed8   :  { %v1903_v11 = vmul.f32 0.25, %v1898_v9  ;;  %v1908_v12 = vsel %vm1001_vm8, %v1906_v25, -inf  ;;  %v7494_v9 = vld [vmem:[%s8160_s1 + $0x8] sm:$0xff] }
 0xed9   :  { %1909 = vmax.xlane.f32.xlu0 %v1908_v12  ;;  %v6468_v16 = vpop.f32.mrf.mxu1 }
 0xeda   :  { %v1907_v17 = vadd.f32 %v1905_v4, %v1903_v11 }
 0xedc   :  { %v1911_v20 = vsel %vm1001_vm8, %v1907_v17, -inf }
 0xedd   :  { %1912 = vmax.xlane.f32.xlu1 %v1911_v20 }
 0xeee   :  { %1726 = vrot.lane.b32.xlu1 %v1713_v49, %s6963_s28 }
 0xf62   :  { %v1910_v21 = vpop.xlane.xlu0 %1909 }
 0xf63   :  { %v1914_v22 = vsub.f32 %v1906_v25, %v1910_v21 }
 0xf65   :  { %v1916_v24 = vmul.f32 1.442695, %v1914_v22 }
 0xf66   :  { %v1913_v55 = vpop.xlane.xlu1 %1912 }
 0xf67   :  { %6871 = vpow2.f32 %v1916_v24  ;;  %v1915_v29 = vsub.f32 %v1907_v17, %v1913_v55 }
 0xf69   :  { %v1918_v30 = vmul.f32 1.442695, %v1915_v29  ;;  %v7519_v29 = vld [vmem:[%s8161_s2] ss:$0 sm:$0xff] }
 0xf6a   :  { %v1727_v31 = vpop.permute.xlu1 %1726 }
 0xf6b   :  { %6873 = vpow2.f32 %v1918_v30  ;;  %1732 = vst.msk [vmem:[#allocation3 + $0x9] sm:$0x1] %vm1001_vm8, %v1727_v31 }
 0xf72   :  { %v1739_v33 = vld [vmem:[#allocation3 + $0x8] sm:$0xff] }
 0xf73   :  { %6470 = vmatpush3.msra.mxu0 %v1739_v33 }
 0xf74   :  { %v6872_v34 = vpop.eup %6871  ;;  %6471 = vmatprep.subr.mxu0 %v6962_v23 }
 0xf75   :  { %6472 = vmatpush3.msra.mxu0 %v7328_v47  ;;  %v1920_v35 = vsel %vm1001_vm8, %v6872_v34, 0.0 }
 0xf76   :  { %1921 = vadd.xlane.f32.xlu0 %v1920_v35  ;;  %6476 = vmatprep.subr.mxu0 %v6962_v23 }
 0xf78   :  { %v6874_v36 = vpop.eup %6873 }
 0xf79   :  { %v1923_v37 = vsel %vm1001_vm8, %v6874_v36, 0.0 }
 0xf7a   :  { %1924 = vadd.xlane.f32.xlu0 %v1923_v37 }
 0xf90   :  { %1728 = vrot.lane.b32.xlu0 %v1717_v51, %s6963_s28 }
 0xfff   :  { %v1922_v38 = vpop.xlane.xlu0 %1921 }
0x1000   :  { %6875 = vrcp.f32 %v1922_v38 }
0x1003   :  { %v1925_v39 = vpop.xlane.xlu0 %1924 }
0x1004   :  { %6877 = vrcp.f32 %v1925_v39 }
0x1007   :  { %v1729_v0 = vpop.permute.xlu0 %1728 }
0x1008   :  { %1733 = vst.msk [vmem:[#allocation3 + $0x19] sm:$0x1] %vm1001_vm8, %v1729_v0 }
0x100d   :  { %v6876_v40 = vpop.eup %6875 }
0x100e   :  { %v1927_v42 = vmul.f32 %v6876_v40, %v6872_v34 }
0x100f   :  { %v1741_v43 = vld [vmem:[#allocation3 + $0x18] sm:$0xff] }
0x1010   :  { %1930 = vst.msk [vmem:[#allocation4 + $0x9] sm:$0x1] %vm1001_vm8, %v1927_v42  ;;  %6474 = vmatmul.mubr.msk.f32.vlgmr.msra.gmra.mxu0 %vm63_vm0, %v1927_v42 }
0x1011   :  { %v6878_v46 = vpop.eup %6877  ;;  %6477 = vmatpush3.msra.mxu0 %v1741_v43  ;;  %6480 = vmatprep.mubr.msk.f32.mxu0 %vm6964_vm2, %v6962_v23 }
0x1012   :  { %6478 = vmatprep.subr.mxu0 %v6962_v23  ;;  %v1929_v48 = vmul.f32 %v6878_v46, %v6874_v36 }
0x1013   :  { %6479 = vmatpush3.msra.mxu0 %v7342_v5 }
0x1014   :  { %1931 = vst.msk [vmem:[#allocation4 + $0x19] sm:$0x1] %vm1001_vm8, %v1929_v48  ;;  %6481 = vmatmul.mubr.msk.f32.vlgmr.msra.gmra.mxu0 %vm63_vm0, %v1929_v48  ;;  %6490 = vmatprep.subr.mxu0 %v6962_v23 }
0x1015   :  { %6491 = vmatpush3.msra.mxu0 %v7155_v62  ;;  %6506 = vmatprep.mubr.msk.f32.mxu0 %vm6964_vm2, %v6962_v23 }
0x1016   :  { %6492 = vmatprep.subr.mxu0 %v6962_v23 }
0x1017   :  { %6493 = vmatpush3.msra.mxu0 %v7160_v63 }
0x1018   :  { %6494 = vmatprep.subr.mxu0 %v6962_v23 }
0x1019   :  { %6495 = vmatpush3.msra.mxu0 %v7168_v1 }
0x101a   :  { %6496 = vmatprep.subr.mxu0 %v6962_v23 }
0x101b   :  { %6497 = vmatpush3.msra.mxu0 %v7175_v2 }
0x101c   :  { %6498 = vmatprep.subr.mxu0 %v6962_v23 }
0x101d   :  { %6499 = vmatpush3.msra.mxu0 %v7182_v3 }
0x101e   :  { %6500 = vmatprep.subr.mxu0 %v6962_v23 }
0x101f   :  { %6501 = vmatpush3.msra.mxu0 %v7197_v18 }
0x1020   :  { %6502 = vmatprep.subr.mxu0 %v6962_v23 }
0x1021   :  { %6503 = vmatpush3.msra.mxu0 %v7204_v10 }
0x1022   :  { %6504 = vmatprep.subr.mxu0 %v6962_v23 }
0x1023   :  { %6505 = vmatpush3.msra.mxu0 %v7210_v14 }
0x1024   :  { %6528 = vmatprep.subr.mxu0 %v6962_v23 }
0x10d0   :  { %v2001_v49 = vpop.f32.mrf.mxu0 }
0x10d2   :  { %v6475_v50 = vpop.f32.mrf.mxu0 }
0x10d4   :  { %v2074_v51 = vpop.f32.mrf.mxu0 }
0x10d5   :  { %v2080_v6 = vrot.slane %v2074_v51, 7 }
0x10d6   :  { %v6482_v52 = vpop.f32.mrf.mxu0 }
0x10d7   :  { %v2081_v53 = vsel %vm612_vm3, %v2080_v6, %v2001_v49  ;;  %v2627_v49 = vsel %vm2626_vm13, -999.0, %v6962_v23 }
0x10d8   :  { %v2083_v54 = vadd.f32 %v2081_v53, %v7402_v41 }
0x10da   :  { %6488 = vmatmul.mubr.msk.f32.vlgmr.msra.gmra.mxu1 %vm63_vm0, %v2083_v54 }
0x10db   :  { %6510 = vmatpush3.msra.mxu1 %v7227_v27  ;;  %6513 = vmatprep.mubr.msk.f32.mxu1 %vm6964_vm2, %v6962_v23 }
0x10dc   :  { %6511 = vmatprep.subr.mxu1 %v6962_v23 }
0x10dd   :  { %6512 = vmatpush3.msra.mxu1 %v7232_v28 }
0x10de   :  { %6516 = vmatprep.subr.mxu1 %v6962_v23 }
0x119a   :  { %v2153_v56 = vpop.f32.mrf.mxu1 }
0x119b   :  { %v2154_v58 = vadd.f32 %v7218_v19, %v2153_v56 }
0x119c   :  { %v6489_v59 = vpop.f32.mrf.mxu1 }
0x119d   :  { %v2157_v4 = vmax.f32 %v2154_v58, 0.0 }
0x119f   :  { %6507 = vmatmul.mubr.msk.f32.vlgmr.msra.gmra.mxu0 %vm687_vm4, %v2157_v4 }
0x11a0   :  { %6532 = vmatprep.mubr.msk.f32.mxu0 %vm6964_vm2, %v6962_v23 }
0x125f   :  { %v2227_v41 = vpop.f32.mrf.mxu0 }
0x1260   :  { %v2231_v7 = vadd.f32 %v2227_v41, %v2083_v54 }
0x1261   :  { %v6508_v8 = vpop.f32.mrf.mxu0 }
0x1262   :  { %v2232_v25 = vadd.f32 %v7241_v32, %v2231_v7 }
0x1264   :  { %6514 = vmatmul.mubr.msk.f32.vlgmr.msra.gmra.mxu1 %vm63_vm0, %v2232_v25 }
0x1265   :  { %6517 = vmatpush3.msra.mxu1 %v7494_v9  ;;  %6518 = vmatprep.mubr.msk.f32.mxu1 %vm6964_vm2, %v6962_v23 }
0x1266   :  { %6521 = vmatprep.subr.mxu1 %v6962_v23 }
0x1324   :  { %v2302_v11 = vpop.f32.mrf.mxu1 }
0x1325   :  { %v2303_v12 = vadd.f32 %v7254_v44, %v2302_v11 }
0x1326   :  { %v6515_v16 = vpop.f32.mrf.mxu1 }
0x1327   :  { %v2313_v17 = vrot.slane %v2303_v12, %v7257_v45  ;;  %vm2333_vm12 = vcmp.gt.f32.partialorder %v2303_v12, 0.0 }
0x1328   :  { %v6010_v20 = vsel %vm2333_vm12, 1.0, %v6962_v23 }
0x1329   :  { %v2314_v21 = vcombine.high %v2313_v17, %v2313_v17  ;;  %v2321_v22 = vrot.slane %v2313_v17, %v7257_v45  ;;  %6519 = vmatmul.mubr.msk.f32.vlgmr.msra.gmra.mxu1 %vm890_vm5, %v6010_v20 }
0x132a   :  { %6525 = vmatprep.mubr.msk.f32.mxu1 %vm6964_vm2, %v6962_v23 }
0x132b   :  { %v2328_v24 = vrot.slane %v2314_v21, %v7257_v45  ;;  %2331 = vst.msk [vmem:[%s8168_s9 + $0x2] sm:$0x1] %vm884_vm7, %v2321_v22 }
0x132d   :  { %2332 = vst.msk [vmem:[%s8168_s9 + $0xa] sm:$0x1] %vm884_vm7, %v2328_v24 }
0x13e9   :  { %v2405_v55 = vpop.f32.mrf.mxu1 }
0x13ea   :  { %v7522_v30 = vadd.f32 %v7519_v29, %v2405_v55 }
0x13eb   :  { %v6520_v31 = vpop.f32.mrf.mxu1 }
0x13ec   :  { %v2416_v33 = vrot.slane %v7522_v30, %v7257_v45 }
0x13ee   :  { %v2417_v34 = vcombine.high %v2416_v33, %v2416_v33  ;;  %v2424_v35 = vrot.slane %v2416_v33, %v7257_v45 }
0x13f0   :  { %v2435_v36 = vrot.slane %v2424_v35, %v7279_v57  ;;  %v2431_v37 = vrot.slane %v2417_v34, %v7257_v45 }
0x13f2   :  { %2464 = vrot.lane.b32.xlu0 %v2435_v36, %s6961_s0  ;;  %2440 = vrot.lane.b32.xlu1 %v2435_v36, %s6960_s27  ;;  %v2439_v38 = vrot.slane %v2431_v37, %v7279_v57 }
0x13f6   :  { %2442 = vrot.lane.b32.xlu1 %v2439_v38, %s6960_s27 }
0x13fa   :  { %2544 = vrot.lane.b32.xlu1 %v2439_v38, %s6961_s0 }
0x1464   :  { %v2441_v39 = vpop.permute.xlu1 %2440  ;;  %v2465_v43 = vpop.permute.xlu0 %2464 }
0x1465   :  { %2446 = vst.msk [vmem:[#allocation2 + $0xa] sm:$0x1] %vm1001_vm8, %v2441_v39 }
0x1468   :  { %v2443_v0 = vpop.permute.xlu1 %2442 }
0x1469   :  { %2447 = vst.msk [vmem:[#allocation2 + $0x1a] sm:$0x1] %vm1001_vm8, %v2443_v0 }
0x146c   :  { %v2457_v40 = vld [vmem:[#allocation2 + $0x8] sm:$0xff]  ;;  %v2545_v46 = vpop.permute.xlu1 %2544 }
0x146d   :  { %6522 = vmatpush3.xpose.msk.msra.mxu1 %vm63_vm0, %v2457_v40 }
0x146e   :  { %6523 = vmatprep.subr.mxu1 %v6962_v23 }
0x1470   :  { %v2459_v42 = vld [vmem:[#allocation2 + $0x18] sm:$0xff] }
0x1471   :  { %6524 = vmatpush3.xpose.msk.msra.mxu1 %vm63_vm0, %v7300_v13  ;;  %6529 = vmatpush3.xpose.msk.msra.mxu0 %vm63_vm0, %v2459_v42 }
0x1472   :  { %6530 = vmatprep.subr.mxu0 %v6962_v23  ;;  %6535 = vmatprep.subr.mxu1 %v6962_v23 }
0x1474   :  { %6526 = vmatmul.mubr.msk.f32.vlgmr.msra.gmra.mxu1 %vm63_vm0, %v2465_v43 }
0x1475   :  { %6531 = vmatpush3.xpose.msk.msra.mxu0 %vm63_vm0, %v7305_v15  ;;  %6539 = vmatprep.mubr.msk.f32.mxu1 %vm6964_vm2, %v6962_v23 }
0x1476   :  { %6549 = vmatprep.subr.mxu0 %v6962_v23 }
0x1478   :  { %6533 = vmatmul.mubr.msk.f32.vlgmr.msra.gmra.mxu0 %vm63_vm0, %v2545_v46 }
0x1479   :  { %6550 = vmatpush3.msra.mxu0 %v7142_v60  ;;  %6553 = vmatprep.mubr.msk.f32.mxu0 %vm6964_vm2, %v6962_v23 }
0x147a   :  { %6551 = vmatprep.subr.mxu0 %v6962_v23 }
0x147b   :  { %6552 = vmatpush3.msra.mxu0 %v7147_v61 }
0x147c   :  { %6575 = vmatprep.subr.mxu0 %v6962_v23 }
0x1534   :  { %v2540_v48 = vpop.f32.mrf.mxu1 }
0x1535   :  { %v2624_v50 = vmul.f32 0.25, %v2540_v48 }
0x1536   :  { %v6527_v51 = vpop.f32.mrf.mxu1 }
0x1537   :  { %v2628_v6 = vadd.f32 %v2627_v49, %v2624_v50 }
0x1538   :  { %v2620_v52 = vpop.f32.mrf.mxu0 }
0x1539   :  { %v2625_v53 = vmul.f32 0.25, %v2620_v52  ;;  %v2630_v60 = vsel %vm1001_vm8, %v2628_v6, -inf }
0x153a   :  { %v6534_v54 = vpop.f32.mrf.mxu0  ;;  %2631 = vmax.xlane.f32.xlu0 %v2630_v60 }
0x153b   :  { %v2629_v56 = vadd.f32 %v2627_v49, %v2625_v53 }
0x153d   :  { %v2633_v58 = vsel %vm1001_vm8, %v2629_v56, -inf }
0x153e   :  { %2634 = vmax.xlane.f32.xlu1 %v2633_v58 }
0x154f   :  { %2448 = vrot.lane.b32.xlu1 %v2435_v36, %s6963_s28 }
0x15c3   :  { %v2632_v61 = vpop.xlane.xlu0 %2631 }
0x15c4   :  { %v2636_v59 = vsub.f32 %v2628_v6, %v2632_v61 }
0x15c6   :  { %v2638_v4 = vmul.f32 1.442695, %v2636_v59 }
0x15c7   :  { %v2635_v41 = vpop.xlane.xlu1 %2634 }
0x15c8   :  { %6879 = vpow2.f32 %v2638_v4  ;;  %v2637_v7 = vsub.f32 %v2629_v56, %v2635_v41 }
0x15ca   :  { %v2640_v8 = vmul.f32 1.442695, %v2637_v7 }
0x15cb   :  { %v2449_v25 = vpop.permute.xlu1 %2448 }
0x15cc   :  { %6881 = vpow2.f32 %v2640_v8  ;;  %2454 = vst.msk [vmem:[#allocation3 + $0xa] sm:$0x1] %vm1001_vm8, %v2449_v25  ;;  %v3349_v8 = vsel %vm3348_vm15, -999.0, %v6962_v23 }
0x15d3   :  { %v2461_v11 = vld [vmem:[#allocation3 + $0x8] sm:$0xff] }
0x15d4   :  { %6536 = vmatpush3.msra.mxu1 %v2461_v11 }
0x15d5   :  { %v6880_v12 = vpop.eup %6879  ;;  %6537 = vmatprep.subr.mxu1 %v6962_v23 }
0x15d6   :  { %6538 = vmatpush3.msra.mxu1 %v7328_v47  ;;  %v2642_v16 = vsel %vm1001_vm8, %v6880_v12, 0.0 }
0x15d7   :  { %2643 = vadd.xlane.f32.xlu0 %v2642_v16  ;;  %6542 = vmatprep.subr.mxu1 %v6962_v23 }
0x15d9   :  { %v6882_v17 = vpop.eup %6881 }
0x15da   :  { %v2645_v20 = vsel %vm1001_vm8, %v6882_v17, 0.0 }
0x15db   :  { %2646 = vadd.xlane.f32.xlu0 %v2645_v20 }
0x15f1   :  { %2450 = vrot.lane.b32.xlu0 %v2439_v38, %s6963_s28 }
0x1660   :  { %v2644_v21 = vpop.xlane.xlu0 %2643 }
0x1661   :  { %6883 = vrcp.f32 %v2644_v21 }
0x1664   :  { %v2647_v22 = vpop.xlane.xlu0 %2646 }
0x1665   :  { %6885 = vrcp.f32 %v2647_v22 }
0x1668   :  { %v2451_v24 = vpop.permute.xlu0 %2450 }
0x1669   :  { %2455 = vst.msk [vmem:[#allocation3 + $0x1a] sm:$0x1] %vm1001_vm8, %v2451_v24 }
0x166e   :  { %v6884_v55 = vpop.eup %6883 }
0x166f   :  { %v2649_v31 = vmul.f32 %v6884_v55, %v6880_v12 }
0x1670   :  { %v2463_v33 = vld [vmem:[#allocation3 + $0x18] sm:$0xff] }
0x1671   :  { %2652 = vst.msk [vmem:[#allocation4 + $0xa] sm:$0x1] %vm1001_vm8, %v2649_v31  ;;  %6540 = vmatmul.mubr.msk.f32.vlgmr.msra.gmra.mxu1 %vm63_vm0, %v2649_v31 }
0x1672   :  { %v6886_v34 = vpop.eup %6885  ;;  %6543 = vmatpush3.msra.mxu1 %v2463_v33  ;;  %6546 = vmatprep.mubr.msk.f32.mxu1 %vm6964_vm2, %v6962_v23 }
0x1673   :  { %6544 = vmatprep.subr.mxu1 %v6962_v23  ;;  %v2651_v35 = vmul.f32 %v6886_v34, %v6882_v17 }
0x1674   :  { %6545 = vmatpush3.msra.mxu1 %v7342_v5 }
0x1675   :  { %2653 = vst.msk [vmem:[#allocation4 + $0x1a] sm:$0x1] %vm1001_vm8, %v2651_v35  ;;  %6547 = vmatmul.mubr.msk.f32.vlgmr.msra.gmra.mxu1 %vm63_vm0, %v2651_v35  ;;  %6556 = vmatprep.subr.mxu1 %v6962_v23 }
0x1676   :  { %6557 = vmatpush3.msra.mxu1 %v7155_v62  ;;  %6572 = vmatprep.mubr.msk.f32.mxu1 %vm6964_vm2, %v6962_v23 }
0x1677   :  { %6558 = vmatprep.subr.mxu1 %v6962_v23 }
0x1678   :  { %6559 = vmatpush3.msra.mxu1 %v7160_v63 }
0x1679   :  { %6560 = vmatprep.subr.mxu1 %v6962_v23 }
0x167a   :  { %6561 = vmatpush3.msra.mxu1 %v7168_v1 }
0x167b   :  { %6562 = vmatprep.subr.mxu1 %v6962_v23 }
0x167c   :  { %6563 = vmatpush3.msra.mxu1 %v7175_v2 }
0x167d   :  { %6564 = vmatprep.subr.mxu1 %v6962_v23 }
0x167e   :  { %6565 = vmatpush3.msra.mxu1 %v7182_v3 }
0x167f   :  { %6566 = vmatprep.subr.mxu1 %v6962_v23 }
0x1680   :  { %6567 = vmatpush3.msra.mxu1 %v7197_v18 }
0x1681   :  { %6568 = vmatprep.subr.mxu1 %v6962_v23 }
0x1682   :  { %6569 = vmatpush3.msra.mxu1 %v7204_v10 }
0x1683   :  { %6570 = vmatprep.subr.mxu1 %v6962_v23 }
0x1684   :  { %6571 = vmatpush3.msra.mxu1 %v7210_v14 }
0x1685   :  { %6594 = vmatprep.subr.mxu1 %v6962_v23 }
0x1731   :  { %v2723_v62 = vpop.f32.mrf.mxu1 }
0x1733   :  { %v6541_v63 = vpop.f32.mrf.mxu1 }
0x1735   :  { %v2796_v1 = vpop.f32.mrf.mxu1 }
0x1736   :  { %v2802_v2 = vrot.slane %v2796_v1, 7 }
0x1737   :  { %v6548_v36 = vpop.f32.mrf.mxu1 }
0x1738   :  { %v2803_v3 = vsel %vm612_vm3, %v2802_v2, %v2723_v62 }
0x1739   :  { %v2805_v37 = vadd.f32 %v2803_v3, %v7522_v30 }
0x173b   :  { %6554 = vmatmul.mubr.msk.f32.vlgmr.msra.gmra.mxu0 %vm63_vm0, %v2805_v37 }
0x173c   :  { %6576 = vmatpush3.msra.mxu0 %v7227_v27  ;;  %6579 = vmatprep.mubr.msk.f32.mxu0 %vm6964_vm2, %v6962_v23 }
0x173d   :  { %6577 = vmatprep.subr.mxu0 %v6962_v23 }
0x173e   :  { %6578 = vmatpush3.msra.mxu0 %v7232_v28 }
0x173f   :  { %6582 = vmatprep.subr.mxu0 %v6962_v23 }
0x17fb   :  { %v2875_v18 = vpop.f32.mrf.mxu0 }
0x17fc   :  { %v2876_v10 = vadd.f32 %v7218_v19, %v2875_v18 }
0x17fd   :  { %v6555_v14 = vpop.f32.mrf.mxu0 }
0x17fe   :  { %v2879_v38 = vmax.f32 %v2876_v10, 0.0 }
0x1800   :  { %6573 = vmatmul.mubr.msk.f32.vlgmr.msra.gmra.mxu1 %vm687_vm4, %v2879_v38 }
0x1801   :  { %6598 = vmatprep.mubr.msk.f32.mxu1 %vm6964_vm2, %v6962_v23 }
0x18c0   :  { %v2949_v27 = vpop.f32.mrf.mxu1 }
0x18c1   :  { %v2953_v30 = vadd.f32 %v2949_v27, %v2805_v37 }
0x18c2   :  { %v6574_v39 = vpop.f32.mrf.mxu1 }
0x18c3   :  { %v2954_v0 = vadd.f32 %v7241_v32, %v2953_v30 }
0x18c5   :  { %6580 = vmatmul.mubr.msk.f32.vlgmr.msra.gmra.mxu0 %vm63_vm0, %v2954_v0  ;;  %v7706_v0 = vld [vmem:[%s8164_s5 + $0x38] sm:$0xff] }
0x18c6   :  { %6583 = vmatpush3.msra.mxu0 %v7494_v9  ;;  %6584 = vmatprep.mubr.msk.f32.mxu0 %vm6964_vm2, %v6962_v23 }
0x18c7   :  { %6587 = vmatprep.subr.mxu0 %v6962_v23 }
0x1985   :  { %v3024_v19 = vpop.f32.mrf.mxu0 }
0x1986   :  { %v3025_v28 = vadd.f32 %v7254_v44, %v3024_v19  ;;  %v7722_v19 = vld [vmem:[%s8164_s5 + $0x28] sm:$0xff] }
0x1987   :  { %v6581_v40 = vpop.f32.mrf.mxu0 }
0x1988   :  { %v3035_v42 = vrot.slane %v3025_v28, %v7257_v45  ;;  %vm3055_vm14 = vcmp.gt.f32.partialorder %v3025_v28, 0.0  ;;  %v7729_v28 = vld [vmem:[%s8164_s5 + $0x20] sm:$0xff]  ;;  %v7736_v40 = vld [vmem:[%s8164_s5 + $0x18] sm:$0xff] }
0x1989   :  { %v6023_v43 = vsel %vm3055_vm14, 1.0, %v6962_v23 }
0x198a   :  { %v3036_v46 = vcombine.high %v3035_v42, %v3035_v42  ;;  %v3043_v32 = vrot.slane %v3035_v42, %v7257_v45  ;;  %6585 = vmatmul.mubr.msk.f32.vlgmr.msra.gmra.mxu0 %vm890_vm5, %v6023_v43  ;;  %v7743_v42 = vld [vmem:[%s8164_s5 + $0x10] sm:$0xff]  ;;  %v7750_v43 = vld [vmem:[%s8164_s5 + $0x8] sm:$0xff] }
0x198b   :  { %6591 = vmatprep.mubr.msk.f32.mxu0 %vm6964_vm2, %v6962_v23 }
0x198c   :  { %v3050_v48 = vrot.slane %v3036_v46, %v7257_v45  ;;  %3053 = vst.msk [vmem:[%s8168_s9 + $0x3] sm:$0x1] %vm884_vm7, %v3043_v32  ;;  %v7757_v46 = vld [vmem:[%s8164_s5] sm:$0xff] }
0x198e   :  { %3054 = vst.msk [vmem:[%s8168_s9 + $0xb] sm:$0x1] %vm884_vm7, %v3050_v48 }
0x1a4a   :  { %v3127_v44 = vpop.f32.mrf.mxu0 }
0x1a4b   :  { %v7632_v49 = vadd.f32 %v7519_v29, %v3127_v44 }
0x1a4c   :  { %v6586_v50 = vpop.f32.mrf.mxu0 }
0x1a4d   :  { %v3138_v51 = vrot.slane %v7632_v49, %v7257_v45 }
0x1a4f   :  { %v3139_v6 = vcombine.high %v3138_v51, %v3138_v51  ;;  %v3146_v52 = vrot.slane %v3138_v51, %v7257_v45 }
0x1a51   :  { %v3157_v53 = vrot.slane %v3146_v52, %v7279_v57  ;;  %v3153_v60 = vrot.slane %v3139_v6, %v7257_v45 }
0x1a53   :  { %3186 = vrot.lane.b32.xlu0 %v3157_v53, %s6961_s0  ;;  %3162 = vrot.lane.b32.xlu1 %v3157_v53, %s6960_s27  ;;  %v7642_v54 = vrot.slane %v3153_v60, %v7279_v57  ;;  %v7776_v60 = vld [vmem:[%s8166_s7] sm:$0xff] }
0x1a57   :  { %3164 = vrot.lane.b32.xlu1 %v7642_v54, %s6960_s27 }
0x1a5b   :  { %3266 = vrot.lane.b32.xlu1 %v7642_v54, %s6961_s0 }
0x1ac5   :  { %v3163_v56 = vpop.permute.xlu1 %3162  ;;  %v3187_v4 = vpop.permute.xlu0 %3186 }
0x1ac6   :  { %3168 = vst.msk [vmem:[#allocation2 + $0xb] sm:$0x1] %vm1001_vm8, %v3163_v56 }
0x1ac9   :  { %v3165_v58 = vpop.permute.xlu1 %3164 }
0x1aca   :  { %3169 = vst.msk [vmem:[#allocation2 + $0x1b] sm:$0x1] %vm1001_vm8, %v3165_v58 }
0x1acd   :  { %v3179_v61 = vld [vmem:[#allocation2 + $0x8] sm:$0xff]  ;;  %v3267_v41 = vpop.permute.xlu1 %3266 }
0x1ace   :  { %6588 = vmatpush3.xpose.msk.msra.mxu0 %vm63_vm0, %v3179_v61 }
0x1acf   :  { %6589 = vmatprep.subr.mxu0 %v6962_v23 }
0x1ad1   :  { %v3181_v59 = vld [vmem:[#allocation2 + $0x18] sm:$0xff] }
0x1ad2   :  { %6590 = vmatpush3.xpose.msk.msra.mxu0 %vm63_vm0, %v7300_v13  ;;  %6595 = vmatpush3.xpose.msk.msra.mxu1 %vm63_vm0, %v3181_v59  ;;  %v7667_v13 = vld [vmem:[%s8162_s3 + $0x8] sm:$0xff] }
0x1ad3   :  { %6596 = vmatprep.subr.mxu1 %v6962_v23  ;;  %6601 = vmatprep.subr.mxu0 %v6962_v23 }
0x1ad5   :  { %6592 = vmatmul.mubr.msk.f32.vlgmr.msra.gmra.mxu0 %vm63_vm0, %v3187_v4 }
0x1ad6   :  { %6597 = vmatpush3.xpose.msk.msra.mxu1 %vm63_vm0, %v7305_v15  ;;  %6605 = vmatprep.mubr.msk.f32.mxu0 %vm6964_vm2, %v6962_v23  ;;  %v7676_v15 = vld [vmem:[%s8162_s3] sm:$0xff] }
0x1ad7   :  { %6615 = vmatprep.subr.mxu1 %v6962_v23 }
0x1ad9   :  { %6599 = vmatmul.mubr.msk.f32.vlgmr.msra.gmra.mxu1 %vm63_vm0, %v3267_v41 }
0x1ada   :  { %6616 = vmatpush3.msra.mxu1 %v7667_v13  ;;  %6619 = vmatprep.mubr.msk.f32.mxu1 %vm6964_vm2, %v6962_v23 }
0x1adb   :  { %6617 = vmatprep.subr.mxu1 %v6962_v23 }
0x1adc   :  { %6618 = vmatpush3.msra.mxu1 %v7676_v15 }
0x1add   :  { %6641 = vmatprep.subr.mxu1 %v6962_v23 }
0x1b95   :  { %v3262_v7 = vpop.f32.mrf.mxu0 }
0x1b96   :  { %v3346_v25 = vmul.f32 0.25, %v3262_v7  ;;  %v7792_v7 = vld [vmem:[%s8165_s6] ss:$0 sm:$0xff] }
0x1b97   :  { %v6593_v11 = vpop.f32.mrf.mxu0 }
0x1b98   :  { %v3350_v12 = vadd.f32 %v3349_v8, %v3346_v25  ;;  %v7803_v11 = vld [vmem:[%s8167_s8] ss:$0 sm:$0xff] }
0x1b99   :  { %v3342_v16 = vpop.f32.mrf.mxu1 }
0x1b9a   :  { %v3347_v17 = vmul.f32 0.25, %v3342_v16  ;;  %v3352_v20 = vsel %vm1001_vm8, %v3350_v12, -inf }
0x1b9b   :  { %3353 = vmax.xlane.f32.xlu0 %v3352_v20  ;;  %v6600_v21 = vpop.f32.mrf.mxu1 }
0x1b9c   :  { %v3351_v22 = vadd.f32 %v3349_v8, %v3347_v17 }
0x1b9e   :  { %v3355_v24 = vsel %vm1001_vm8, %v3351_v22, -inf }
0x1b9f   :  { %3356 = vmax.xlane.f32.xlu1 %v3355_v24 }
0x1bb0   :  { %3170 = vrot.lane.b32.xlu1 %v3157_v53, %s6963_s28  ;;  %v7767_v53 = vld [vmem:[%s8166_s7 + $0x8] sm:$0xff] }
0x1c24   :  { %v3354_v55 = vpop.xlane.xlu0 %3353 }
0x1c25   :  { %v3358_v31 = vsub.f32 %v3350_v12, %v3354_v55 }
0x1c27   :  { %v3360_v33 = vmul.f32 1.442695, %v3358_v31 }
0x1c28   :  { %v3357_v34 = vpop.xlane.xlu1 %3356 }
0x1c29   :  { %6887 = vpow2.f32 %v3360_v33  ;;  %v3359_v35 = vsub.f32 %v3351_v22, %v3357_v34 }
0x1c2b   :  { %v3362_v62 = vmul.f32 1.442695, %v3359_v35 }
0x1c2c   :  { %v3171_v63 = vpop.permute.xlu1 %3170 }
0x1c2d   :  { %6889 = vpow2.f32 %v3362_v62  ;;  %3176 = vst.msk [vmem:[#allocation3 + $0xb] sm:$0x1] %vm1001_vm8, %v3171_v63 }
0x1c34   :  { %v3183_v1 = vld [vmem:[#allocation3 + $0x8] sm:$0xff] }
0x1c35   :  { %6602 = vmatpush3.msra.mxu0 %v3183_v1 }
0x1c36   :  { %v6888_v2 = vpop.eup %6887  ;;  %6603 = vmatprep.subr.mxu0 %v6962_v23 }
0x1c37   :  { %6604 = vmatpush3.msra.mxu0 %v7328_v47  ;;  %v3364_v36 = vsel %vm1001_vm8, %v6888_v2, 0.0 }
0x1c38   :  { %3365 = vadd.xlane.f32.xlu0 %v3364_v36  ;;  %6608 = vmatprep.subr.mxu0 %v6962_v23 }
0x1c3a   :  { %v6890_v3 = vpop.eup %6889 }
0x1c3b   :  { %v3367_v37 = vsel %vm1001_vm8, %v6890_v3, 0.0 }
0x1c3c   :  { %3368 = vadd.xlane.f32.xlu0 %v3367_v37 }
0x1c52   :  { %3172 = vrot.lane.b32.xlu0 %v7642_v54, %s6963_s28  ;;  %v7783_v54 = vld [vmem:[%s8163_s4] ss:$0 sm:$0xff] }
0x1cc1   :  { %v3366_v18 = vpop.xlane.xlu0 %3365 }
0x1cc2   :  { %6891 = vrcp.f32 %v3366_v18  ;;  %v7842_v18 = vld [vmem:[#allocation2] sm:$0xff] }
0x1cc5   :  { %v3369_v10 = vpop.xlane.xlu0 %3368 }
0x1cc6   :  { %6893 = vrcp.f32 %v3369_v10 }
0x1cc9   :  { %v3173_v14 = vpop.permute.xlu0 %3172 }
0x1cca   :  { %3177 = vst.msk [vmem:[#allocation3 + $0x1b] sm:$0x1] %vm1001_vm8, %v3173_v14 }
0x1ccf   :  { %v6892_v47 = vpop.eup %6891 }
0x1cd0   :  { %v3371_v38 = vmul.f32 %v6892_v47, %v6888_v2  ;;  %v7850_v47 = vld [vmem:[#allocation2 + $0x10] sm:$0xff] }
0x1cd1   :  { %v3185_v27 = vld [vmem:[#allocation3 + $0x18] sm:$0xff] }
0x1cd2   :  { %3374 = vst.msk [vmem:[#allocation4 + $0xb] sm:$0x1] %vm1001_vm8, %v3371_v38  ;;  %6606 = vmatmul.mubr.msk.f32.vlgmr.msra.gmra.mxu0 %vm63_vm0, %v3371_v38 }
0x1cd3   :  { %v6894_v30 = vpop.eup %6893  ;;  %6609 = vmatpush3.msra.mxu0 %v3185_v27  ;;  %6612 = vmatprep.mubr.msk.f32.mxu0 %vm6964_vm2, %v6962_v23 }
0x1cd4   :  { %6610 = vmatprep.subr.mxu0 %v6962_v23  ;;  %v3373_v39 = vmul.f32 %v6894_v30, %v6890_v3  ;;  %v4071_v30 = vsel %vm4070_vm6, -999.0, %v6962_v23 }
0x1cd5   :  { %6611 = vmatpush3.msra.mxu0 %v7342_v5  ;;  %v7715_v5 = vld [vmem:[%s8164_s5 + $0x30] sm:$0xff] }
0x1cd6   :  { %3375 = vst.msk [vmem:[#allocation4 + $0x1b] sm:$0x1] %vm1001_vm8, %v3373_v39  ;;  %6613 = vmatmul.mubr.msk.f32.vlgmr.msra.gmra.mxu0 %vm63_vm0, %v3373_v39  ;;  %6622 = vmatprep.subr.mxu0 %v6962_v23 }
0x1cd7   :  { %6623 = vmatpush3.msra.mxu0 %v7706_v0  ;;  %6638 = vmatprep.mubr.msk.f32.mxu0 %vm6964_vm2, %v6962_v23 }
0x1cd8   :  { %6624 = vmatprep.subr.mxu0 %v6962_v23 }
0x1cd9   :  { %6625 = vmatpush3.msra.mxu0 %v7715_v5 }
0x1cda   :  { %6626 = vmatprep.subr.mxu0 %v6962_v23 }
0x1cdb   :  { %6627 = vmatpush3.msra.mxu0 %v7722_v19 }
0x1cdc   :  { %6628 = vmatprep.subr.mxu0 %v6962_v23 }
0x1cdd   :  { %6629 = vmatpush3.msra.mxu0 %v7729_v28 }
0x1cde   :  { %6630 = vmatprep.subr.mxu0 %v6962_v23 }
0x1cdf   :  { %6631 = vmatpush3.msra.mxu0 %v7736_v40 }
0x1ce0   :  { %6632 = vmatprep.subr.mxu0 %v6962_v23 }
0x1ce1   :  { %6633 = vmatpush3.msra.mxu0 %v7743_v42 }
0x1ce2   :  { %6634 = vmatprep.subr.mxu0 %v6962_v23 }
0x1ce3   :  { %6635 = vmatpush3.msra.mxu0 %v7750_v43 }
0x1ce4   :  { %6636 = vmatprep.subr.mxu0 %v6962_v23 }
0x1ce5   :  { %6637 = vmatpush3.msra.mxu0 %v7757_v46 }
0x1ce6   :  { %6660 = vmatprep.subr.mxu0 %v6962_v23 }
0x1d92   :  { %v3445_v32 = vpop.f32.mrf.mxu0 }
0x1d94   :  { %v6607_v48 = vpop.f32.mrf.mxu0 }
0x1d96   :  { %v3518_v44 = vpop.f32.mrf.mxu0 }
0x1d97   :  { %v3524_v50 = vrot.slane %v3518_v44, 7 }
0x1d98   :  { %v6614_v51 = vpop.f32.mrf.mxu0 }
0x1d99   :  { %v3525_v6 = vsel %vm612_vm3, %v3524_v50, %v3445_v32 }
0x1d9a   :  { %v3527_v52 = vadd.f32 %v3525_v6, %v7632_v49 }
0x1d9c   :  { %6620 = vmatmul.mubr.msk.f32.vlgmr.msra.gmra.mxu1 %vm63_vm0, %v3527_v52 }
0x1d9d   :  { %6642 = vmatpush3.msra.mxu1 %v7767_v53  ;;  %6645 = vmatprep.mubr.msk.f32.mxu1 %vm6964_vm2, %v6962_v23 }
0x1d9e   :  { %6643 = vmatprep.subr.mxu1 %v6962_v23 }
0x1d9f   :  { %6644 = vmatpush3.msra.mxu1 %v7776_v60 }
0x1da0   :  { %6648 = vmatprep.subr.mxu1 %v6962_v23 }
0x1e5c   :  { %v3597_v49 = vpop.f32.mrf.mxu1 }
0x1e5d   :  { %v3598_v56 = vadd.f32 %v7783_v54, %v3597_v49 }
0x1e5e   :  { %v6621_v58 = vpop.f32.mrf.mxu1 }
0x1e5f   :  { %v3601_v61 = vmax.f32 %v3598_v56, 0.0 }
0x1e61   :  { %6639 = vmatmul.mubr.msk.f32.vlgmr.msra.gmra.mxu0 %vm687_vm4, %v3601_v61 }
0x1e62   :  { %6664 = vmatprep.mubr.msk.f32.mxu0 %vm6964_vm2, %v6962_v23 }
0x1f21   :  { %v3671_v59 = vpop.f32.mrf.mxu0 }
0x1f22   :  { %v3675_v4 = vadd.f32 %v3671_v59, %v3527_v52 }
0x1f23   :  { %v6640_v41 = vpop.f32.mrf.mxu0 }
0x1f24   :  { %v3676_v8 = vadd.f32 %v7792_v7, %v3675_v4 }
0x1f26   :  { %6646 = vmatmul.mubr.msk.f32.vlgmr.msra.gmra.mxu1 %vm63_vm0, %v3676_v8 }
0x1f27   :  { %6649 = vmatpush3.msra.mxu1 %v7494_v9  ;;  %6650 = vmatprep.mubr.msk.f32.mxu1 %vm6964_vm2, %v6962_v23 }
0x1f28   :  { %6653 = vmatprep.subr.mxu1 %v6962_v23 }
0x1fe6   :  { %v3746_v25 = vpop.f32.mrf.mxu1 }
0x1fe7   :  { %v3747_v12 = vadd.f32 %v7803_v11, %v3746_v25 }
0x1fe8   :  { %v6647_v16 = vpop.f32.mrf.mxu1 }
0x1fe9   :  { %v3757_v17 = vrot.slane %v3747_v12, %v7257_v45  ;;  %vm3777_vm1 = vcmp.gt.f32.partialorder %v3747_v12, 0.0  ;;  %v7871_v16 = vld [vmem:[#allocation3] sm:$0xff] }
0x1fea   :  { %v6036_v20 = vsel %vm3777_vm1, 1.0, %v6962_v23 }
0x1feb   :  { %v3758_v21 = vcombine.high %v3757_v17, %v3757_v17  ;;  %v3765_v22 = vrot.slane %v3757_v17, %v7257_v45  ;;  %6651 = vmatmul.mubr.msk.f32.vlgmr.msra.gmra.mxu1 %vm890_vm5, %v6036_v20 }
0x1fec   :  { %6657 = vmatprep.mubr.msk.f32.mxu1 %vm6964_vm2, %v6962_v23 }
0x1fed   :  { %v3772_v24 = vrot.slane %v3758_v21, %v7257_v45  ;;  %3775 = vst.msk [vmem:[%s8168_s9 + $0x4] sm:$0x1] %vm884_vm7, %v3765_v22 }
0x1fef   :  { %3776 = vst.msk [vmem:[%s8168_s9 + $0xc] sm:$0x1] %vm884_vm7, %v3772_v24 }
0x20ab   :  { %v3849_v55 = vpop.f32.mrf.mxu1 }
0x20ac   :  { %v7822_v31 = vadd.f32 %v7519_v29, %v3849_v55 }
0x20ad   :  { %v6652_v33 = vpop.f32.mrf.mxu1 }
0x20ae   :  { %v3860_v34 = vrot.slane %v7822_v31, %v7257_v45 }
0x20b0   :  { %v3861_v35 = vcombine.high %v3860_v34, %v3860_v34  ;;  %v3868_v62 = vrot.slane %v3860_v34, %v7257_v45 }
0x20b2   :  { %v3879_v63 = vrot.slane %v3868_v62, %v7279_v57  ;;  %v3875_v1 = vrot.slane %v3861_v35, %v7257_v45 }
0x20b4   :  { %3908 = vrot.lane.b32.xlu0 %v3879_v63, %s6961_s0  ;;  %3884 = vrot.lane.b32.xlu1 %v3879_v63, %s6960_s27  ;;  %v7832_v2 = vrot.slane %v3875_v1, %v7279_v57 }
0x20b8   :  { %3886 = vrot.lane.b32.xlu1 %v7832_v2, %s6960_s27 }
0x20bc   :  { %3988 = vrot.lane.b32.xlu1 %v7832_v2, %s6961_s0 }
0x2126   :  { %v3885_v36 = vpop.permute.xlu1 %3884  ;;  %v3909_v14 = vpop.permute.xlu0 %3908 }
0x2127   :  { %3890 = vst.msk [vmem:[#allocation2 + $0xc] sm:$0x1] %vm1001_vm8, %v3885_v36 }
0x212a   :  { %v3887_v3 = vpop.permute.xlu1 %3886 }
0x212b   :  { %3891 = vst.msk [vmem:[#allocation2 + $0x1c] sm:$0x1] %vm1001_vm8, %v3887_v3 }
0x212e   :  { %v3901_v37 = vld [vmem:[#allocation2 + $0x8] sm:$0xff]  ;;  %v3989_v38 = vpop.permute.xlu1 %3988 }
0x212f   :  { %6654 = vmatpush3.xpose.msk.msra.mxu1 %vm63_vm0, %v3901_v37 }
0x2130   :  { %6655 = vmatprep.subr.mxu1 %v6962_v23 }
0x2132   :  { %v3903_v10 = vld [vmem:[#allocation2 + $0x18] sm:$0xff] }
0x2133   :  { %6656 = vmatpush3.xpose.msk.msra.mxu1 %vm63_vm0, %v7842_v18  ;;  %6661 = vmatpush3.xpose.msk.msra.mxu0 %vm63_vm0, %v3903_v10 }
0x2134   :  { %6662 = vmatprep.subr.mxu0 %v6962_v23  ;;  %6667 = vmatprep.subr.mxu1 %v6962_v23 }
0x2136   :  { %6658 = vmatmul.mubr.msk.f32.vlgmr.msra.gmra.mxu1 %vm63_vm0, %v3909_v14 }
0x2137   :  { %6663 = vmatpush3.xpose.msk.msra.mxu0 %vm63_vm0, %v7850_v47  ;;  %6671 = vmatprep.mubr.msk.f32.mxu1 %vm6964_vm2, %v6962_v23 }
0x2138   :  { %6681 = vmatprep.subr.mxu0 %v6962_v23 }
0x213a   :  { %6665 = vmatmul.mubr.msk.f32.vlgmr.msra.gmra.mxu0 %vm63_vm0, %v3989_v38 }
0x213b   :  { %6682 = vmatpush3.msra.mxu0 %v7667_v13  ;;  %6685 = vmatprep.mubr.msk.f32.mxu0 %vm6964_vm2, %v6962_v23 }
0x213c   :  { %6683 = vmatprep.subr.mxu0 %v6962_v23 }
0x213d   :  { %6684 = vmatpush3.msra.mxu0 %v7676_v15 }
0x213e   :  { %6707 = vmatprep.subr.mxu0 %v6962_v23 }
0x21f6   :  { %v3984_v27 = vpop.f32.mrf.mxu1 }
0x21f7   :  { %v4068_v39 = vmul.f32 0.25, %v3984_v27 }
0x21f8   :  { %v6659_v32 = vpop.f32.mrf.mxu1 }
0x21f9   :  { %v4072_v48 = vadd.f32 %v4071_v30, %v4068_v39 }
0x21fa   :  { %v4064_v44 = vpop.f32.mrf.mxu0 }
0x21fb   :  { %v4069_v50 = vmul.f32 0.25, %v4064_v44  ;;  %v4074_v51 = vsel %vm1001_vm8, %v4072_v48, -inf }
0x21fc   :  { %v6666_v6 = vpop.f32.mrf.mxu0  ;;  %4075 = vmax.xlane.f32.xlu0 %v4074_v51 }
0x21fd   :  { %v4073_v52 = vadd.f32 %v4071_v30, %v4069_v50 }
0x21ff   :  { %v4077_v49 = vsel %vm1001_vm8, %v4073_v52, -inf }
0x2200   :  { %4078 = vmax.xlane.f32.xlu1 %v4077_v49 }
0x2211   :  { %3892 = vrot.lane.b32.xlu1 %v3879_v63, %s6963_s28  ;;  %v7885_v63 = vld [vmem:[#allocation3 + $0x10] sm:$0xff] }
0x2285   :  { %v4076_v56 = vpop.xlane.xlu0 %4075 }
0x2286   :  { %v4080_v58 = vsub.f32 %v4072_v48, %v4076_v56 }
0x2288   :  { %v4082_v61 = vmul.f32 1.442695, %v4080_v58 }
0x2289   :  { %v4079_v59 = vpop.xlane.xlu1 %4078 }
0x228a   :  { %6895 = vpow2.f32 %v4082_v61  ;;  %v4081_v4 = vsub.f32 %v4073_v52, %v4079_v59 }
0x228c   :  { %v4084_v41 = vmul.f32 1.442695, %v4081_v4 }
0x228d   :  { %v3893_v8 = vpop.permute.xlu1 %3892 }
0x228e   :  { %6897 = vpow2.f32 %v4084_v41  ;;  %3898 = vst.msk [vmem:[#allocation3 + $0xc] sm:$0x1] %vm1001_vm8, %v3893_v8 }
0x2295   :  { %v3905_v25 = vld [vmem:[#allocation3 + $0x8] sm:$0xff] }
0x2296   :  { %6668 = vmatpush3.msra.mxu1 %v3905_v25 }
0x2297   :  { %v6896_v12 = vpop.eup %6895  ;;  %6669 = vmatprep.subr.mxu1 %v6962_v23 }
0x2298   :  { %6670 = vmatpush3.msra.mxu1 %v7871_v16  ;;  %v4086_v17 = vsel %vm1001_vm8, %v6896_v12, 0.0 }
0x2299   :  { %4087 = vadd.xlane.f32.xlu0 %v4086_v17  ;;  %6674 = vmatprep.subr.mxu1 %v6962_v23 }
0x229b   :  { %v6898_v20 = vpop.eup %6897 }
0x229c   :  { %v4089_v21 = vsel %vm1001_vm8, %v6898_v20, 0.0 }
0x229d   :  { %4090 = vadd.xlane.f32.xlu0 %v4089_v21 }
0x22b3   :  { %3894 = vrot.lane.b32.xlu0 %v7832_v2, %s6963_s28 }
0x2322   :  { %v4088_v22 = vpop.xlane.xlu0 %4087 }
0x2323   :  { %6899 = vrcp.f32 %v4088_v22 }
0x2326   :  { %v4091_v24 = vpop.xlane.xlu0 %4090 }
0x2327   :  { %6901 = vrcp.f32 %v4091_v24 }
0x232a   :  { %v3895_v55 = vpop.permute.xlu0 %3894 }
0x232b   :  { %3899 = vst.msk [vmem:[#allocation3 + $0x1c] sm:$0x1] %vm1001_vm8, %v3895_v55 }
0x2330   :  { %v6900_v33 = vpop.eup %6899 }
0x2331   :  { %v4093_v34 = vmul.f32 %v6900_v33, %v6896_v12 }
0x2332   :  { %v3907_v35 = vld [vmem:[#allocation3 + $0x18] sm:$0xff] }
0x2333   :  { %4096 = vst.msk [vmem:[#allocation4 + $0xc] sm:$0x1] %vm1001_vm8, %v4093_v34  ;;  %6672 = vmatmul.mubr.msk.f32.vlgmr.msra.gmra.mxu1 %vm63_vm0, %v4093_v34 }
0x2334   :  { %v6902_v62 = vpop.eup %6901  ;;  %6675 = vmatpush3.msra.mxu1 %v3907_v35  ;;  %6678 = vmatprep.mubr.msk.f32.mxu1 %vm6964_vm2, %v6962_v23 }
0x2335   :  { %6676 = vmatprep.subr.mxu1 %v6962_v23  ;;  %v4095_v1 = vmul.f32 %v6902_v62, %v6898_v20  ;;  %v4793_v62 = vsel %vm4792_vm10, -999.0, %v6962_v23 }
0x2336   :  { %6677 = vmatpush3.msra.mxu1 %v7885_v63 }
0x2337   :  { %4097 = vst.msk [vmem:[#allocation4 + $0x1c] sm:$0x1] %vm1001_vm8, %v4095_v1  ;;  %6679 = vmatmul.mubr.msk.f32.vlgmr.msra.gmra.mxu1 %vm63_vm0, %v4095_v1  ;;  %6688 = vmatprep.subr.mxu1 %v6962_v23 }
0x2338   :  { %6689 = vmatpush3.msra.mxu1 %v7706_v0  ;;  %6704 = vmatprep.mubr.msk.f32.mxu1 %vm6964_vm2, %v6962_v23 }
0x2339   :  { %6690 = vmatprep.subr.mxu1 %v6962_v23 }
0x233a   :  { %6691 = vmatpush3.msra.mxu1 %v7715_v5 }
0x233b   :  { %6692 = vmatprep.subr.mxu1 %v6962_v23 }
0x233c   :  { %6693 = vmatpush3.msra.mxu1 %v7722_v19 }
0x233d   :  { %6694 = vmatprep.subr.mxu1 %v6962_v23 }
0x233e   :  { %6695 = vmatpush3.msra.mxu1 %v7729_v28 }
0x233f   :  { %6696 = vmatprep.subr.mxu1 %v6962_v23 }
0x2340   :  { %6697 = vmatpush3.msra.mxu1 %v7736_v40 }
0x2341   :  { %6698 = vmatprep.subr.mxu1 %v6962_v23 }
0x2342   :  { %6699 = vmatpush3.msra.mxu1 %v7743_v42 }
0x2343   :  { %6700 = vmatprep.subr.mxu1 %v6962_v23 }
0x2344   :  { %6701 = vmatpush3.msra.mxu1 %v7750_v43 }
0x2345   :  { %6702 = vmatprep.subr.mxu1 %v6962_v23 }
0x2346   :  { %6703 = vmatpush3.msra.mxu1 %v7757_v46 }
0x2347   :  { %6726 = vmatprep.subr.mxu1 %v6962_v23 }
0x23f3   :  { %v4167_v2 = vpop.f32.mrf.mxu1 }
0x23f5   :  { %v6673_v36 = vpop.f32.mrf.mxu1 }
0x23f7   :  { %v4240_v3 = vpop.f32.mrf.mxu1 }
0x23f8   :  { %v4246_v37 = vrot.slane %v4240_v3, 7 }
0x23f9   :  { %v6680_v10 = vpop.f32.mrf.mxu1 }
0x23fa   :  { %v4247_v14 = vsel %vm612_vm3, %v4246_v37, %v4167_v2 }
0x23fb   :  { %v4249_v38 = vadd.f32 %v4247_v14, %v7822_v31 }
0x23fd   :  { %6686 = vmatmul.mubr.msk.f32.vlgmr.msra.gmra.mxu0 %vm63_vm0, %v4249_v38 }
0x23fe   :  { %6708 = vmatpush3.msra.mxu0 %v7767_v53  ;;  %6711 = vmatprep.mubr.msk.f32.mxu0 %vm6964_vm2, %v6962_v23 }
0x23ff   :  { %6709 = vmatprep.subr.mxu0 %v6962_v23 }
0x2400   :  { %6710 = vmatpush3.msra.mxu0 %v7776_v60 }
0x2401   :  { %6714 = vmatprep.subr.mxu0 %v6962_v23 }
0x24bd   :  { %v4319_v27 = vpop.f32.mrf.mxu0 }
0x24be   :  { %v4320_v30 = vadd.f32 %v7783_v54, %v4319_v27 }
0x24bf   :  { %v6687_v39 = vpop.f32.mrf.mxu0 }
0x24c0   :  { %v4323_v32 = vmax.f32 %v4320_v30, 0.0 }
0x24c2   :  { %6705 = vmatmul.mubr.msk.f32.vlgmr.msra.gmra.mxu1 %vm687_vm4, %v4323_v32 }
0x24c3   :  { %6730 = vmatprep.mubr.msk.f32.mxu1 %vm6964_vm2, %v6962_v23 }
0x2582   :  { %v4393_v31 = vpop.f32.mrf.mxu1 }
0x2583   :  { %v4397_v48 = vadd.f32 %v4393_v31, %v4249_v38 }
0x2584   :  { %v6706_v44 = vpop.f32.mrf.mxu1 }
0x2585   :  { %v4398_v50 = vadd.f32 %v7792_v7, %v4397_v48 }
0x2587   :  { %6712 = vmatmul.mubr.msk.f32.vlgmr.msra.gmra.mxu0 %vm63_vm0, %v4398_v50 }
0x2588   :  { %6715 = vmatpush3.msra.mxu0 %v7494_v9  ;;  %6716 = vmatprep.mubr.msk.f32.mxu0 %vm6964_vm2, %v6962_v23 }
0x2589   :  { %6719 = vmatprep.subr.mxu0 %v6962_v23 }
0x2647   :  { %v4468_v51 = vpop.f32.mrf.mxu0 }
0x2648   :  { %v4469_v6 = vadd.f32 %v7803_v11, %v4468_v51 }
0x2649   :  { %v6713_v52 = vpop.f32.mrf.mxu0 }
0x264a   :  { %v4479_v49 = vrot.slane %v4469_v6, %v7257_v45  ;;  %vm4499_vm9 = vcmp.gt.f32.partialorder %v4469_v6, 0.0 }
0x264b   :  { %v6049_v56 = vsel %vm4499_vm9, 1.0, %v6962_v23 }
0x264c   :  { %v4480_v58 = vcombine.high %v4479_v49, %v4479_v49  ;;  %v4487_v61 = vrot.slane %v4479_v49, %v7257_v45  ;;  %6717 = vmatmul.mubr.msk.f32.vlgmr.msra.gmra.mxu0 %vm890_vm5, %v6049_v56 }
0x264d   :  { %6723 = vmatprep.mubr.msk.f32.mxu0 %vm6964_vm2, %v6962_v23 }
0x264e   :  { %v4494_v9 = vrot.slane %v4480_v58, %v7257_v45  ;;  %4497 = vst.msk [vmem:[%s8168_s9 + $0x5] sm:$0x1] %vm884_vm7, %v4487_v61 }
0x2650   :  { %4498 = vst.msk [vmem:[%s8168_s9 + $0xd] sm:$0x1] %vm884_vm7, %v4494_v9 }
0x270c   :  { %v4571_v59 = vpop.f32.mrf.mxu0 }
0x270d   :  { %v7945_v4 = vadd.f32 %v7519_v29, %v4571_v59 }
0x270e   :  { %v6718_v41 = vpop.f32.mrf.mxu0 }
0x270f   :  { %v4582_v8 = vrot.slane %v7945_v4, %v7257_v45 }
0x2711   :  { %v4583_v25 = vcombine.high %v4582_v8, %v4582_v8  ;;  %v4590_v12 = vrot.slane %v4582_v8, %v7257_v45 }
0x2713   :  { %v4601_v17 = vrot.slane %v4590_v12, %v7279_v57  ;;  %v4597_v20 = vrot.slane %v4583_v25, %v7257_v45 }
0x2715   :  { %4630 = vrot.lane.b32.xlu0 %v4601_v17, %s6961_s0  ;;  %4606 = vrot.lane.b32.xlu1 %v4601_v17, %s6960_s27  ;;  %v4605_v21 = vrot.slane %v4597_v20, %v7279_v57 }
0x2719   :  { %4608 = vrot.lane.b32.xlu1 %v4605_v21, %s6960_s27 }
0x271d   :  { %4710 = vrot.lane.b32.xlu1 %v4605_v21, %s6961_s0 }
0x2787   :  { %v4607_v29 = vpop.permute.xlu1 %4606  ;;  %v4631_v33 = vpop.permute.xlu0 %4630 }
0x2788   :  { %4612 = vst.msk [vmem:[#allocation2 + $0xd] sm:$0x1] %vm1001_vm8, %v4607_v29 }
0x278b   :  { %v4609_v22 = vpop.permute.xlu1 %4608 }
0x278c   :  { %4613 = vst.msk [vmem:[#allocation2 + $0x1d] sm:$0x1] %vm1001_vm8, %v4609_v22 }
0x278f   :  { %v4623_v24 = vld [vmem:[#allocation2 + $0x8] sm:$0xff]  ;;  %v4711_v34 = vpop.permute.xlu1 %4710 }
0x2790   :  { %6720 = vmatpush3.xpose.msk.msra.mxu0 %vm63_vm0, %v4623_v24 }
0x2791   :  { %6721 = vmatprep.subr.mxu0 %v6962_v23 }
0x2793   :  { %v4625_v55 = vld [vmem:[#allocation2 + $0x18] sm:$0xff] }
0x2794   :  { %6722 = vmatpush3.xpose.msk.msra.mxu0 %vm63_vm0, %v7842_v18  ;;  %6727 = vmatpush3.xpose.msk.msra.mxu1 %vm63_vm0, %v4625_v55 }
0x2795   :  { %6728 = vmatprep.subr.mxu1 %v6962_v23  ;;  %6733 = vmatprep.subr.mxu0 %v6962_v23 }
0x2797   :  { %6724 = vmatmul.mubr.msk.f32.vlgmr.msra.gmra.mxu0 %vm63_vm0, %v4631_v33 }
0x2798   :  { %6729 = vmatpush3.xpose.msk.msra.mxu1 %vm63_vm0, %v7850_v47  ;;  %6737 = vmatprep.mubr.msk.f32.mxu0 %vm6964_vm2, %v6962_v23 }
0x2799   :  { %6747 = vmatprep.subr.mxu1 %v6962_v23 }
0x279b   :  { %6731 = vmatmul.mubr.msk.f32.vlgmr.msra.gmra.mxu1 %vm63_vm0, %v4711_v34 }
0x279c   :  { %6748 = vmatpush3.msra.mxu1 %v7667_v13  ;;  %6751 = vmatprep.mubr.msk.f32.mxu1 %vm6964_vm2, %v6962_v23 }
0x279d   :  { %6749 = vmatprep.subr.mxu1 %v6962_v23 }
0x279e   :  { %6750 = vmatpush3.msra.mxu1 %v7676_v15 }
0x279f   :  { %6773 = vmatprep.subr.mxu1 %v6962_v23 }
0x2857   :  { %v4706_v35 = vpop.f32.mrf.mxu0 }
0x2858   :  { %v4790_v1 = vmul.f32 0.25, %v4706_v35 }
0x2859   :  { %v6725_v2 = vpop.f32.mrf.mxu0 }
0x285a   :  { %v4794_v36 = vadd.f32 %v4793_v62, %v4790_v1 }
0x285b   :  { %v4786_v3 = vpop.f32.mrf.mxu1 }
0x285c   :  { %v4791_v37 = vmul.f32 0.25, %v4786_v3  ;;  %v4796_v10 = vsel %vm1001_vm8, %v4794_v36, -inf  ;;  %v6936_v3 = vld [vmem:[%s8160_s1 + $0x8] sm:$0xff] }
0x285d   :  { %4797 = vmax.xlane.f32.xlu0 %v4796_v10  ;;  %v6732_v14 = vpop.f32.mrf.mxu1 }
0x285e   :  { %v4795_v38 = vadd.f32 %v4793_v62, %v4791_v37 }
0x2860   :  { %v4799_v27 = vsel %vm1001_vm8, %v4795_v38, -inf }
0x2861   :  { %4800 = vmax.xlane.f32.xlu1 %v4799_v27 }
0x2872   :  { %4614 = vrot.lane.b32.xlu1 %v4601_v17, %s6963_s28 }
0x28e6   :  { %v4798_v30 = vpop.xlane.xlu0 %4797 }
0x28e7   :  { %v4802_v39 = vsub.f32 %v4794_v36, %v4798_v30 }
0x28e9   :  { %v4804_v32 = vmul.f32 1.442695, %v4802_v39 }
0x28ea   :  { %v4801_v31 = vpop.xlane.xlu1 %4800 }
0x28eb   :  { %6903 = vpow2.f32 %v4804_v32  ;;  %v4803_v48 = vsub.f32 %v4795_v38, %v4801_v31 }
0x28ed   :  { %v4806_v44 = vmul.f32 1.442695, %v4803_v48  ;;  %v6937_v48 = vld [vmem:[%s8161_s2] ss:$0 sm:$0xff]  ;;  %s6966_s2 = smov [#allocation4]  }
0x28ee   :  { %v4615_v50 = vpop.permute.xlu1 %4614 }
0x28ef   :  { %6905 = vpow2.f32 %v4806_v44  ;;  %4620 = vst.msk [vmem:[#allocation3 + $0xd] sm:$0x1] %vm1001_vm8, %v4615_v50 }
0x28f6   :  { %v4627_v51 = vld [vmem:[#allocation3 + $0x8] sm:$0xff] }
0x28f7   :  { %6734 = vmatpush3.msra.mxu0 %v4627_v51 }
0x28f8   :  { %v6904_v6 = vpop.eup %6903  ;;  %6735 = vmatprep.subr.mxu0 %v6962_v23 }
0x28f9   :  { %6736 = vmatpush3.msra.mxu0 %v7871_v16  ;;  %v4808_v52 = vsel %vm1001_vm8, %v6904_v6, 0.0 }
0x28fa   :  { %4809 = vadd.xlane.f32.xlu0 %v4808_v52  ;;  %6740 = vmatprep.subr.mxu0 %v6962_v23 }
0x28fc   :  { %v6906_v49 = vpop.eup %6905 }
0x28fd   :  { %v4811_v56 = vsel %vm1001_vm8, %v6906_v49, 0.0 }
0x28fe   :  { %4812 = vadd.xlane.f32.xlu0 %v4811_v56 }
0x2914   :  { %4616 = vrot.lane.b32.xlu0 %v4605_v21, %s6963_s28 }
0x2983   :  { %v4810_v58 = vpop.xlane.xlu0 %4809 }
0x2984   :  { %6907 = vrcp.f32 %v4810_v58 }
0x2987   :  { %v4813_v61 = vpop.xlane.xlu0 %4812 }
0x2988   :  { %6909 = vrcp.f32 %v4813_v61 }
0x298b   :  { %v4617_v9 = vpop.permute.xlu0 %4616 }
0x298c   :  { %4621 = vst.msk [vmem:[#allocation3 + $0x1d] sm:$0x1] %vm1001_vm8, %v4617_v9 }
0x2991   :  { %v6908_v59 = vpop.eup %6907 }
0x2992   :  { %v4815_v41 = vmul.f32 %v6908_v59, %v6904_v6 }
0x2993   :  { %v4629_v8 = vld [vmem:[#allocation3 + $0x18] sm:$0xff] }
0x2994   :  { %4818 = vst.msk [vmem:[#allocation4 + $0xd] sm:$0x1] %vm1001_vm8, %v4815_v41  ;;  %6738 = vmatmul.mubr.msk.f32.vlgmr.msra.gmra.mxu0 %vm63_vm0, %v4815_v41 }
0x2995   :  { %v6910_v25 = vpop.eup %6909  ;;  %6741 = vmatpush3.msra.mxu0 %v4629_v8  ;;  %6744 = vmatprep.mubr.msk.f32.mxu0 %vm6964_vm2, %v6962_v23 }
0x2996   :  { %6742 = vmatprep.subr.mxu0 %v6962_v23  ;;  %v4817_v12 = vmul.f32 %v6910_v25, %v6906_v49 }
0x2997   :  { %6743 = vmatpush3.msra.mxu0 %v7885_v63 }
0x2998   :  { %4819 = vst.msk [vmem:[#allocation4 + $0x1d] sm:$0x1] %vm1001_vm8, %v4817_v12  ;;  %6745 = vmatmul.mubr.msk.f32.vlgmr.msra.gmra.mxu0 %vm63_vm0, %v4817_v12  ;;  %6754 = vmatprep.subr.mxu0 %v6962_v23 }
0x2999   :  { %6755 = vmatpush3.msra.mxu0 %v7706_v0  ;;  %6770 = vmatprep.mubr.msk.f32.mxu0 %vm6964_vm2, %v6962_v23 }
0x299a   :  { %6756 = vmatprep.subr.mxu0 %v6962_v23 }
0x299b   :  { %6757 = vmatpush3.msra.mxu0 %v7715_v5 }
0x299c   :  { %6758 = vmatprep.subr.mxu0 %v6962_v23 }
0x299d   :  { %6759 = vmatpush3.msra.mxu0 %v7722_v19 }
0x299e   :  { %6760 = vmatprep.subr.mxu0 %v6962_v23 }
0x299f   :  { %6761 = vmatpush3.msra.mxu0 %v7729_v28 }
0x29a0   :  { %6762 = vmatprep.subr.mxu0 %v6962_v23 }
0x29a1   :  { %6763 = vmatpush3.msra.mxu0 %v7736_v40 }
0x29a2   :  { %6764 = vmatprep.subr.mxu0 %v6962_v23 }
0x29a3   :  { %6765 = vmatpush3.msra.mxu0 %v7743_v42 }
0x29a4   :  { %6766 = vmatprep.subr.mxu0 %v6962_v23 }
0x29a5   :  { %6767 = vmatpush3.msra.mxu0 %v7750_v43 }
0x29a6   :  { %6768 = vmatprep.subr.mxu0 %v6962_v23 }
0x29a7   :  { %6769 = vmatpush3.msra.mxu0 %v7757_v46 }
0x29a8   :  { %6792 = vmatprep.subr.mxu0 %v6962_v23 }
0x2a54   :  { %v4889_v17 = vpop.f32.mrf.mxu0 }
0x2a56   :  { %v6739_v20 = vpop.f32.mrf.mxu0 }
0x2a58   :  { %v4962_v21 = vpop.f32.mrf.mxu0 }
0x2a59   :  { %v4968_v29 = vrot.slane %v4962_v21, 7 }
0x2a5a   :  { %v6746_v22 = vpop.f32.mrf.mxu0 }
0x2a5b   :  { %v4969_v24 = vsel %vm612_vm3, %v4968_v29, %v4889_v17 }
0x2a5c   :  { %v4971_v55 = vadd.f32 %v4969_v24, %v7945_v4 }
0x2a5e   :  { %6752 = vmatmul.mubr.msk.f32.vlgmr.msra.gmra.mxu1 %vm63_vm0, %v4971_v55 }
0x2a5f   :  { %6774 = vmatpush3.msra.mxu1 %v7767_v53  ;;  %6777 = vmatprep.mubr.msk.f32.mxu1 %vm6964_vm2, %v6962_v23 }
0x2a60   :  { %6775 = vmatprep.subr.mxu1 %v6962_v23 }
0x2a61   :  { %6776 = vmatpush3.msra.mxu1 %v7776_v60 }
0x2a62   :  { %6780 = vmatprep.subr.mxu1 %v6962_v23 }
0x2b1e   :  { %v5041_v33 = vpop.f32.mrf.mxu1 }
0x2b1f   :  { %v5042_v34 = vadd.f32 %v7783_v54, %v5041_v33 }
0x2b20   :  { %v6753_v35 = vpop.f32.mrf.mxu1 }
0x2b21   :  { %v5045_v62 = vmax.f32 %v5042_v34, 0.0 }
0x2b23   :  { %6771 = vmatmul.mubr.msk.f32.vlgmr.msra.gmra.mxu0 %vm687_vm4, %v5045_v62 }
0x2b24   :  { %6796 = vmatprep.mubr.msk.f32.mxu0 %vm6964_vm2, %v6962_v23 }
0x2be3   :  { %v5115_v4 = vpop.f32.mrf.mxu0 }
0x2be4   :  { %v5119_v1 = vadd.f32 %v5115_v4, %v4971_v55 }
0x2be5   :  { %v6772_v2 = vpop.f32.mrf.mxu0 }
0x2be6   :  { %v5120_v36 = vadd.f32 %v7792_v7, %v5119_v1 }
0x2be8   :  { %6778 = vmatmul.mubr.msk.f32.vlgmr.msra.gmra.mxu1 %vm63_vm0, %v5120_v36 }
0x2be9   :  { %6781 = vmatpush3.msra.mxu1 %v6936_v3  ;;  %6782 = vmatprep.mubr.msk.f32.mxu1 %vm6964_vm2, %v6962_v23 }
0x2bea   :  { %6785 = vmatprep.subr.mxu1 %v6962_v23 }
0x2ca8   :  { %v5190_v37 = vpop.f32.mrf.mxu1 }
0x2ca9   :  { %v5191_v10 = vadd.f32 %v7803_v11, %v5190_v37 }
0x2caa   :  { %v6779_v14 = vpop.f32.mrf.mxu1 }
0x2cab   :  { %v5201_v38 = vrot.slane %v5191_v10, %v7257_v45  ;;  %vm5221_vm11 = vcmp.gt.f32.partialorder %v5191_v10, 0.0 }
0x2cac   :  { %v6062_v27 = vsel %vm5221_vm11, 1.0, %v6962_v23 }
0x2cad   :  { %v5202_v30 = vcombine.high %v5201_v38, %v5201_v38  ;;  %v5209_v39 = vrot.slane %v5201_v38, %v7257_v45  ;;  %6783 = vmatmul.mubr.msk.f32.vlgmr.msra.gmra.mxu1 %vm890_vm5, %v6062_v27  ;;  %vm5514_vm5 = vcmp.gt.s32.totalorder %v7103_v26, 14 }
0x2cae   :  { %6789 = vmatprep.mubr.msk.f32.mxu1 %vm6964_vm2, %v6962_v23 }
0x2caf   :  { %v5216_v32 = vrot.slane %v5202_v30, %v7257_v45  ;;  %5219 = vst.msk [vmem:[%s8168_s9 + $0x6] sm:$0x1] %vm884_vm7, %v5209_v39 }
0x2cb1   :  { %5220 = vst.msk [vmem:[%s8168_s9 + $0xe] sm:$0x1] %vm884_vm7, %v5216_v32 }
0x2d6d   :  { %v5293_v31 = vpop.f32.mrf.mxu1 }
0x2d6e   :  { %v8059_v44 = vadd.f32 %v6937_v48, %v5293_v31 }
0x2d6f   :  { %v6784_v50 = vpop.f32.mrf.mxu1 }
0x2d70   :  { %v5304_v51 = vrot.slane %v8059_v44, %v7257_v45 }
0x2d72   :  { %v5305_v6 = vcombine.high %v5304_v51, %v5304_v51  ;;  %v5312_v52 = vrot.slane %v5304_v51, %v7257_v45 }
0x2d74   :  { %v5323_v49 = vrot.slane %v5312_v52, %v7279_v57  ;;  %v5319_v56 = vrot.slane %v5305_v6, %v7257_v45 }
0x2d76   :  { %5352 = vrot.lane.b32.xlu0 %v5323_v49, %s6961_s0  ;;  %5328 = vrot.lane.b32.xlu1 %v5323_v49, %s6960_s27  ;;  %v5327_v58 = vrot.slane %v5319_v56, %v7279_v57 }
0x2d7a   :  { %5330 = vrot.lane.b32.xlu1 %v5327_v58, %s6960_s27  ;;  %s5950_s27 = sshll.u32 %s6966_s2, 4  ;;  %s5951_s27 = int_to_ptr.vmem [resolvable:$true] %s5950_s27 }
0x2d7b   :  { %p6943_p1 = scmp.lt.s32.totalorder %s5951_s27, %s5951_s27 }
0x2d7e   :  { %5432 = vrot.lane.b32.xlu1 %v5327_v58, %s6961_s0  ;;  %s6938_s0 = scalar_lea.vmem %s5951_s27, 512 }
0x2d7f   :  { %p6939_p0 = scmp.ne.s32.totalorder %s5951_s27, %s6938_s0  ;;  %p6944_p2 = scmp.lt.s32.totalorder %s6938_s0, %s6938_s0 }
0x2d81   :  { %p6945_p3 = por %p6944_p2, %p6943_p1 }
0x2d83   :  { %p6946_p4 = pnand %p6945_p3, %p6939_p0 }
0x2de8   :  { %v5329_v61 = vpop.permute.xlu1 %5328  ;;  %v5353_v57 = vpop.permute.xlu0 %5352 }
0x2de9   :  { %5334 = vst.msk [vmem:[#allocation2 + $0xe] sm:$0x1] %vm1001_vm8, %v5329_v61 }
0x2dec   :  { %v5331_v9 = vpop.permute.xlu1 %5330 }
0x2ded   :  { %5335 = vst.msk [vmem:[#allocation2 + $0x1e] sm:$0x1] %vm1001_vm8, %v5331_v9 }
0x2df0   :  { %v5345_v59 = vld [vmem:[#allocation2 + $0x8] sm:$0xff]  ;;  %v5433_v8 = vpop.permute.xlu1 %5432 }
0x2df1   :  { %6786 = vmatpush3.xpose.msk.msra.mxu1 %vm63_vm0, %v5345_v59 }
0x2df2   :  { %6787 = vmatprep.subr.mxu1 %v6962_v23 }
0x2df4   :  { %v5347_v41 = vld [vmem:[#allocation2 + $0x18] sm:$0xff] }
0x2df5   :  { %6788 = vmatpush3.xpose.msk.msra.mxu1 %vm63_vm0, %v7842_v18  ;;  %6793 = vmatpush3.xpose.msk.msra.mxu0 %vm63_vm0, %v5347_v41 }
0x2df6   :  { %6794 = vmatprep.subr.mxu0 %v6962_v23  ;;  %6799 = vmatprep.subr.mxu1 %v6962_v23 }
0x2df8   :  { %6790 = vmatmul.mubr.msk.f32.vlgmr.msra.gmra.mxu1 %vm63_vm0, %v5353_v57 }
0x2df9   :  { %6795 = vmatpush3.xpose.msk.msra.mxu0 %vm63_vm0, %v7850_v47  ;;  %6803 = vmatprep.mubr.msk.f32.mxu1 %vm6964_vm2, %v6962_v23  ;;  %v5515_v47 = vsel %vm5514_vm5, -999.0, %v6962_v23 }
0x2dfa   :  { %6813 = vmatprep.subr.mxu0 %v6962_v23 }
0x2dfc   :  { %6797 = vmatmul.mubr.msk.f32.vlgmr.msra.gmra.mxu0 %vm63_vm0, %v5433_v8 }
0x2dfd   :  { %6814 = vmatpush3.msra.mxu0 %v7667_v13  ;;  %6817 = vmatprep.mubr.msk.f32.mxu0 %vm6964_vm2, %v6962_v23 }
0x2dfe   :  { %6815 = vmatprep.subr.mxu0 %v6962_v23 }
0x2dff   :  { %6816 = vmatpush3.msra.mxu0 %v7676_v15 }
0x2e00   :  { %6839 = vmatprep.subr.mxu0 %v6962_v23 }
0x2eb8   :  { %v5428_v18 = vpop.f32.mrf.mxu1 }
0x2eb9   :  { %v5512_v25 = vmul.f32 0.25, %v5428_v18 }
0x2eba   :  { %v6791_v12 = vpop.f32.mrf.mxu1 }
0x2ebb   :  { %v5516_v17 = vadd.f32 %v5515_v47, %v5512_v25 }
0x2ebc   :  { %v5508_v20 = vpop.f32.mrf.mxu0 }
0x2ebd   :  { %v5513_v21 = vmul.f32 0.25, %v5508_v20  ;;  %v5518_v13 = vsel %vm1001_vm8, %v5516_v17, -inf }
0x2ebe   :  { %v6798_v29 = vpop.f32.mrf.mxu0  ;;  %5519 = vmax.xlane.f32.xlu0 %v5518_v13 }
0x2ebf   :  { %v5517_v22 = vadd.f32 %v5515_v47, %v5513_v21 }
0x2ec1   :  { %v5521_v24 = vsel %vm1001_vm8, %v5517_v22, -inf }
0x2ec2   :  { %5522 = vmax.xlane.f32.xlu1 %v5521_v24 }
0x2ed3   :  { %5336 = vrot.lane.b32.xlu1 %v5323_v49, %s6963_s28 }
0x2f47   :  { %v5520_v15 = vpop.xlane.xlu0 %5519 }
0x2f48   :  { %v5524_v26 = vsub.f32 %v5516_v17, %v5520_v15 }
0x2f4a   :  { %v5526_v55 = vmul.f32 1.442695, %v5524_v26 }
0x2f4b   :  { %v5523_v33 = vpop.xlane.xlu1 %5522 }
0x2f4c   :  { %6911 = vpow2.f32 %v5526_v55  ;;  %v5525_v34 = vsub.f32 %v5517_v22, %v5523_v33 }
0x2f4e   :  { %v5528_v35 = vmul.f32 1.442695, %v5525_v34 }
0x2f4f   :  { %v5337_v62 = vpop.permute.xlu1 %5336 }
0x2f50   :  { %6913 = vpow2.f32 %v5528_v35  ;;  %5342 = vst.msk [vmem:[#allocation3 + $0xe] sm:$0x1] %vm1001_vm8, %v5337_v62 }
0x2f57   :  { %v5349_v4 = vld [vmem:[#allocation3 + $0x8] sm:$0xff] }
0x2f58   :  { %6800 = vmatpush3.msra.mxu1 %v5349_v4 }
0x2f59   :  { %v6912_v1 = vpop.eup %6911  ;;  %6801 = vmatprep.subr.mxu1 %v6962_v23 }
0x2f5a   :  { %6802 = vmatpush3.msra.mxu1 %v7871_v16  ;;  %v5530_v2 = vsel %vm1001_vm8, %v6912_v1, 0.0 }
0x2f5b   :  { %5531 = vadd.xlane.f32.xlu0 %v5530_v2  ;;  %6806 = vmatprep.subr.mxu1 %v6962_v23 }
0x2f5d   :  { %v6914_v36 = vpop.eup %6913 }
0x2f5e   :  { %v5533_v3 = vsel %vm1001_vm8, %v6914_v36, 0.0 }
0x2f5f   :  { %5534 = vadd.xlane.f32.xlu0 %v5533_v3 }
0x2f75   :  { %5338 = vrot.lane.b32.xlu0 %v5327_v58, %s6963_s28 }
0x2fe4   :  { %v5532_v37 = vpop.xlane.xlu0 %5531 }
0x2fe5   :  { %6915 = vrcp.f32 %v5532_v37 }
0x2fe8   :  { %v5535_v10 = vpop.xlane.xlu0 %5534 }
0x2fe9   :  { %6917 = vrcp.f32 %v5535_v10 }
0x2fec   :  { %v5339_v14 = vpop.permute.xlu0 %5338 }
0x2fed   :  { %5343 = vst.msk [vmem:[#allocation3 + $0x1e] sm:$0x1] %vm1001_vm8, %v5339_v14 }
0x2ff2   :  { %v6916_v38 = vpop.eup %6915 }
0x2ff3   :  { %v5537_v16 = vmul.f32 %v6916_v38, %v6912_v1 }
0x2ff4   :  { %v5351_v27 = vld [vmem:[#allocation3 + $0x18] sm:$0xff] }
0x2ff5   :  { %5540 = vst.msk [vmem:[#allocation4 + $0xe] sm:$0x1] %vm1001_vm8, %v5537_v16  ;;  %6804 = vmatmul.mubr.msk.f32.vlgmr.msra.gmra.mxu1 %vm63_vm0, %v5537_v16 }
0x2ff6   :  { %v6918_v30 = vpop.eup %6917  ;;  %6807 = vmatpush3.msra.mxu1 %v5351_v27  ;;  %6810 = vmatprep.mubr.msk.f32.mxu1 %vm6964_vm2, %v6962_v23 }
0x2ff7   :  { %6808 = vmatprep.subr.mxu1 %v6962_v23  ;;  %v5539_v39 = vmul.f32 %v6918_v30, %v6914_v36 }
0x2ff8   :  { %6809 = vmatpush3.msra.mxu1 %v7885_v63 }
0x2ff9   :  { %5541 = vst.msk [vmem:[#allocation4 + $0x1e] sm:$0x1] %vm1001_vm8, %v5539_v39  ;;  %6811 = vmatmul.mubr.msk.f32.vlgmr.msra.gmra.mxu1 %vm63_vm0, %v5539_v39  ;;  %6820 = vmatprep.subr.mxu1 %v6962_v23 }
0x2ffa   :  { %6821 = vmatpush3.msra.mxu1 %v7706_v0  ;;  %6836 = vmatprep.mubr.msk.f32.mxu1 %vm6964_vm2, %v6962_v23 }
0x2ffb   :  { %6822 = vmatprep.subr.mxu1 %v6962_v23 }
0x2ffc   :  { %6823 = vmatpush3.msra.mxu1 %v7715_v5 }
0x2ffd   :  { %6824 = vmatprep.subr.mxu1 %v6962_v23 }
0x2ffe   :  { %6825 = vmatpush3.msra.mxu1 %v7722_v19 }
0x2fff   :  { %6826 = vmatprep.subr.mxu1 %v6962_v23 }
0x3000   :  { %6827 = vmatpush3.msra.mxu1 %v7729_v28 }
0x3001   :  { %6828 = vmatprep.subr.mxu1 %v6962_v23 }
0x3002   :  { %6829 = vmatpush3.msra.mxu1 %v7736_v40 }
0x3003   :  { %6830 = vmatprep.subr.mxu1 %v6962_v23 }
0x3004   :  { %6831 = vmatpush3.msra.mxu1 %v7743_v42 }
0x3005   :  { %6832 = vmatprep.subr.mxu1 %v6962_v23 }
0x3006   :  { %6833 = vmatpush3.msra.mxu1 %v7750_v43 }
0x3007   :  { %6834 = vmatprep.subr.mxu1 %v6962_v23 }
0x3008   :  { %6835 = vmatpush3.msra.mxu1 %v7757_v46 }
0x30b5   :  { %v5611_v0 = vpop.f32.mrf.mxu1 }
0x30b7   :  { %v6805_v5 = vpop.f32.mrf.mxu1 }
0x30b9   :  { %v5684_v19 = vpop.f32.mrf.mxu1 }
0x30ba   :  { %v5690_v28 = vrot.slane %v5684_v19, 7 }
0x30bb   :  { %v6812_v63 = vpop.f32.mrf.mxu1 }
0x30bc   :  { %v5691_v32 = vsel %vm612_vm3, %v5690_v28, %v5611_v0 }
0x30bd   :  { %v5693_v40 = vadd.f32 %v5691_v32, %v8059_v44 }
0x30bf   :  { %6818 = vmatmul.mubr.msk.f32.vlgmr.msra.gmra.mxu0 %vm63_vm0, %v5693_v40 }
0x30c0   :  { %6840 = vmatpush3.msra.mxu0 %v7767_v53  ;;  %6843 = vmatprep.mubr.msk.f32.mxu0 %vm6964_vm2, %v6962_v23 }
0x30c1   :  { %6841 = vmatprep.subr.mxu0 %v6962_v23 }
0x30c2   :  { %6842 = vmatpush3.msra.mxu0 %v7776_v60 }
0x317f   :  { %v5763_v42 = vpop.f32.mrf.mxu0 }
0x3180   :  { %v5764_v43 = vadd.f32 %v7783_v54, %v5763_v42 }
0x3181   :  { %v6819_v46 = vpop.f32.mrf.mxu0 }
0x3182   :  { %v5767_v31 = vmax.f32 %v5764_v43, 0.0 }
0x3184   :  { %6837 = vmatmul.mubr.msk.f32.vlgmr.msra.gmra.mxu1 %vm687_vm4, %v5767_v31 }
0x3244   :  { %v5837_v48 = vpop.f32.mrf.mxu1 }
0x3245   :  { %v5841_v44 = vadd.f32 %v5837_v48, %v5693_v40 }
0x3246   :  { %v6838_v50 = vpop.f32.mrf.mxu1 }
0x3247   :  { %v5842_v51 = vadd.f32 %v7792_v7, %v5841_v44 }
0x3249   :  { %6844 = vmatmul.mubr.msk.f32.vlgmr.msra.gmra.mxu0 %vm63_vm0, %v5842_v51 }
0x324a   :  { %6949 = shalt.err (!%p6946_p4)
}
0x324b   :  { %s6967_s28 = smov 128   ;;  %s6968_s25 = smov 8  }
0x324c   :  { %5956 = dma.vmem_to_hbm [thread:$0]  %s5951_s27, 512, %s8169_s10, [#allocation5], %s6967_s28, %s6967_s28, %s6968_s25  }
0x3309   :  { %v5912_v23 = vpop.f32.mrf.mxu0 }
0x330a   :  { %v5913_v53 = vadd.f32 %v7803_v11, %v5912_v23 }
0x330b   :  { %v6845_v60 = vpop.f32.mrf.mxu0 }
0x330c   :  { %v5923_v54 = vrot.slane %v5913_v53, %v7257_v45 }
0x330e   :  { %v5924_v7 = vcombine.high %v5923_v54, %v5923_v54  ;;  %v5931_v6 = vrot.slane %v5923_v54, %v7257_v45 }
0x3310   :  { %v5938_v52 = vrot.slane %v5924_v7, %v7257_v45  ;;  %5941 = vst.msk [vmem:[%s8168_s9 + $0x7] sm:$0x1] %vm884_vm7, %v5931_v6 }
0x3312   :  { %5942 = vst.msk [vmem:[%s8168_s9 + $0xf] sm:$0x1] %vm884_vm7, %v5938_v52 }
0x3313   :  { %6958 = dma.done.wait [#allocation5], 512  }
0x3314   :  { %6959 = vsyncadd [#allocation5], 4294966784 }
0x3315   :  { %5962 = vsyncpa [#allocation5], 1 }

</bundles_post_ra>
